<compile_context>
chip_gen: v7x
topology: tpu7x:2x2x1
jax: 0.10.0
libtpu: 0.0.40
codegen_flags: <defaults>
</compile_context>

<pallas_src>
import functools

import numpy as np
import jax
import jax.numpy as jnp
from jax.experimental import pallas as pl
from jax.experimental.pallas import tpu as pltpu

_SQRT2_INV = 1.0 / np.sqrt(2.0)

# ----------------------------------------------------------------------------
# Pure-JAX / numpy glue: window helpers, relative-position index, shift mask
# ----------------------------------------------------------------------------

def window_partition(x, ws):
    B, H, W, C = x.shape
    x = x.reshape(B, H // ws, ws, W // ws, ws, C)
    return x.transpose(0, 1, 3, 2, 4, 5).reshape(-1, ws, ws, C)


def window_reverse(windows, ws, H, W):
    B = windows.shape[0] // ((H // ws) * (W // ws))
    x = windows.reshape(B, H // ws, W // ws, ws, ws, -1)
    return x.transpose(0, 1, 3, 2, 4, 5).reshape(B, H, W, -1)


def _np_window_partition(x, ws):
    B, H, W, C = x.shape
    x = x.reshape(B, H // ws, ws, W // ws, ws, C)
    return x.transpose(0, 1, 3, 2, 4, 5).reshape(-1, ws, ws, C)


def compute_rel_index(ws):
    coords = np.stack(np.meshgrid(np.arange(ws), np.arange(ws), indexing="ij"))
    coords_flatten = coords.reshape(2, -1)
    rel = coords_flatten[:, :, None] - coords_flatten[:, None, :]
    rel = rel.transpose(1, 2, 0).copy()
    rel[:, :, 0] += ws - 1
    rel[:, :, 1] += ws - 1
    rel[:, :, 0] *= 2 * ws - 1
    return rel.sum(-1)  # (N, N) int


def calculate_mask(H, W, ws, shift):
    img_mask = np.zeros((1, H, W, 1), np.float32)
    cnt = 0
    slices = (slice(0, -ws), slice(-ws, -shift), slice(-shift, None))
    for h in slices:
        for w in slices:
            img_mask[:, h, w, :] = cnt
            cnt += 1
    mw = _np_window_partition(img_mask, ws).reshape(-1, ws * ws)
    am = mw[:, None, :] - mw[:, :, None]
    return np.where(am != 0, -100.0, 0.0).astype(np.float32)  # (nW, N, N)


# ----------------------------------------------------------------------------
# Generation-aware tiling helpers
# ----------------------------------------------------------------------------

def _preferred_mlp_row_tile():
    # v5e MXU is 128-wide -> smaller row tile keeps vreg/VMEM pressure down;
    # v6e/v7x MXUs are 256-wide and want M >= 256.
    try:
        kind = jax.devices()[0].device_kind.lower()
    except Exception:
        kind = ""
    if "v5 lite" in kind or "v5e" in kind or "v5litepod" in kind:
        return 128
    return 256


def _pick_row_tile(T, pref):
    for tm in (pref, 512, 256, 128, 64, 32, 16, 8):
        if tm <= T and T % tm == 0:
            return tm
    return T


def _pick_hidden_chunk(Hd):
    for c in (512, 256, 128):
        if Hd % c == 0:
            return min(c, Hd)
    return Hd


def _vmem_limit_bytes(est):
    # ~2x headroom over the estimated footprint, but stay well inside
    # v7x's 64 MiB per-TensorCore physical VMEM (v5e/v6e have 128 MiB).
    return int(min(max(2 * est, 32 * 1024 * 1024), 60 * 1024 * 1024))


# ----------------------------------------------------------------------------
# Pallas kernel 1: fused LN1 + shift + window attention + proj + residual
# Grid (B,): one full image per step.  Attention is batched over all windows
# (one batched dot_general per head); bias and mask are added on the VPU.
# ----------------------------------------------------------------------------

def _attn_kernel(x_ref, relbias_ref, *rest, num_heads, window_size, shift,
                 has_mask):
    if has_mask:
        (mask_ref, g_ref, b_ref, wqkv_ref, bqkv_ref,
         wproj_ref, bproj_ref, o_ref) = rest
    else:
        mask_ref = None
        (g_ref, b_ref, wqkv_ref, bqkv_ref,
         wproj_ref, bproj_ref, o_ref) = rest

    ws = window_size
    _, H, W, C = x_ref.shape
    nHh, nWw = H // ws, W // ws
    nWin = nHh * nWw
    N = ws * ws
    nh = num_heads
    hd = C // nh

    x = x_ref[0]                                  # (H, W, C) f32, residual
    xf = x.reshape(H * W, C)

    # fused LayerNorm (norm1), f32
    mu = jnp.mean(xf, axis=-1, keepdims=True)
    var = jnp.mean(jnp.square(xf - mu), axis=-1, keepdims=True)
    y = (xf - mu) * jax.lax.rsqrt(var + 1e-5) * g_ref[...] + b_ref[...]

    # QKV projection for the whole image at once (M = H*W rows).
    # qk scale is pre-folded into the q columns of wqkv / bqkv.
    qkv = jnp.dot(y.astype(jnp.bfloat16), wqkv_ref[...],
                  preferred_element_type=jnp.float32) + bqkv_ref[...]   # (H*W, 3C)
    qkv = qkv.reshape(H, W, 3 * C)

    # cyclic shift in VMEM (no extra HBM round trip); LN/QKV are per-token so
    # rolling after them is equivalent to the reference order.
    if shift > 0:
        qkv = jnp.roll(qkv, (-shift, -shift), axis=(0, 1))

    # window partition: only major dims move (last two dims untouched)
    qkv = (qkv.reshape(nHh, ws, nWw, ws, 3 * C)
              .transpose(0, 2, 1, 3, 4)
              .reshape(nWin, N, 3 * C))

    # attention, batched over all windows per head (batch dim = nWin)
    head_outs = []
    for h in range(nh):
        q = qkv[:, :, h * hd:(h + 1) * hd].astype(jnp.bfloat16)            # (nWin,N,hd)
        k = qkv[:, :, C + h * hd:C + (h + 1) * hd].astype(jnp.bfloat16)
        v = qkv[:, :, 2 * C + h * hd:2 * C + (h + 1) * hd].astype(jnp.bfloat16)

        s = jax.lax.dot_general(q, k, (((2,), (2,)), ((0,), (0,))),
                                preferred_element_type=jnp.float32)        # (nWin,N,N)
        s = s + relbias_ref[h]                                             # (N,N) bcast
        if has_mask:
            s = s + mask_ref[...]                                          # (nWin,N,N)

        s = s - jnp.max(s, axis=-1, keepdims=True)
        p = jnp.exp(s)
        p = p * (1.0 / jnp.sum(p, axis=-1, keepdims=True))                 # exact softmax

        o = jax.lax.dot_general(p.astype(jnp.bfloat16), v,
                                (((2,), (1,)), ((0,), (0,))),
                                preferred_element_type=jnp.float32)        # (nWin,N,hd)
        head_outs.append(o)

    # heads concatenated along lanes -> lane-dense (nWin*N, C), no VMEM scratch
    attn_out = head_outs[0] if nh == 1 else jnp.concatenate(head_outs, axis=-1)
    attn_out = attn_out.reshape(nWin * N, C)

    proj = jnp.dot(attn_out.astype(jnp.bfloat16), wproj_ref[...],
                   preferred_element_type=jnp.float32) + bproj_ref[...]    # (nWin*N, C)

    # window reverse (major-dim transpose only) + inverse shift + residual,
    # written back with a single full-tile store.
    img = (proj.reshape(nHh, nWw, ws, ws, C)
               .transpose(0, 2, 1, 3, 4)
               .reshape(H, W, C))
    if shift > 0:
        img = jnp.roll(img, (shift, shift), axis=(0, 1))
    o_ref[0] = x + img


def attn_block_pallas(img, p, num_heads, window_size):
    B, H, W, C = img.shape
    ws = window_size
    N = ws * ws
    nWin = (H // ws) * (W // ws)
    nh = num_heads
    shift = p["shift"]
    has_mask = shift > 0

    kern = functools.partial(_attn_kernel, num_heads=nh, window_size=ws,
                             shift=shift, has_mask=has_mask)

    in_specs = [
        pl.BlockSpec((1, H, W, C), lambda b: (b, 0, 0, 0)),
        pl.BlockSpec((nh, N, N), lambda b: (0, 0, 0)),   # batch-invariant: stays resident
    ]
    args = [img, p["rel_bias"]]
    if has_mask:
        in_specs.append(pl.BlockSpec((nWin, N, N), lambda b: (0, 0, 0)))
        args.append(p["mask"])
    in_specs += [
        pl.BlockSpec((1, C), lambda b: (0, 0)),
        pl.BlockSpec((1, C), lambda b: (0, 0)),
        pl.BlockSpec((C, 3 * C), lambda b: (0, 0)),
        pl.BlockSpec((1, 3 * C), lambda b: (0, 0)),
        pl.BlockSpec((C, C), lambda b: (0, 0)),
        pl.BlockSpec((1, C), lambda b: (0, 0)),
    ]
    args += [p["ln1_g"].reshape(1, C), p["ln1_b"].reshape(1, C),
             p["wqkv"], p["bqkv"].reshape(1, 3 * C),
             p["wproj"], p["bproj"].reshape(1, C)]

    # explicit VMEM budget (binding on v7x's 64 MiB)
    est = (2 * 2 * H * W * C * 4                      # in/out image blocks, double-buffered
           + nh * N * N * 4                           # rel bias
           + (nWin * N * N * 4 if has_mask else 0)    # shift mask
           + C * 3 * C * 2 + C * C * 2 + 8 * C * 4    # weights / biases
           + 2 * H * W * 3 * C * 4                    # qkv intermediates (f32)
           + 2 * nWin * N * N * 4)                    # score/prob intermediates

    # TODO(synk): with grid=(B,), a batch size of 1 would leave one v7x
    # TensorCore idle; for B==1 split H into two "parallel" halves (only
    # valid for the non-shifted blocks).
    return pl.pallas_call(
        kern,
        out_shape=jax.ShapeDtypeStruct((B, H, W, C), jnp.float32),
        grid=(B,),
        in_specs=in_specs,
        out_specs=pl.BlockSpec((1, H, W, C), lambda b: (b, 0, 0, 0)),
        compiler_params=pltpu.CompilerParams(
            dimension_semantics=("parallel",),
            vmem_limit_bytes=_vmem_limit_bytes(est)),
    )(*args)


# ----------------------------------------------------------------------------
# Pallas kernel 2: fused LN2 + MLP (Linear/GELU/Linear) + residual, row-tiled,
# hidden dimension processed in chunks with an accumulated second matmul.
# ----------------------------------------------------------------------------

def _mlp_kernel(x_ref, g_ref, b_ref, w1_ref, b1_ref, w2_ref, b2_ref, o_ref, *,
                hidden_chunk):
    x = x_ref[...]
    mu = jnp.mean(x, axis=-1, keepdims=True)
    var = jnp.mean(jnp.square(x - mu), axis=-1, keepdims=True)
    y = ((x - mu) * jax.lax.rsqrt(var + 1e-5) * g_ref[...]
         + b_ref[...]).astype(jnp.bfloat16)

    Hd = w1_ref.shape[1]
    acc = x + b2_ref[...]                      # residual + final bias
    for c0 in range(0, Hd, hidden_chunk):
        c1 = min(c0 + hidden_chunk, Hd)
        h = jnp.dot(y, w1_ref[:, c0:c1],
                    preferred_element_type=jnp.float32) + b1_ref[:, c0:c1]
        # exact GELU (matches torch nn.GELU); tanh-approx would move work to
        # the EUP but diverges from the reference semantics.
        h = 0.5 * h * (1.0 + jax.lax.erf(h * _SQRT2_INV))
        acc = acc + jnp.dot(h.astype(jnp.bfloat16), w2_ref[c0:c1, :],
                            preferred_element_type=jnp.float32)
    o_ref[...] = acc


def mlp_block_pallas(x2d, g, b, w1, b1, w2, b2):
    T, C = x2d.shape
    Hd = w1.shape[1]
    tm = _pick_row_tile(T, _preferred_mlp_row_tile())
    chunk = _pick_hidden_chunk(Hd)
    kern = functools.partial(_mlp_kernel, hidden_chunk=chunk)
    return pl.pallas_call(
        kern,
        out_shape=jax.ShapeDtypeStruct((T, C), jnp.float32),
        grid=(T // tm,),
        in_specs=[
            pl.BlockSpec((tm, C), lambda i: (i, 0)),
            pl.BlockSpec((1, C), lambda i: (0, 0)),
            pl.BlockSpec((1, C), lambda i: (0, 0)),
            pl.BlockSpec((C, Hd), lambda i: (0, 0)),
            pl.BlockSpec((1, Hd), lambda i: (0, 0)),
            pl.BlockSpec((Hd, C), lambda i: (0, 0)),
            pl.BlockSpec((1, C), lambda i: (0, 0)),
        ],
        out_specs=pl.BlockSpec((tm, C), lambda i: (i, 0)),
        compiler_params=pltpu.CompilerParams(dimension_semantics=("parallel",)),
    )(x2d, g.reshape(1, C), b.reshape(1, C),
      w1, b1.reshape(1, Hd), w2, b2.reshape(1, C))


# ----------------------------------------------------------------------------
# Pure-JAX reference (same math & bf16 casts, no Pallas) for verification
# ----------------------------------------------------------------------------

def attn_block_ref(img, p, num_heads, window_size):
    B, H, W, C = img.shape
    ws = window_size
    N = ws * ws
    nh = num_heads
    hd = C // nh
    shift = p["shift"]

    toks = img.reshape(B * H * W, C)
    mu = jnp.mean(toks, -1, keepdims=True)
    var = jnp.mean(jnp.square(toks - mu), -1, keepdims=True)
    y = ((toks - mu) * jax.lax.rsqrt(var + 1e-5) * p["ln1_g"]
         + p["ln1_b"]).reshape(B, H, W, C)

    if shift > 0:
        y = jnp.roll(y, (-shift, -shift), axis=(1, 2))
    xw = window_partition(y, ws).reshape(-1, N, C)
    B_ = xw.shape[0]
    nWin = B_ // B

    qkv = jnp.dot(xw.astype(jnp.bfloat16), p["wqkv"],
                  preferred_element_type=jnp.float32) + p["bqkv"]
    qkv = qkv.reshape(B_, N, 3, nh, hd).transpose(2, 0, 3, 1, 4)
    q, k, v = qkv[0], qkv[1], qkv[2]          # scale already folded into wqkv/bqkv
    attn = jnp.einsum("bhnd,bhmd->bhnm", q.astype(jnp.bfloat16),
                      k.astype(jnp.bfloat16), preferred_element_type=jnp.float32)
    attn = attn + p["rel_bias"][None]
    if shift > 0:
        attn = attn + p["mask"][jnp.arange(B_) % nWin][:, None]
    attn = jax.nn.softmax(attn, axis=-1)
    out = jnp.einsum("bhnm,bhmd->bhnd", attn.astype(jnp.bfloat16),
                     v.astype(jnp.bfloat16), preferred_element_type=jnp.float32)
    out = out.transpose(0, 2, 1, 3).reshape(B_, N, C)
    out = jnp.dot(out.astype(jnp.bfloat16), p["wproj"],
                  preferred_element_type=jnp.float32) + p["bproj"]
    out = window_reverse(out.reshape(-1, ws, ws, C), ws, H, W)
    if shift > 0:
        out = jnp.roll(out, (shift, shift), axis=(1, 2))
    return img + out


def mlp_block_ref(x2d, g, b, w1, b1, w2, b2):
    mu = jnp.mean(x2d, -1, keepdims=True)
    var = jnp.mean(jnp.square(x2d - mu), -1, keepdims=True)
    y = (x2d - mu) * jax.lax.rsqrt(var + 1e-5) * g + b
    h = jnp.dot(y.astype(jnp.bfloat16), w1, preferred_element_type=jnp.float32) + b1
    h = 0.5 * h * (1.0 + jax.lax.erf(h * _SQRT2_INV))
    return x2d + jnp.dot(h.astype(jnp.bfloat16), w2,
                         preferred_element_type=jnp.float32) + b2


# ----------------------------------------------------------------------------
# BasicLayer forward (glue shared between Pallas and reference op sets)
# ----------------------------------------------------------------------------

def basic_layer_forward(x, x_size, params, *, num_heads, window_size,
                        attn_fn, mlp_fn):
    H, W = x_size
    B, L, C = x.shape
    out = x
    for p in params["blocks"]:
        img = out.reshape(B, H, W, C)
        # fused: residual + proj(attn(windows(shift(LN1(img)))))
        img = attn_fn(img, p, num_heads, window_size)
        out = img.reshape(B, L, C)
        # fused: residual + MLP(GELU, LN2)
        out = mlp_fn(out.reshape(B * L, C), p["ln2_g"], p["ln2_b"],
                     p["w1"], p["b1"], p["w2"], p["b2"]).reshape(B, L, C)
    # downsample is None in this config -> identity
    return out


# ----------------------------------------------------------------------------
# Deterministic parameter init (shapes follow the PyTorch module's __init__)
# ----------------------------------------------------------------------------

def init_params(key, dim, depth, num_heads, window_size, mlp_ratio, input_resolution):
    H, W = input_resolution
    ws = window_size
    N = ws * ws
    nW = (H // ws) * (W // ws)
    hidden = int(dim * mlp_ratio)
    n_rel = (2 * ws - 1) ** 2
    rel_index = compute_rel_index(ws)
    hd = dim // num_heads
    scale = hd ** (-0.5)

    blocks = []
    for i in range(depth):
        key, k0, k1, k2, k3, k4, k5, k6 = jax.random.split(key, 8)
        shift = 0 if i % 2 == 0 else ws // 2
        rpb = 0.02 * jax.random.normal(k0, (n_rel, num_heads), jnp.float32)
        rel_bias = rpb[rel_index.reshape(-1)].reshape(N, N, num_heads).transpose(2, 0, 1)
        mask = (jnp.asarray(calculate_mask(H, W, ws, shift))
                if shift > 0 else None)                          # (nW, N, N) or None

        wqkv = 0.05 * jax.random.normal(k1, (dim, 3 * dim), jnp.float32)
        bqkv = 0.05 * jax.random.normal(k2, (3 * dim,), jnp.float32)
        # fold qk scale (head_dim ** -0.5) into the q columns at init time
        wqkv = wqkv.at[:, :dim].multiply(scale)
        bqkv = bqkv.at[:dim].multiply(scale)

        blocks.append(dict(
            shift=shift,
            ln1_g=jnp.ones((dim,), jnp.float32), ln1_b=jnp.zeros((dim,), jnp.float32),
            wqkv=wqkv.astype(jnp.bfloat16),
            bqkv=bqkv,
            wproj=(0.05 * jax.random.normal(k3, (dim, dim), jnp.float32)).astype(jnp.bfloat16),
            bproj=0.05 * jax.random.normal(k4, (dim,), jnp.float32),
            ln2_g=jnp.ones((dim,), jnp.float32), ln2_b=jnp.zeros((dim,), jnp.float32),
            w1=(0.05 * jax.random.normal(k5, (dim, hidden), jnp.float32)).astype(jnp.bfloat16),
            b1=jnp.zeros((hidden,), jnp.float32),
            w2=(0.05 * jax.random.normal(k6, (hidden, dim), jnp.float32)).astype(jnp.bfloat16),
            b2=jnp.zeros((dim,), jnp.float32),
            rel_bias=rel_bias.astype(jnp.float32),   # (nh, N, N)
            mask=mask,                               # (nW, N, N) or None
        ))
    return dict(blocks=blocks)


# ----------------------------------------------------------------------------

if __name__ == "__main__":
    B, dim, H, W = 2, 32, 16, 16
    depth, num_heads, window_size, mlp_ratio = 2, 2, 8, 4.0

    key = jax.random.PRNGKey(0)
    pkey, xkey = jax.random.split(key)
    params = init_params(pkey, dim, depth, num_heads, window_size, mlp_ratio, (H, W))
    x = jax.random.normal(xkey, (B, H * W, dim), jnp.float32)

    out = basic_layer_forward(x, (H, W), params, num_heads=num_heads,
                              window_size=window_size,
                              attn_fn=attn_block_pallas, mlp_fn=mlp_block_pallas)
    out = jax.block_until_ready(out)

    out_ref = basic_layer_forward(x, (H, W), params, num_heads=num_heads,
                                  window_size=window_size,
                                  attn_fn=attn_block_ref, mlp_fn=mlp_block_ref)
    out_ref = jax.block_until_ready(out_ref)

    assert out.shape == (B, H * W, dim)
    np.testing.assert_allclose(np.asarray(out), np.asarray(out_ref),
                               rtol=1e-2, atol=1e-2)
    print("KERNEL_OK")
</pallas_src>

<mosaic_0001>
module attributes {stable_mosaic.version = 11 : i64} {
  func.func @_attn_kernel(%arg0: i32, %arg1: memref<1x16x16x32xf32, #tpu.memory_space<vmem>>, %arg2: memref<2x64x64xf32, #tpu.memory_space<vmem>>, %arg3: memref<1x32xf32, #tpu.memory_space<vmem>>, %arg4: memref<1x32xf32, #tpu.memory_space<vmem>>, %arg5: memref<32x96xbf16, #tpu.memory_space<vmem>>, %arg6: memref<1x96xf32, #tpu.memory_space<vmem>>, %arg7: memref<32x32xbf16, #tpu.memory_space<vmem>>, %arg8: memref<1x32xf32, #tpu.memory_space<vmem>>, %arg9: memref<1x16x16x32xf32, #tpu.memory_space<vmem>>) attributes {dimension_semantics = [#tpu.dimension_semantics<parallel>], iteration_bounds = array<i64: 2>, scalar_prefetch = 0 : i64, scratch_operands = 0 : i64, tpu.core_type = #tpu.core_type<tc>, window_params = [{transform_indices = @transform_0, window_bounds = array<i64: 1, 16, 16, 32>}, {pipeline_mode = #tpu.pipeline_mode<synchronous>, transform_indices = @transform_1, window_bounds = array<i64: 2, 64, 64>}, {pipeline_mode = #tpu.pipeline_mode<synchronous>, transform_indices = @transform_2, window_bounds = array<i64: 1, 32>}, {pipeline_mode = #tpu.pipeline_mode<synchronous>, transform_indices = @transform_3, window_bounds = array<i64: 1, 32>}, {pipeline_mode = #tpu.pipeline_mode<synchronous>, transform_indices = @transform_4, window_bounds = array<i64: 32, 96>}, {pipeline_mode = #tpu.pipeline_mode<synchronous>, transform_indices = @transform_5, window_bounds = array<i64: 1, 96>}, {pipeline_mode = #tpu.pipeline_mode<synchronous>, transform_indices = @transform_6, window_bounds = array<i64: 32, 32>}, {pipeline_mode = #tpu.pipeline_mode<synchronous>, transform_indices = @transform_7, window_bounds = array<i64: 1, 32>}, {transform_indices = @transform_8, window_bounds = array<i64: 1, 16, 16, 32>}]} {
    %c0 = arith.constant 0 : index
    %c0_0 = arith.constant 0 : index
    %c0_1 = arith.constant 0 : index
    %c0_2 = arith.constant 0 : index
    %0 = vector.load %arg1[%c0, %c0_0, %c0_1, %c0_2] : memref<1x16x16x32xf32, #tpu.memory_space<vmem>>, vector<1x16x16x32xf32>
    %1 = vector.shape_cast %0 : vector<1x16x16x32xf32> to vector<16x16x32xf32>
    %2 = vector.shape_cast %1 : vector<16x16x32xf32> to vector<256x32xf32>
    %cst = arith.constant dense<0.000000e+00> : vector<256xf32>
    %3 = vector.multi_reduction <add>, %2, %cst [1] : vector<256x32xf32> to vector<256xf32>
    %4 = vector.shape_cast %3 : vector<256xf32> to vector<256x1xf32>
    %cst_3 = arith.constant 3.200000e+01 : f32
    %5 = vector.broadcast %cst_3 : f32 to vector<256x1xf32>
    %6 = arith.divf %4, %5 : vector<256x1xf32>
    %7 = vector.broadcast %6 : vector<256x1xf32> to vector<256x32xf32>
    %8 = arith.subf %2, %7 : vector<256x32xf32>
    %9 = arith.mulf %8, %8 : vector<256x32xf32>
    %cst_4 = arith.constant dense<0.000000e+00> : vector<256xf32>
    %10 = vector.multi_reduction <add>, %9, %cst_4 [1] : vector<256x32xf32> to vector<256xf32>
    %11 = vector.shape_cast %10 : vector<256xf32> to vector<256x1xf32>
    %cst_5 = arith.constant 3.200000e+01 : f32
    %12 = vector.broadcast %cst_5 : f32 to vector<256x1xf32>
    %13 = arith.divf %11, %12 : vector<256x1xf32>
    %14 = vector.broadcast %6 : vector<256x1xf32> to vector<256x32xf32>
    %15 = arith.subf %2, %14 : vector<256x32xf32>
    %cst_6 = arith.constant 9.99999974E-6 : f32
    %16 = vector.broadcast %cst_6 : f32 to vector<256x1xf32>
    %17 = arith.addf %13, %16 : vector<256x1xf32>
    %18 = math.rsqrt %17 : vector<256x1xf32>
    %19 = vector.broadcast %18 : vector<256x1xf32> to vector<256x32xf32>
    %20 = arith.mulf %15, %19 : vector<256x32xf32>
    %c0_7 = arith.constant 0 : index
    %c0_8 = arith.constant 0 : index
    %21 = vector.load %arg3[%c0_7, %c0_8] : memref<1x32xf32, #tpu.memory_space<vmem>>, vector<1x32xf32>
    %22 = vector.broadcast %21 : vector<1x32xf32> to vector<256x32xf32>
    %23 = arith.mulf %20, %22 : vector<256x32xf32>
    %c0_9 = arith.constant 0 : index
    %c0_10 = arith.constant 0 : index
    %24 = vector.load %arg4[%c0_9, %c0_10] : memref<1x32xf32, #tpu.memory_space<vmem>>, vector<1x32xf32>
    %25 = vector.broadcast %24 : vector<1x32xf32> to vector<256x32xf32>
    %26 = arith.addf %23, %25 : vector<256x32xf32>
    %27 = arith.truncf %26 : vector<256x32xf32> to vector<256x32xbf16>
    %c0_11 = arith.constant 0 : index
    %c0_12 = arith.constant 0 : index
    %28 = vector.load %arg5[%c0_11, %c0_12] : memref<32x96xbf16, #tpu.memory_space<vmem>>, vector<32x96xbf16>
    %cst_13 = arith.constant dense<0.000000e+00> : vector<256x96xf32>
    %29 = tpu.matmul %27, %28, %cst_13 {dimension_numbers = #tpu.dot_dimension_numbers<[1], [0], [0], [1], [0, 0, 1, 1], [], []>} : vector<256x32xbf16>, vector<32x96xbf16>, vector<256x96xf32> -> vector<256x96xf32>
    %c0_14 = arith.constant 0 : index
    %c0_15 = arith.constant 0 : index
    %30 = vector.load %arg6[%c0_14, %c0_15] : memref<1x96xf32, #tpu.memory_space<vmem>>, vector<1x96xf32>
    %31 = vector.broadcast %30 : vector<1x96xf32> to vector<256x96xf32>
    %32 = arith.addf %29, %31 : vector<256x96xf32>
    %33 = vector.shape_cast %32 : vector<256x96xf32> to vector<16x16x96xf32>
    %34 = vector.shape_cast %33 : vector<16x16x96xf32> to vector<2x8x2x8x96xf32>
    %35 = tpu.transpose %34, [0, 2, 1, 3, 4] : vector<2x8x2x8x96xf32> -> vector<2x2x8x8x96xf32>
    %36 = vector.shape_cast %35 : vector<2x2x8x8x96xf32> to vector<4x64x96xf32>
    %37 = vector.extract_strided_slice %36 {offsets = [0, 0, 0], sizes = [4, 64, 16], strides = [1, 1, 1]} : vector<4x64x96xf32> to vector<4x64x16xf32>
    %38 = arith.truncf %37 : vector<4x64x16xf32> to vector<4x64x16xbf16>
    %39 = vector.extract_strided_slice %36 {offsets = [0, 0, 32], sizes = [4, 64, 16], strides = [1, 1, 1]} : vector<4x64x96xf32> to vector<4x64x16xf32>
    %40 = arith.truncf %39 : vector<4x64x16xf32> to vector<4x64x16xbf16>
    %41 = vector.extract_strided_slice %36 {offsets = [0, 0, 64], sizes = [4, 64, 16], strides = [1, 1, 1]} : vector<4x64x96xf32> to vector<4x64x16xf32>
    %42 = arith.truncf %41 : vector<4x64x16xf32> to vector<4x64x16xbf16>
    %cst_16 = arith.constant dense<0.000000e+00> : vector<4x64x64xf32>
    %43 = tpu.matmul %38, %40, %cst_16 {dimension_numbers = #tpu.dot_dimension_numbers<[2], [2], [1], [1], [0, 0, 0, 1, 1, 1], [0], [0]>} : vector<4x64x16xbf16>, vector<4x64x16xbf16>, vector<4x64x64xf32> -> vector<4x64x64xf32>
    %c0_17 = arith.constant 0 : index
    %c0_18 = arith.constant 0 : index
    %c0_19 = arith.constant 0 : index
    %44 = vector.load %arg2[%c0_17, %c0_18, %c0_19] : memref<2x64x64xf32, #tpu.memory_space<vmem>>, vector<1x64x64xf32>
    %45 = vector.shape_cast %44 : vector<1x64x64xf32> to vector<64x64xf32>
    %46 = vector.shape_cast %45 : vector<64x64xf32> to vector<1x64x64xf32>
    %47 = vector.broadcast %46 : vector<1x64x64xf32> to vector<4x64x64xf32>
    %48 = arith.addf %43, %47 : vector<4x64x64xf32>
    %cst_20 = arith.constant dense<0xFF800000> : vector<4x64xf32>
    %49 = vector.multi_reduction <maximumf>, %48, %cst_20 [2] : vector<4x64x64xf32> to vector<4x64xf32>
    %50 = vector.shape_cast %49 : vector<4x64xf32> to vector<4x64x1xf32>
    %51 = vector.broadcast %50 : vector<4x64x1xf32> to vector<4x64x64xf32>
    %52 = arith.subf %48, %51 : vector<4x64x64xf32>
    %53 = math.exp %52 : vector<4x64x64xf32>
    %cst_21 = arith.constant dense<0.000000e+00> : vector<4x64xf32>
    %54 = vector.multi_reduction <add>, %53, %cst_21 [2] : vector<4x64x64xf32> to vector<4x64xf32>
    %55 = vector.shape_cast %54 : vector<4x64xf32> to vector<4x64x1xf32>
    %cst_22 = arith.constant 1.000000e+00 : f32
    %56 = vector.broadcast %cst_22 : f32 to vector<4x64x1xf32>
    %57 = arith.divf %56, %55 : vector<4x64x1xf32>
    %58 = vector.broadcast %57 : vector<4x64x1xf32> to vector<4x64x64xf32>
    %59 = arith.mulf %53, %58 : vector<4x64x64xf32>
    %60 = arith.truncf %59 : vector<4x64x64xf32> to vector<4x64x64xbf16>
    %cst_23 = arith.constant dense<0.000000e+00> : vector<4x64x16xf32>
    %61 = tpu.matmul %60, %42, %cst_23 {dimension_numbers = #tpu.dot_dimension_numbers<[2], [1], [1], [2], [0, 0, 0, 1, 1, 2], [0], [0]>} : vector<4x64x64xbf16>, vector<4x64x16xbf16>, vector<4x64x16xf32> -> vector<4x64x16xf32>
    %62 = vector.extract_strided_slice %36 {offsets = [0, 0, 16], sizes = [4, 64, 16], strides = [1, 1, 1]} : vector<4x64x96xf32> to vector<4x64x16xf32>
    %63 = arith.truncf %62 : vector<4x64x16xf32> to vector<4x64x16xbf16>
    %64 = vector.extract_strided_slice %36 {offsets = [0, 0, 48], sizes = [4, 64, 16], strides = [1, 1, 1]} : vector<4x64x96xf32> to vector<4x64x16xf32>
    %65 = arith.truncf %64 : vector<4x64x16xf32> to vector<4x64x16xbf16>
    %66 = vector.extract_strided_slice %36 {offsets = [0, 0, 80], sizes = [4, 64, 16], strides = [1, 1, 1]} : vector<4x64x96xf32> to vector<4x64x16xf32>
    %67 = arith.truncf %66 : vector<4x64x16xf32> to vector<4x64x16xbf16>
    %cst_24 = arith.constant dense<0.000000e+00> : vector<4x64x64xf32>
    %68 = tpu.matmul %63, %65, %cst_24 {dimension_numbers = #tpu.dot_dimension_numbers<[2], [2], [1], [1], [0, 0, 0, 1, 1, 1], [0], [0]>} : vector<4x64x16xbf16>, vector<4x64x16xbf16>, vector<4x64x64xf32> -> vector<4x64x64xf32>
    %c1 = arith.constant 1 : index
    %c0_25 = arith.constant 0 : index
    %c0_26 = arith.constant 0 : index
    %69 = vector.load %arg2[%c1, %c0_25, %c0_26] : memref<2x64x64xf32, #tpu.memory_space<vmem>>, vector<1x64x64xf32>
    %70 = vector.shape_cast %69 : vector<1x64x64xf32> to vector<64x64xf32>
    %71 = vector.shape_cast %70 : vector<64x64xf32> to vector<1x64x64xf32>
    %72 = vector.broadcast %71 : vector<1x64x64xf32> to vector<4x64x64xf32>
    %73 = arith.addf %68, %72 : vector<4x64x64xf32>
    %cst_27 = arith.constant dense<0xFF800000> : vector<4x64xf32>
    %74 = vector.multi_reduction <maximumf>, %73, %cst_27 [2] : vector<4x64x64xf32> to vector<4x64xf32>
    %75 = vector.shape_cast %74 : vector<4x64xf32> to vector<4x64x1xf32>
    %76 = vector.broadcast %75 : vector<4x64x1xf32> to vector<4x64x64xf32>
    %77 = arith.subf %73, %76 : vector<4x64x64xf32>
    %78 = math.exp %77 : vector<4x64x64xf32>
    %cst_28 = arith.constant dense<0.000000e+00> : vector<4x64xf32>
    %79 = vector.multi_reduction <add>, %78, %cst_28 [2] : vector<4x64x64xf32> to vector<4x64xf32>
    %80 = vector.shape_cast %79 : vector<4x64xf32> to vector<4x64x1xf32>
    %cst_29 = arith.constant 1.000000e+00 : f32
    %81 = vector.broadcast %cst_29 : f32 to vector<4x64x1xf32>
    %82 = arith.divf %81, %80 : vector<4x64x1xf32>
    %83 = vector.broadcast %82 : vector<4x64x1xf32> to vector<4x64x64xf32>
    %84 = arith.mulf %78, %83 : vector<4x64x64xf32>
    %85 = arith.truncf %84 : vector<4x64x64xf32> to vector<4x64x64xbf16>
    %cst_30 = arith.constant dense<0.000000e+00> : vector<4x64x16xf32>
    %86 = tpu.matmul %85, %67, %cst_30 {dimension_numbers = #tpu.dot_dimension_numbers<[2], [1], [1], [2], [0, 0, 0, 1, 1, 2], [0], [0]>} : vector<4x64x64xbf16>, vector<4x64x16xbf16>, vector<4x64x16xf32> -> vector<4x64x16xf32>
    %87 = tpu.concatenate %61, %86 in 2 : vector<4x64x16xf32>, vector<4x64x16xf32> -> vector<4x64x32xf32>
    %88 = vector.shape_cast %87 : vector<4x64x32xf32> to vector<256x32xf32>
    %89 = arith.truncf %88 : vector<256x32xf32> to vector<256x32xbf16>
    %c0_31 = arith.constant 0 : index
    %c0_32 = arith.constant 0 : index
    %90 = vector.load %arg7[%c0_31, %c0_32] : memref<32x32xbf16, #tpu.memory_space<vmem>>, vector<32x32xbf16>
    %cst_33 = arith.constant dense<0.000000e+00> : vector<256x32xf32>
    %91 = tpu.matmul %89, %90, %cst_33 {dimension_numbers = #tpu.dot_dimension_numbers<[1], [0], [0], [1], [0, 0, 1, 1], [], []>} : vector<256x32xbf16>, vector<32x32xbf16>, vector<256x32xf32> -> vector<256x32xf32>
    %c0_34 = arith.constant 0 : index
    %c0_35 = arith.constant 0 : index
    %92 = vector.load %arg8[%c0_34, %c0_35] : memref<1x32xf32, #tpu.memory_space<vmem>>, vector<1x32xf32>
    %93 = vector.broadcast %92 : vector<1x32xf32> to vector<256x32xf32>
    %94 = arith.addf %91, %93 : vector<256x32xf32>
    %95 = vector.shape_cast %94 : vector<256x32xf32> to vector<2x2x8x8x32xf32>
    %96 = tpu.transpose %95, [0, 2, 1, 3, 4] : vector<2x2x8x8x32xf32> -> vector<2x8x2x8x32xf32>
    %97 = vector.shape_cast %96 : vector<2x8x2x8x32xf32> to vector<16x16x32xf32>
    %98 = arith.addf %1, %97 : vector<16x16x32xf32>
    %c0_36 = arith.constant 0 : index
    %c0_37 = arith.constant 0 : index
    %c0_38 = arith.constant 0 : index
    %c0_39 = arith.constant 0 : index
    %99 = vector.load %arg9[%c0_36, %c0_37, %c0_38, %c0_39] : memref<1x16x16x32xf32, #tpu.memory_space<vmem>>, vector<1x16x16x32xf32>
    %100 = vector.shape_cast %99 : vector<1x16x16x32xf32> to vector<16x16x32xf32>
    %101 = vector.shape_cast %98 : vector<16x16x32xf32> to vector<1x16x16x32xf32>
    tpu.vector_store %arg9[%c0_36, %c0_37, %c0_38, %c0_39], %101 {strides = array<i32>} : memref<1x16x16x32xf32, #tpu.memory_space<vmem>>, vector<1x16x16x32xf32>,
    return
  }
  func.func @transform_0(%arg0: i32) -> (i32, i32, i32, i32) {
    %c0_i32 = arith.constant 0 : i32
    %c0_i32_0 = arith.constant 0 : i32
    %c0_i32_1 = arith.constant 0 : i32
    %c0_i32_2 = arith.constant 0 : i32
    return %arg0, %c0_i32, %c0_i32_0, %c0_i32_1 : i32, i32, i32, i32
  }
  func.func @transform_1(%arg0: i32) -> (i32, i32, i32) {
    %c0_i32 = arith.constant 0 : i32
    %c0_i32_0 = arith.constant 0 : i32
    %c0_i32_1 = arith.constant 0 : i32
    %c0_i32_2 = arith.constant 0 : i32
    return %c0_i32, %c0_i32_0, %c0_i32_1 : i32, i32, i32
  }
  func.func @transform_2(%arg0: i32) -> (i32, i32) {
    %c0_i32 = arith.constant 0 : i32
    %c0_i32_0 = arith.constant 0 : i32
    %c0_i32_1 = arith.constant 0 : i32
    return %c0_i32, %c0_i32_0 : i32, i32
  }
  func.func @transform_3(%arg0: i32) -> (i32, i32) {
    %c0_i32 = arith.constant 0 : i32
    %c0_i32_0 = arith.constant 0 : i32
    %c0_i32_1 = arith.constant 0 : i32
    return %c0_i32, %c0_i32_0 : i32, i32
  }
  func.func @transform_4(%arg0: i32) -> (i32, i32) {
    %c0_i32 = arith.constant 0 : i32
    %c0_i32_0 = arith.constant 0 : i32
    %c0_i32_1 = arith.constant 0 : i32
    return %c0_i32, %c0_i32_0 : i32, i32
  }
  func.func @transform_5(%arg0: i32) -> (i32, i32) {
    %c0_i32 = arith.constant 0 : i32
    %c0_i32_0 = arith.constant 0 : i32
    %c0_i32_1 = arith.constant 0 : i32
    return %c0_i32, %c0_i32_0 : i32, i32
  }
  func.func @transform_6(%arg0: i32) -> (i32, i32) {
    %c0_i32 = arith.constant 0 : i32
    %c0_i32_0 = arith.constant 0 : i32
    %c0_i32_1 = arith.constant 0 : i32
    return %c0_i32, %c0_i32_0 : i32, i32
  }
  func.func @transform_7(%arg0: i32) -> (i32, i32) {
    %c0_i32 = arith.constant 0 : i32
    %c0_i32_0 = arith.constant 0 : i32
    %c0_i32_1 = arith.constant 0 : i32
    return %c0_i32, %c0_i32_0 : i32, i32
  }
  func.func @transform_8(%arg0: i32) -> (i32, i32, i32, i32) {
    %c0_i32 = arith.constant 0 : i32
    %c0_i32_0 = arith.constant 0 : i32
    %c0_i32_1 = arith.constant 0 : i32
    %c0_i32_2 = arith.constant 0 : i32
    return %arg0, %c0_i32, %c0_i32_0, %c0_i32_1 : i32, i32, i32, i32
  }
}

</mosaic_0001>

<bundles_post_ra>
// kernel: tpu_custom_call.1
= control target key start
LH: loop header
LB: loop body
LE: loop exit
PB: predicated region body
PF: predicated region fallthrough
CT: control target
= control target key end

     0   :  { %13 = vsyncpa [#allocation3], 0  ;;  %s7673_s0 = inlined_call_operand.hbm [shape: f32[2,16,16,32], index: 0, kind: input, shape index: {}]   ;;  %s7674_s1 = inlined_call_operand.hbm [shape: f32[2,64,64], index: 1, kind: input, shape index: {}]   ;;  %s7675_s2 = inlined_call_operand.vmem [shape: f32[1,32], index: 2, kind: input, shape index: {}]   ;;  %s7676_s3 = inlined_call_operand.vmem [shape: f32[1,32], index: 3, kind: input, shape index: {}]   ;;  %s7677_s4 = inlined_call_operand.hbm [shape: bf16[32,96], index: 4, kind: input, shape index: {}]   ;;  %s7678_s5 = inlined_call_operand.vmem [shape: f32[1,96], index: 5, kind: input, shape index: {}]   ;;  %s7679_s6 = inlined_call_operand.vmem [shape: bf16[32,32], index: 6, kind: input, shape index: {}]   ;;  %s7680_s7 = inlined_call_operand.vmem [shape: f32[1,32], index: 7, kind: input, shape index: {}]   ;;  %s7681_s8 = inlined_call_operand.hbm [shape: f32[2,16,16,32], index: 8, kind: output, shape index: {}]  }
   0x1   :  { %15 = vsyncpa [#allocation3 + $0x1], 0 }
   0x2   :  { %16 = vsyncpa [#allocation6], 0 }
   0x3   :  { %17 = vsyncpa [#allocation4], 0 }
   0x4   :  { %19 = vsyncpa [#allocation4 + $0x1], 0  ;;  %s5461_s27 = smov 0   ;;  %s5463_s28 = smov 0  }
   0x5   :  { %s5465_s29 = smov 0   ;;  %s5467_s30 = smov 0  }
   0x6 LB: > { %s5482_s9 = sadd.s32 4294967295, %s5398_s30   ;;  %s4079_s10 = sadd.s32 4294967294, %s5398_s30   ;;  %s5398_s30 = sphi %s5467_s30, %s7803_s30   ;;  %s5394_s29 = sphi %s5465_s29, %s7802_s29   ;;  %s5390_s28 = sphi %s5463_s28, %s7801_s28   ;;  %s5386_s27 = sphi %s5461_s27, %s7800_s27  }
   0x7   : > { %p45_p0 = scmp.ne.s32.totalorder %s5390_s28, %s5386_s27  ;;  %p7682_p1 = scmp.eq.s32.totalorder %s5482_s9, 0 }
   0x8   : > { %p222_p3 = scmp.eq.s32.totalorder %s4079_s10, 1  ;;  %p4080_p5 = scmp.ge.s32.totalorder %s5398_s30, 1 }
   0x9   : > { %p5491_p4 = por %p7682_p1, %p45_p0  ;;  %p229_p7 = scmp.lt.s32.totalorder %s5398_s30, 3 }
   0xa   : > { %p5496_p6 = por %p222_p3, %p45_p0  ;;  %s5400_s14 = smov [#allocation5]  }
   0xb   : > { %s7705_s11 = scalar_select %p5491_p4, 1, 0 }
   0xc   : > { %s7706_s12 = scalar_select %p5496_p6, 1, 0 }
   0xd   : > { %p5501_p8 = pnand %p4080_p5, %p229_p7  ;;  %s241_s15 = sshll.u32 %s5400_s14, 4  ;;  %s5505_s15 = int_to_ptr.vmem [resolvable:$true] %s241_s15 }
   0xe   : > { %s5401_s17 = smov [#allocation7]   ;;  %s5242_s21 = scalar_lea.hbm %s7674_s1, 2048 }
   0xf   : > { %p4739_p9 = pneg %p5501_p8  ;;  %s260_s18 = sshll.u32 %s5401_s17, 4  ;;  %s5516_s18 = int_to_ptr.vmem [resolvable:$true] %s260_s18 }
  0x10   : > { %p5243_p12 = scmp.ne.s32.totalorder %s7674_s1, %s5242_s21  ;;  %p5249_p5 = scmp.lt.u32.totalorder %s5242_s21, %s7674_s1 }
  0x11   : > { %p5512_p11 = pnand %p4739_p9, %p7682_p1 }
  0x13   : > { %p5244_p13 = pneg %p5512_p11 }
  0x15   : > { %p5245_p0 = pnand %p5244_p13, %p5243_p12 }
  0x17   : > { %p5246_p3 = pneg %p5245_p0 }
  0x19   : > { %p5251_p7 = pnand %p5249_p5, %p5246_p3 }
  0x1b   : > { %5254 = shalt.err (!%p5251_p7)
}
  0x1c   : > { %s5255_s26 = scalar_lea.vmem %s5505_s15, 2048  ;;  %p5263_p2 = scmp.lt.s32.totalorder %s5505_s15, %s5505_s15 }
  0x1d   : > { %p5256_p9 = scmp.ne.s32.totalorder %s5505_s15, %s5255_s26  ;;  %p5264_p12 = scmp.lt.s32.totalorder %s5255_s26, %s5255_s26 }
  0x1f   : > { %p5258_p10 = pnand %p5256_p9, %p5244_p13  ;;  %p5265_p0 = por %p5264_p12, %p5263_p2 }
  0x21   : > { %p5259_p1 = pneg %p5258_p10 }
  0x23   : > { %p5266_p6 = pnand %p5265_p0, %p5259_p1 }
  0x25   : > { %5269 = shalt.err (!%p5266_p6)
}
  0x26   : > { %s7683_s10 = smov 128   ;;  %s7684_s14 = smov 8  }
  0x27   : > { %4742 = dma.hbm_to_vmem [thread:$0]  (!%p5512_p11), %s7674_s1, 2048, %s5505_s15, [#allocation6], %s7683_s10, %s7683_s10, %s7684_s14  }
  0x28   : > { %s5270_s22 = scalar_lea.hbm %s7677_s4, 256 }
  0x29   : > { %p5271_p1 = scmp.ne.s32.totalorder %s7677_s4, %s5270_s22  ;;  %p5277_p10 = scmp.lt.u32.totalorder %s5270_s22, %s7677_s4 }
  0x2b   : > { %p5273_p2 = pnand %p5271_p1, %p5244_p13 }
  0x2d   : > { %p5274_p6 = pneg %p5273_p2 }
  0x2f   : > { %p5279_p3 = pnand %p5277_p10, %p5274_p6 }
  0x31   : > { %5282 = shalt.err (!%p5279_p3)
}
  0x32   : > { %s5283_s15 = scalar_lea.vmem %s5516_s18, 256  ;;  %p5291_p12 = scmp.lt.s32.totalorder %s5516_s18, %s5516_s18 }
  0x33   : > { %p5284_p5 = scmp.ne.s32.totalorder %s5516_s18, %s5283_s15  ;;  %p5292_p0 = scmp.lt.s32.totalorder %s5283_s15, %s5283_s15 }
  0x35   : > { %p5286_p7 = pnand %p5284_p5, %p5244_p13  ;;  %p5293_p1 = por %p5292_p0, %p5291_p12 }
  0x37   : > { %p5287_p9 = pneg %p5286_p7 }
  0x39   : > { %p5294_p2 = pnand %p5293_p1, %p5287_p9 }
  0x3b   : > { %5297 = shalt.err (!%p5294_p2)
}
  0x3c   : > { %s5404_s17 = smov 64   ;;  %s5405_s19 = smov 4  }
  0x3d   : > { %4745 = dma.hbm_to_vmem [thread:$0]  (!%p5512_p11), %s7677_s4, 256, %s5516_s18, [#allocation6], %s5404_s17, %s5404_s17, %s5405_s19  }
  0x3e   : > { %s5574_s22 = sadd.s32 1, %s5398_s30   ;;  %s32_s24 = sadd.s32 1, %s5394_s29 }
  0x3f   : > { %s29_s23 = ssub.s32 %s5398_s30, %s5574_s22  ;;  %p39_p6 = scmp.ne.s32.totalorder %s5394_s29, %s5390_s28 }
  0x40   : > { %p30_p13 = scmp.eq.s32.totalorder %s29_s23, 0  ;;  %p40_p10 = scmp.eq.s32.totalorder %s5398_s30, 0 }
  0x41   : > { %p7709_p5 = scmp.eq.s32.totalorder %s5482_s9, 1  ;;  %p4756_p9 = scmp.lt.s32.totalorder %s5398_s30, 2 }
  0x42   : > { %s5583_s25 = scalar_select %p30_p13, %s5394_s29, %s32_s24  }
  0x43   : > { %p41_p3 = por %p40_p10, %p39_p6  ;;  %p5587_p7 = por %p7709_p5, %p39_p6 }
  0x44   : > { %s283_s16 = sand.u32 1, %s5394_s29   ;;  %s4201_s18 = sshll.u32 %s5398_s30, 12 }
  0x45   : > { %s7710_s26 = scalar_select %p5587_p7, 1, 0 }
  0x46   : > { %s4084_s15 = sshll.u32 %s283_s16, 8  ;;  %s5597_s20 = scalar_lea.hbm %s7673_s0, %s4201_s18 }
  0x47   : > { %s287_s21 = scalar_lea.vmem [#allocation2], %s4084_s15  ;;  %p5601_p11 = pnand %p4756_p9, %p41_p3 }
  0x48   : > { %s294_s23 = sshll.u32 %s287_s21, 4  ;;  %s5605_s10 = scalar_lea.sflag [#allocation3], %s283_s16  ;;  %s5599_s23 = int_to_ptr.vmem [resolvable:$true] %s294_s23 }
  0x49   : > { %s5298_s14 = scalar_lea.hbm %s5597_s20, 4096  ;;  %p5300_p0 = pneg %p5601_p11 }
  0x4a   : > { %p5299_p12 = scmp.ne.s32.totalorder %s5597_s20, %s5298_s14  ;;  %s5303_s17 = scalar_lea.hbm %s7673_s0, 8192 }
  0x4b   : > { %p5304_p13 = scmp.lt.u32.totalorder %s5597_s20, %s7673_s0  ;;  %p5305_p6 = scmp.lt.u32.totalorder %s5303_s17, %s5298_s14 }
  0x4c   : > { %p5301_p1 = pnand %p5300_p0, %p5299_p12  ;;  %p5307_p3 = scmp.lt.u32.totalorder %s5298_s14, %s5597_s20 }
  0x4d   : > { %p5306_p10 = por %p5305_p6, %p5304_p13 }
  0x4e   : > { %p5302_p2 = pneg %p5301_p1 }
  0x4f   : > { %p5308_p5 = por %p5307_p3, %p5306_p10 }
  0x51   : > { %p5309_p9 = pnand %p5308_p5, %p5302_p2 }
  0x53   : > { %5312 = shalt.err (!%p5309_p9)
}
  0x54   : > { %s5313_s16 = scalar_lea.vmem %s5599_s23, 4096  ;;  %s5406_s15 = smov [#allocation2]  }
  0x55   : > { %p5314_p12 = scmp.ne.s32.totalorder %s5599_s23, %s5313_s16  ;;  %s5318_s18 = sshll.u32 %s5406_s15, 4  ;;  %s5319_s18 = int_to_ptr.vmem [resolvable:$false] %s5318_s18 }
  0x56   : > { %s5320_s19 = scalar_lea.vmem %s5319_s18, 8192  ;;  %p5321_p4 = scmp.lt.s32.totalorder %s5599_s23, %s5319_s18 }
  0x57   : > { %p5316_p1 = pnand %p5314_p12, %p5300_p0  ;;  %p5322_p13 = scmp.lt.s32.totalorder %s5320_s19, %s5313_s16 }
  0x59   : > { %p5317_p7 = pneg %p5316_p1  ;;  %p5323_p6 = por %p5322_p13, %p5321_p4 }
  0x5b   : > { %p5324_p10 = pnand %p5323_p6, %p5317_p7 }
  0x5d   : > { %5327 = shalt.err (!%p5324_p10)
}
  0x5e   : > { %s7712_s14 = smov 8   ;;  %s7713_s17 = smov 128  }
  0x5f   : > { %4749 = dma.hbm_to_vmem [thread:$0]  (!%p5601_p11), %s5597_s20, 4096, %s5599_s23, %s5605_s10, %s7713_s17, %s7713_s17, %s7712_s14  }
  0x60   : > { %306 = sbr.rel (%p5501_p8) target bundleno = 2681 (0xa79), region = 52 }
  0x67   : > { %s5639_s21 = sand.u32 1, %s5390_s28   ;;  %p7714_p4 = scmp.ne.s32.totalorder %s7705_s11, 0 }
  0x68   : > { %s4088_s16 = sshll.u32 %s5639_s21, 8  ;;  %s309_s15 = scalar_lea.sflag [#allocation3], %s5639_s21 }
  0x69   : > { %s5645_s24 = scalar_lea.vmem [#allocation2], %s4088_s16 }
  0x6a   : > { %5373 = dma.done.wait (%p7714_p4), %s309_s15, 4096  }
  0x6b   : > { %5375 = vsyncadd (%p7714_p4), %s309_s15, 4294963200  ;;  %p7715_p7 = scmp.eq.s32.totalorder %s5482_s9, 0 }
  0x6d   : > { %5377 = dma.done.wait (%p7715_p7), [#allocation6], 2304   ;;  %p7716_p8 = pmov %p7715_p7 }
  0x6e   : > { %vm386_vm0 = vcmask 261120   ;;  %v5656_v0 = vld [vmem:[%s5645_s24] sm:$0xff]  ;;  %v5659_v1 = vld [vmem:[%s5645_s24 + $0x10] sm:$0xff]  ;;  %v5662_v2 = vld [vmem:[%s5645_s24 + $0x8] sm:$0xff]  ;;  %vm1166_vm1 = vcmask 130048   ;;  %s5407_s19 = smov 96  }
  0x6f   : > { %5379 = vsyncadd (%p7716_p8), [#allocation6], 4294964992  ;;  %v387_v3 = vsel %vm386_vm0, %v5656_v0, 0.0  ;;  %v393_v4 = vsel %vm386_vm0, %v5659_v1, 0.0  ;;  %v5669_v5 = vld [vmem:[%s5645_s24 + $0x18] sm:$0xff]  ;;  %v390_v6 = vsel %vm386_vm0, %v5662_v2, 0.0 }
  0x70   : > { %388 = vadd.xlane.f32.xlu0 %v387_v3  ;;  %394 = vadd.xlane.f32.xlu1 %v393_v4  ;;  %v396_v7 = vsel %vm386_vm0, %v5669_v5, 0.0  ;;  %v5676_v8 = vld [vmem:[%s5645_s24 + $0x20] sm:$0xff]  ;;  %v5679_v9 = vld [vmem:[%s5645_s24 + $0x28] sm:$0xff]  ;;  %v5686_v12 = vld [vmem:[%s5645_s24 + $0x30] sm:$0xff]  ;;  %s5408_s14 = smov 64   ;;  %s5409_s17 = smov 80  }
  0x71   : > { %v399_v10 = vsel %vm386_vm0, %v5676_v8, 0.0  ;;  %v402_v11 = vsel %vm386_vm0, %v5679_v9, 0.0  ;;  %v5689_v13 = vld [vmem:[%s5645_s24 + $0x38] sm:$0xff]  ;;  %v405_v14 = vsel %vm386_vm0, %v5686_v12, 0.0  ;;  %v5694_v15 = vld [vmem:[%s5645_s24 + $0x40] sm:$0xff]  ;;  %v5699_v17 = vld [vmem:[%s5645_s24 + $0x48] sm:$0xff] }
  0x72   : > { %v408_v16 = vsel %vm386_vm0, %v5689_v13, 0.0  ;;  %v411_v18 = vsel %vm386_vm0, %v5694_v15, 0.0  ;;  %v414_v19 = vsel %vm386_vm0, %v5699_v17, 0.0  ;;  %v5706_v20 = vld [vmem:[%s5645_s24 + $0x50] sm:$0xff]  ;;  %v5709_v21 = vld [vmem:[%s5645_s24 + $0x58] sm:$0xff]  ;;  %v5716_v24 = vld [vmem:[%s5645_s24 + $0x60] sm:$0xff] }
  0x73   : > { %v417_v22 = vsel %vm386_vm0, %v5706_v20, 0.0  ;;  %v420_v23 = vsel %vm386_vm0, %v5709_v21, 0.0  ;;  %v5719_v25 = vld [vmem:[%s5645_s24 + $0x68] sm:$0xff]  ;;  %v423_v26 = vsel %vm386_vm0, %v5716_v24, 0.0  ;;  %v5726_v28 = vld [vmem:[%s5645_s24 + $0x70] sm:$0xff]  ;;  %v5729_v29 = vld [vmem:[%s5645_s24 + $0x78] sm:$0xff] }
  0x74   : > { %391 = vadd.xlane.f32.xlu0 %v390_v6  ;;  %397 = vadd.xlane.f32.xlu1 %v396_v7  ;;  %v426_v27 = vsel %vm386_vm0, %v5719_v25, 0.0  ;;  %v429_v30 = vsel %vm386_vm0, %v5726_v28, 0.0  ;;  %v432_v31 = vsel %vm386_vm0, %v5729_v29, 0.0  ;;  %v5736_v32 = vld [vmem:[%s5645_s24 + $0x80] sm:$0xff]  ;;  %v5739_v33 = vld [vmem:[%s5645_s24 + $0x88] sm:$0xff]  ;;  %v5746_v36 = vld [vmem:[%s5645_s24 + $0x90] sm:$0xff] }
  0x75   : > { %v435_v34 = vsel %vm386_vm0, %v5736_v32, 0.0  ;;  %v438_v35 = vsel %vm386_vm0, %v5739_v33, 0.0  ;;  %v5749_v37 = vld [vmem:[%s5645_s24 + $0x98] sm:$0xff]  ;;  %v441_v38 = vsel %vm386_vm0, %v5746_v36, 0.0  ;;  %v5756_v40 = vld [vmem:[%s5645_s24 + $0xa0] sm:$0xff]  ;;  %v5759_v41 = vld [vmem:[%s5645_s24 + $0xa8] sm:$0xff] }
  0x76   : > { %v444_v39 = vsel %vm386_vm0, %v5749_v37, 0.0  ;;  %v447_v42 = vsel %vm386_vm0, %v5756_v40, 0.0  ;;  %v450_v43 = vsel %vm386_vm0, %v5759_v41, 0.0  ;;  %v5766_v44 = vld [vmem:[%s5645_s24 + $0xb0] sm:$0xff]  ;;  %v5769_v45 = vld [vmem:[%s5645_s24 + $0xb8] sm:$0xff]  ;;  %v5776_v48 = vld [vmem:[%s5645_s24 + $0xc0] sm:$0xff] }
  0x77   : > { %v453_v46 = vsel %vm386_vm0, %v5766_v44, 0.0  ;;  %v456_v47 = vsel %vm386_vm0, %v5769_v45, 0.0  ;;  %v5779_v49 = vld [vmem:[%s5645_s24 + $0xc8] sm:$0xff]  ;;  %v459_v50 = vsel %vm386_vm0, %v5776_v48, 0.0  ;;  %v5786_v52 = vld [vmem:[%s5645_s24 + $0xd0] sm:$0xff]  ;;  %v5789_v53 = vld [vmem:[%s5645_s24 + $0xd8] sm:$0xff] }
  0x78   : > { %400 = vadd.xlane.f32.xlu0 %v399_v10  ;;  %403 = vadd.xlane.f32.xlu1 %v402_v11  ;;  %v462_v51 = vsel %vm386_vm0, %v5779_v49, 0.0  ;;  %v465_v54 = vsel %vm386_vm0, %v5786_v52, 0.0  ;;  %v468_v55 = vsel %vm386_vm0, %v5789_v53, 0.0  ;;  %v5796_v56 = vld [vmem:[%s5645_s24 + $0xe0] sm:$0xff]  ;;  %v5799_v57 = vld [vmem:[%s5645_s24 + $0xe8] sm:$0xff]  ;;  %v5806_v60 = vld [vmem:[%s5645_s24 + $0xf0] sm:$0xff] }
  0x79   : > { %v471_v58 = vsel %vm386_vm0, %v5796_v56, 0.0  ;;  %v474_v59 = vsel %vm386_vm0, %v5799_v57, 0.0  ;;  %v5809_v61 = vld [vmem:[%s5645_s24 + $0xf8] sm:$0xff]  ;;  %v477_v62 = vsel %vm386_vm0, %v5806_v60, 0.0  ;;  %s5410_s15 = smov 112   ;;  %vm1559_vm2 = vcmask 523264  }
  0x7a   : > { %v480_v63 = vsel %vm386_vm0, %v5809_v61, 0.0  ;;  %s5411_s11 = smov 48   ;;  %s5412_s18 = smov 16  }
  0x7b   : > { %s3974_s10 = scalar_lea.sflag [#allocation4], %s5639_s21  ;;  %p7797_p0 = scmp.ne.s32.totalorder %s7710_s26, 0 }
  0x7c   : > { %406 = vadd.xlane.f32.xlu0 %v405_v14  ;;  %409 = vadd.xlane.f32.xlu1 %v408_v16  ;;  %s5413_s23 = smov [#allocation8]  }
  0x80   : > { %412 = vadd.xlane.f32.xlu0 %v411_v18  ;;  %415 = vadd.xlane.f32.xlu1 %v414_v19 }
  0x84   : > { %418 = vadd.xlane.f32.xlu0 %v417_v22  ;;  %421 = vadd.xlane.f32.xlu1 %v420_v23 }
  0x88   : > { %424 = vadd.xlane.f32.xlu0 %v423_v26  ;;  %427 = vadd.xlane.f32.xlu1 %v426_v27 }
  0x8c   : > { %430 = vadd.xlane.f32.xlu0 %v429_v30  ;;  %433 = vadd.xlane.f32.xlu1 %v432_v31 }
  0x90   : > { %436 = vadd.xlane.f32.xlu0 %v435_v34  ;;  %439 = vadd.xlane.f32.xlu1 %v438_v35 }
  0x94   : > { %442 = vadd.xlane.f32.xlu0 %v441_v38  ;;  %445 = vadd.xlane.f32.xlu1 %v444_v39 }
  0x98   : > { %448 = vadd.xlane.f32.xlu0 %v447_v42  ;;  %451 = vadd.xlane.f32.xlu1 %v450_v43 }
  0x9c   : > { %454 = vadd.xlane.f32.xlu0 %v453_v46  ;;  %457 = vadd.xlane.f32.xlu1 %v456_v47 }
  0xa0   : > { %460 = vadd.xlane.f32.xlu0 %v459_v50  ;;  %463 = vadd.xlane.f32.xlu1 %v462_v51 }
  0xa4   : > { %466 = vadd.xlane.f32.xlu0 %v465_v54  ;;  %469 = vadd.xlane.f32.xlu1 %v468_v55 }
  0xa8   : > { %472 = vadd.xlane.f32.xlu0 %v471_v58  ;;  %475 = vadd.xlane.f32.xlu1 %v474_v59 }
  0xac   : > { %478 = vadd.xlane.f32.xlu0 %v477_v62  ;;  %481 = vadd.xlane.f32.xlu1 %v480_v63 }
  0xfd   : > { %v389_v3 = vpop.xlane.xlu0 %388  ;;  %v395_v4 = vpop.xlane.xlu1 %394 }
  0xfe   : > { %v484_v6 = vmul.f32 0.03125, %v389_v3  ;;  %v486_v7 = vmul.f32 0.03125, %v395_v4 }
 0x100   : > { %v5816_v10 = vsub.f32 %v5656_v0, %v484_v6  ;;  %v5819_v11 = vsub.f32 %v5659_v1, %v486_v7 }
 0x101   : > { %v392_v14 = vpop.xlane.xlu0 %391  ;;  %v398_v16 = vpop.xlane.xlu1 %397 }
 0x102   : > { %v485_v18 = vmul.f32 0.03125, %v392_v14  ;;  %v487_v19 = vmul.f32 0.03125, %v398_v16  ;;  %v548_v22 = vmul.f32 %v5816_v10, %v5816_v10  ;;  %v550_v23 = vmul.f32 %v5819_v11, %v5819_v11 }
 0x104   : > { %v5826_v26 = vsub.f32 %v5662_v2, %v485_v18  ;;  %v5829_v27 = vsub.f32 %v5669_v5, %v487_v19  ;;  %v580_v0 = vsel %vm386_vm0, %v548_v22, 0.0  ;;  %v586_v31 = vsel %vm386_vm0, %v550_v23, 0.0 }
 0x105   : > { %581 = vadd.xlane.f32.xlu0 %v580_v0  ;;  %v401_v1 = vpop.xlane.xlu0 %400  ;;  %v404_v30 = vpop.xlane.xlu1 %403 }
 0x106   : > { %v488_v34 = vmul.f32 0.03125, %v401_v1  ;;  %v489_v35 = vmul.f32 0.03125, %v404_v30  ;;  %v549_v38 = vmul.f32 %v5826_v26, %v5826_v26  ;;  %v551_v39 = vmul.f32 %v5829_v27, %v5829_v27 }
 0x108   : > { %v5838_v2 = vsub.f32 %v5676_v8, %v488_v34  ;;  %v5841_v5 = vsub.f32 %v5679_v9, %v489_v35  ;;  %v583_v42 = vsel %vm386_vm0, %v549_v38, 0.0  ;;  %v589_v47 = vsel %vm386_vm0, %v551_v39, 0.0 }
 0x109   : > { %587 = vadd.xlane.f32.xlu0 %v586_v31  ;;  %584 = vadd.xlane.f32.xlu1 %v583_v42  ;;  %v407_v43 = vpop.xlane.xlu0 %406  ;;  %v410_v46 = vpop.xlane.xlu1 %409 }
 0x10a   : > { %v490_v50 = vmul.f32 0.03125, %v407_v43  ;;  %v491_v51 = vmul.f32 0.03125, %v410_v46  ;;  %v552_v54 = vmul.f32 %v5838_v2, %v5838_v2  ;;  %v553_v8 = vmul.f32 %v5841_v5, %v5841_v5 }
 0x10c   : > { %v5850_v55 = vsub.f32 %v5686_v12, %v490_v50  ;;  %v5853_v9 = vsub.f32 %v5689_v13, %v491_v51  ;;  %v592_v58 = vsel %vm386_vm0, %v552_v54, 0.0  ;;  %v595_v63 = vsel %vm386_vm0, %v553_v8, 0.0 }
 0x10d   : > { %590 = vadd.xlane.f32.xlu1 %v589_v47  ;;  %593 = vadd.xlane.f32.xlu0 %v592_v58  ;;  %v413_v59 = vpop.xlane.xlu0 %412  ;;  %v416_v62 = vpop.xlane.xlu1 %415 }
 0x10e   : > { %v492_v3 = vmul.f32 0.03125, %v413_v59  ;;  %v493_v4 = vmul.f32 0.03125, %v416_v62  ;;  %v554_v6 = vmul.f32 %v5850_v55, %v5850_v55  ;;  %v555_v12 = vmul.f32 %v5853_v9, %v5853_v9 }
 0x110   : > { %v5862_v7 = vsub.f32 %v5694_v15, %v492_v3  ;;  %v5865_v13 = vsub.f32 %v5699_v17, %v493_v4  ;;  %v598_v14 = vsel %vm386_vm0, %v554_v6, 0.0  ;;  %v601_v19 = vsel %vm386_vm0, %v555_v12, 0.0 }
 0x111   : > { %596 = vadd.xlane.f32.xlu1 %v595_v63  ;;  %599 = vadd.xlane.f32.xlu0 %v598_v14  ;;  %v419_v16 = vpop.xlane.xlu0 %418  ;;  %v422_v18 = vpop.xlane.xlu1 %421 }
 0x112   : > { %v494_v22 = vmul.f32 0.03125, %v419_v16  ;;  %v495_v23 = vmul.f32 0.03125, %v422_v18  ;;  %v556_v0 = vmul.f32 %v5862_v7, %v5862_v7  ;;  %v557_v15 = vmul.f32 %v5865_v13, %v5865_v13 }
 0x114   : > { %v5874_v1 = vsub.f32 %v5706_v20, %v494_v22  ;;  %v5877_v17 = vsub.f32 %v5709_v21, %v495_v23  ;;  %v604_v30 = vsel %vm386_vm0, %v556_v0, 0.0  ;;  %v607_v35 = vsel %vm386_vm0, %v557_v15, 0.0 }
 0x115   : > { %602 = vadd.xlane.f32.xlu1 %v601_v19  ;;  %605 = vadd.xlane.f32.xlu0 %v604_v30  ;;  %v425_v31 = vpop.xlane.xlu0 %424  ;;  %v428_v34 = vpop.xlane.xlu1 %427 }
 0x116   : > { %v496_v38 = vmul.f32 0.03125, %v425_v31  ;;  %v497_v39 = vmul.f32 0.03125, %v428_v34  ;;  %v558_v42 = vmul.f32 %v5874_v1, %v5874_v1  ;;  %v559_v20 = vmul.f32 %v5877_v17, %v5877_v17 }
 0x118   : > { %v5886_v43 = vsub.f32 %v5716_v24, %v496_v38  ;;  %v5889_v21 = vsub.f32 %v5719_v25, %v497_v39  ;;  %v610_v46 = vsel %vm386_vm0, %v558_v42, 0.0  ;;  %v613_v51 = vsel %vm386_vm0, %v559_v20, 0.0 }
 0x119   : > { %608 = vadd.xlane.f32.xlu1 %v607_v35  ;;  %611 = vadd.xlane.f32.xlu0 %v610_v46  ;;  %v431_v47 = vpop.xlane.xlu0 %430  ;;  %v434_v50 = vpop.xlane.xlu1 %433 }
 0x11a   : > { %v498_v54 = vmul.f32 0.03125, %v431_v47  ;;  %v499_v8 = vmul.f32 0.03125, %v434_v50  ;;  %v560_v58 = vmul.f32 %v5886_v43, %v5886_v43  ;;  %v561_v24 = vmul.f32 %v5889_v21, %v5889_v21 }
 0x11c   : > { %v5898_v59 = vsub.f32 %v5726_v28, %v498_v54  ;;  %v5901_v25 = vsub.f32 %v5729_v29, %v499_v8  ;;  %v616_v62 = vsel %vm386_vm0, %v560_v58, 0.0  ;;  %v619_v4 = vsel %vm386_vm0, %v561_v24, 0.0  ;;  %v4886_v58 = vld [vmem:[#allocation7] sm:$0xff]  }
 0x11d   : > { %614 = vadd.xlane.f32.xlu1 %v613_v51  ;;  %617 = vadd.xlane.f32.xlu0 %v616_v62  ;;  %v437_v63 = vpop.xlane.xlu0 %436  ;;  %v440_v3 = vpop.xlane.xlu1 %439 }
 0x11e   : > { %v500_v6 = vmul.f32 0.03125, %v437_v63  ;;  %v501_v12 = vmul.f32 0.03125, %v440_v3  ;;  %v562_v14 = vmul.f32 %v5898_v59, %v5898_v59  ;;  %v563_v28 = vmul.f32 %v5901_v25, %v5901_v25  ;;  %4367 = vmatprep.subr.bf16.mxu0 %v4886_v58 }
 0x11f   : > { %4368 = vmatpush3.bf16.msra.mxu0 %v4886_v58 }
 0x120   : > { %v5910_v16 = vsub.f32 %v5736_v32, %v500_v6  ;;  %v5913_v29 = vsub.f32 %v5739_v33, %v501_v12  ;;  %v622_v18 = vsel %vm386_vm0, %v562_v14, 0.0  ;;  %v625_v23 = vsel %vm386_vm0, %v563_v28, 0.0  ;;  %v4887_v28 = vld [vmem:[#allocation7 + $0x8] sm:$0xff]  }
 0x121   : > { %620 = vadd.xlane.f32.xlu1 %v619_v4  ;;  %623 = vadd.xlane.f32.xlu0 %v622_v18  ;;  %v443_v19 = vpop.xlane.xlu0 %442  ;;  %v446_v22 = vpop.xlane.xlu1 %445 }
 0x122   : > { %v502_v0 = vmul.f32 0.03125, %v443_v19  ;;  %v503_v15 = vmul.f32 0.03125, %v446_v22  ;;  %v564_v30 = vmul.f32 %v5910_v16, %v5910_v16  ;;  %v565_v32 = vmul.f32 %v5913_v29, %v5913_v29  ;;  %4369 = vmatprep.subr.bf16.mxu0 %v4887_v28 }
 0x123   : > { %4370 = vmatpush3.bf16.msra.mxu0 %v4887_v28 }
 0x124   : > { %v5922_v31 = vsub.f32 %v5746_v36, %v502_v0  ;;  %v5925_v33 = vsub.f32 %v5749_v37, %v503_v15  ;;  %v628_v34 = vsel %vm386_vm0, %v564_v30, 0.0  ;;  %v631_v39 = vsel %vm386_vm0, %v565_v32, 0.0 }
 0x125   : > { %626 = vadd.xlane.f32.xlu1 %v625_v23  ;;  %629 = vadd.xlane.f32.xlu0 %v628_v34  ;;  %v449_v35 = vpop.xlane.xlu0 %448  ;;  %v452_v38 = vpop.xlane.xlu1 %451 }
 0x126   : > { %v504_v42 = vmul.f32 0.03125, %v449_v35  ;;  %v505_v20 = vmul.f32 0.03125, %v452_v38  ;;  %v566_v46 = vmul.f32 %v5922_v31, %v5922_v31  ;;  %v567_v36 = vmul.f32 %v5925_v33, %v5925_v33 }
 0x128   : > { %v5934_v47 = vsub.f32 %v5756_v40, %v504_v42  ;;  %v5937_v37 = vsub.f32 %v5759_v41, %v505_v20  ;;  %v634_v50 = vsel %vm386_vm0, %v566_v46, 0.0  ;;  %v637_v8 = vsel %vm386_vm0, %v567_v36, 0.0 }
 0x129   : > { %632 = vadd.xlane.f32.xlu1 %v631_v39  ;;  %635 = vadd.xlane.f32.xlu0 %v634_v50  ;;  %v455_v51 = vpop.xlane.xlu0 %454  ;;  %v458_v54 = vpop.xlane.xlu1 %457 }
 0x12a   : > { %v506_v24 = vmul.f32 0.03125, %v455_v51  ;;  %v507_v62 = vmul.f32 0.03125, %v458_v54  ;;  %v568_v63 = vmul.f32 %v5934_v47, %v5934_v47  ;;  %v569_v40 = vmul.f32 %v5937_v37, %v5937_v37 }
 0x12c   : > { %v5946_v41 = vsub.f32 %v5766_v44, %v506_v24  ;;  %v5949_v3 = vsub.f32 %v5769_v45, %v507_v62  ;;  %v640_v4 = vsel %vm386_vm0, %v568_v63, 0.0  ;;  %v643_v14 = vsel %vm386_vm0, %v569_v40, 0.0 }
 0x12d   : > { %638 = vadd.xlane.f32.xlu1 %v637_v8  ;;  %641 = vadd.xlane.f32.xlu0 %v640_v4  ;;  %v461_v6 = vpop.xlane.xlu0 %460  ;;  %v464_v12 = vpop.xlane.xlu1 %463 }
 0x12e   : > { %v508_v18 = vmul.f32 0.03125, %v461_v6  ;;  %v509_v19 = vmul.f32 0.03125, %v464_v12  ;;  %v570_v22 = vmul.f32 %v5946_v41, %v5946_v41  ;;  %v571_v44 = vmul.f32 %v5949_v3, %v5949_v3 }
 0x130   : > { %v5958_v45 = vsub.f32 %v5776_v48, %v508_v18  ;;  %v5961_v23 = vsub.f32 %v5779_v49, %v509_v19  ;;  %v646_v0 = vsel %vm386_vm0, %v570_v22, 0.0  ;;  %v649_v32 = vsel %vm386_vm0, %v571_v44, 0.0 }
 0x131   : > { %644 = vadd.xlane.f32.xlu1 %v643_v14  ;;  %647 = vadd.xlane.f32.xlu0 %v646_v0  ;;  %v467_v15 = vpop.xlane.xlu0 %466  ;;  %v470_v30 = vpop.xlane.xlu1 %469 }
 0x132   : > { %v510_v34 = vmul.f32 0.03125, %v467_v15  ;;  %v511_v35 = vmul.f32 0.03125, %v470_v30  ;;  %v572_v38 = vmul.f32 %v5958_v45, %v5958_v45  ;;  %v573_v48 = vmul.f32 %v5961_v23, %v5961_v23 }
 0x134   : > { %v5970_v49 = vsub.f32 %v5786_v52, %v510_v34  ;;  %v5973_v39 = vsub.f32 %v5789_v53, %v511_v35  ;;  %v652_v42 = vsel %vm386_vm0, %v572_v38, 0.0  ;;  %v655_v36 = vsel %vm386_vm0, %v573_v48, 0.0 }
 0x135   : > { %650 = vadd.xlane.f32.xlu1 %v649_v32  ;;  %653 = vadd.xlane.f32.xlu0 %v652_v42  ;;  %v473_v20 = vpop.xlane.xlu0 %472  ;;  %v476_v46 = vpop.xlane.xlu1 %475 }
 0x136   : > { %v512_v50 = vmul.f32 0.03125, %v473_v20  ;;  %v513_v51 = vmul.f32 0.03125, %v476_v46  ;;  %v574_v54 = vmul.f32 %v5970_v49, %v5970_v49  ;;  %v575_v52 = vmul.f32 %v5973_v39, %v5973_v39 }
 0x138   : > { %v5982_v8 = vsub.f32 %v5796_v56, %v512_v50  ;;  %v5985_v53 = vsub.f32 %v5799_v57, %v513_v51  ;;  %v658_v58 = vsel %vm386_vm0, %v574_v54, 0.0  ;;  %v661_v63 = vsel %vm386_vm0, %v575_v52, 0.0 }
 0x139   : > { %656 = vadd.xlane.f32.xlu1 %v655_v36  ;;  %659 = vadd.xlane.f32.xlu0 %v658_v58  ;;  %v479_v24 = vpop.xlane.xlu0 %478  ;;  %v482_v62 = vpop.xlane.xlu1 %481 }
 0x13a   : > { %v514_v40 = vmul.f32 0.03125, %v479_v24  ;;  %v515_v4 = vmul.f32 0.03125, %v482_v62  ;;  %v576_v6 = vmul.f32 %v5982_v8, %v5982_v8  ;;  %v577_v56 = vmul.f32 %v5985_v53, %v5985_v53 }
 0x13c   : > { %v5994_v12 = vsub.f32 %v5806_v60, %v514_v40  ;;  %v5997_v57 = vsub.f32 %v5809_v61, %v515_v4  ;;  %v664_v14 = vsel %vm386_vm0, %v576_v6, 0.0  ;;  %v667_v28 = vsel %vm386_vm0, %v577_v56, 0.0 }
 0x13d   : > { %662 = vadd.xlane.f32.xlu1 %v661_v63  ;;  %665 = vadd.xlane.f32.xlu0 %v664_v14 }
 0x13e   : > { %v578_v18 = vmul.f32 %v5994_v12, %v5994_v12  ;;  %v579_v19 = vmul.f32 %v5997_v57, %v5997_v57 }
 0x140   : > { %v670_v22 = vsel %vm386_vm0, %v578_v18, 0.0  ;;  %v673_v60 = vsel %vm386_vm0, %v579_v19, 0.0 }
 0x141   : > { %668 = vadd.xlane.f32.xlu1 %v667_v28  ;;  %671 = vadd.xlane.f32.xlu0 %v670_v22  ;;  %v6011_v28 = vld [vmem:[%s7675_s2] ss:$0 sm:$0xff] }
 0x145   : > { %674 = vadd.xlane.f32.xlu1 %v673_v60 }
 0x192   : > { %v582_v61 = vpop.xlane.xlu0 %581 }
 0x193   : > { %v676_v44 = vmul.f32 0.03125, %v582_v61 }
 0x195   : > { %v708_v0 = vadd.f32 1e-05, %v676_v44 }
 0x196   : > { %v585_v15 = vpop.xlane.xlu1 %584  ;;  %v588_v30 = vpop.xlane.xlu0 %587 }
 0x197   : > { %4890 = vrsqrt.f32 %v708_v0  ;;  %v677_v32 = vmul.f32 0.03125, %v585_v15  ;;  %v678_v34 = vmul.f32 0.03125, %v588_v30 }
 0x199   : > { %v709_v35 = vadd.f32 1e-05, %v677_v32  ;;  %v710_v38 = vadd.f32 1e-05, %v678_v34  ;;  %v6018_v32 = vld [vmem:[%s7676_s3] ss:$0 sm:$0xff] }
 0x19a   : > { %v591_v48 = vpop.xlane.xlu1 %590  ;;  %v594_v42 = vpop.xlane.xlu0 %593 }
 0x19b   : > { %4892 = vrsqrt.f32 %v709_v35  ;;  %v679_v20 = vmul.f32 0.03125, %v591_v48  ;;  %v680_v46 = vmul.f32 0.03125, %v594_v42 }
 0x19c   : > { %4894 = vrsqrt.f32 %v710_v38 }
 0x19d   : > { %v711_v36 = vadd.f32 1e-05, %v679_v20  ;;  %v712_v50 = vadd.f32 1e-05, %v680_v46 }
 0x19e   : > { %v597_v51 = vpop.xlane.xlu1 %596  ;;  %v600_v54 = vpop.xlane.xlu0 %599 }
 0x19f   : > { %4896 = vrsqrt.f32 %v711_v36  ;;  %v681_v52 = vmul.f32 0.03125, %v597_v51  ;;  %v682_v58 = vmul.f32 0.03125, %v600_v54 }
 0x1a0   : > { %4898 = vrsqrt.f32 %v712_v50 }
 0x1a1   : > { %v4891_v24 = vpop.eup %4890  ;;  %v713_v62 = vadd.f32 1e-05, %v681_v52  ;;  %v714_v63 = vadd.f32 1e-05, %v682_v58 }
 0x1a2   : > { %v603_v40 = vpop.xlane.xlu1 %602  ;;  %v606_v4 = vpop.xlane.xlu0 %605  ;;  %v772_v6 = vmul.f32 %v4891_v24, %v5816_v10 }
 0x1a3   : > { %4900 = vrsqrt.f32 %v713_v62  ;;  %v683_v56 = vmul.f32 0.03125, %v603_v40  ;;  %v684_v14 = vmul.f32 0.03125, %v606_v4 }
 0x1a4   : > { %4902 = vrsqrt.f32 %v714_v63  ;;  %v811_v15 = vmul.f32 %v6011_v28, %v772_v6 }
 0x1a5   : > { %v4893_v18 = vpop.eup %4892  ;;  %v715_v19 = vadd.f32 1e-05, %v683_v56  ;;  %v716_v22 = vadd.f32 1e-05, %v684_v14 }
 0x1a6   : > { %v4895_v60 = vpop.eup %4894  ;;  %v609_v61 = vpop.xlane.xlu1 %608  ;;  %v773_v0 = vmul.f32 %v4893_v18, %v5826_v26  ;;  %v850_v36 = vadd.f32 %v6018_v32, %v811_v15 }
 0x1a7   : > { %v612_v44 = vpop.xlane.xlu0 %611  ;;  %4904 = vrsqrt.f32 %v715_v19  ;;  %v685_v10 = vmul.f32 0.03125, %v609_v61  ;;  %v774_v34 = vmul.f32 %v4895_v60, %v5819_v11 }
 0x1a8   : > { %v686_v30 = vmul.f32 0.03125, %v612_v44  ;;  %4906 = vrsqrt.f32 %v716_v22  ;;  %v812_v35 = vmul.f32 %v6011_v28, %v773_v0 }
 0x1a9   : > { %v4897_v38 = vpop.eup %4896  ;;  %v717_v48 = vadd.f32 1e-05, %v685_v10  ;;  %v813_v54 = vmul.f32 %v6011_v28, %v774_v34 }
 0x1aa   : > { %v718_v42 = vadd.f32 1e-05, %v686_v30  ;;  %v4899_v20 = vpop.eup %4898  ;;  %v615_v26 = vpop.xlane.xlu1 %614  ;;  %v851_v50 = vadd.f32 %v6018_v32, %v812_v35  ;;  %v775_v51 = vmul.f32 %v4897_v38, %v5829_v27 }
 0x1ab   : > { %v618_v46 = vpop.xlane.xlu0 %617  ;;  %4908 = vrsqrt.f32 %v717_v48  ;;  %v687_v52 = vmul.f32 0.03125, %v615_v26  ;;  %v776_v62 = vmul.f32 %v4899_v20, %v5838_v2  ;;  %v852_v27 = vadd.f32 %v6018_v32, %v813_v54 }
 0x1ac   : > { %v688_v11 = vmul.f32 0.03125, %v618_v46  ;;  %4910 = vrsqrt.f32 %v718_v42  ;;  %v882_v58 = vpack.c.bf16 %v851_v50, %v850_v36  ;;  %v814_v24 = vmul.f32 %v6011_v28, %v775_v51 }
 0x1ad   : > { %v4901_v63 = vpop.eup %4900  ;;  %v719_v40 = vadd.f32 1e-05, %v687_v52  ;;  %v815_v22 = vmul.f32 %v6011_v28, %v776_v62 }
 0x1ae   : > { %v720_v4 = vadd.f32 1e-05, %v688_v11  ;;  %v4903_v6 = vpop.eup %4902  ;;  %v621_v56 = vpop.xlane.xlu1 %620  ;;  %4371 = vmatprep.mubr.msk.bf16.mxu0 %vm386_vm0, %v882_v58  ;;  %v853_v18 = vadd.f32 %v6018_v32, %v814_v24  ;;  %v777_v19 = vmul.f32 %v4901_v63, %v5841_v5 }
 0x1af   : > { %v624_v14 = vpop.xlane.xlu0 %623  ;;  %4912 = vrsqrt.f32 %v719_v40  ;;  %v689_v60 = vmul.f32 0.03125, %v621_v56  ;;  %v778_v2 = vmul.f32 %v4903_v6, %v5850_v55  ;;  %v854_v5 = vadd.f32 %v6018_v32, %v815_v22 }
 0x1b0   : > { %v690_v61 = vmul.f32 0.03125, %v624_v14  ;;  %4914 = vrsqrt.f32 %v720_v4  ;;  %v883_v44 = vpack.c.bf16 %v853_v18, %v852_v27  ;;  %v816_v0 = vmul.f32 %v6011_v28, %v777_v19 }
 0x1b1   : > { %v4905_v15 = vpop.eup %4904  ;;  %v721_v10 = vadd.f32 1e-05, %v689_v60  ;;  %v817_v55 = vmul.f32 %v6011_v28, %v778_v2 }
 0x1b2   : > { %v722_v30 = vadd.f32 1e-05, %v690_v61  ;;  %v4907_v34 = vpop.eup %4906  ;;  %v627_v35 = vpop.xlane.xlu1 %626  ;;  %4372 = vmatmul.mubr.msk.bf16.vlgmr.msra.gmra.mrb[0].mxu0 %vm386_vm0, %v883_v44  ;;  %v855_v48 = vadd.f32 %v6018_v32, %v816_v0  ;;  %v779_v42 = vmul.f32 %v4905_v15, %v5853_v9 }
 0x1b3   : > { %v630_v38 = vpop.xlane.xlu0 %629  ;;  %4916 = vrsqrt.f32 %v721_v10  ;;  %v691_v20 = vmul.f32 0.03125, %v627_v35  ;;  %v780_v50 = vmul.f32 %v4907_v34, %v5862_v7  ;;  %v856_v9 = vadd.f32 %v6018_v32, %v817_v55 }
 0x1b4   : > { %v692_v26 = vmul.f32 0.03125, %v630_v38  ;;  %4918 = vrsqrt.f32 %v722_v30  ;;  %v884_v46 = vpack.c.bf16 %v855_v48, %v854_v5  ;;  %v818_v36 = vmul.f32 %v6011_v28, %v779_v42 }
 0x1b5   : > { %v4909_v51 = vpop.eup %4908  ;;  %v723_v54 = vadd.f32 1e-05, %v691_v20  ;;  %v819_v40 = vmul.f32 %v6011_v28, %v780_v50 }
 0x1b6   : > { %v724_v52 = vadd.f32 1e-05, %v692_v26  ;;  %v4911_v11 = vpop.eup %4910  ;;  %v633_v58 = vpop.xlane.xlu1 %632  ;;  %4375 = vmatprep.mubr.msk.bf16.mxu0 %vm386_vm0, %v884_v46  ;;  %v857_v62 = vadd.f32 %v6018_v32, %v818_v36  ;;  %v781_v63 = vmul.f32 %v4909_v51, %v5865_v13 }
 0x1b7   : > { %v636_v24 = vpop.xlane.xlu0 %635  ;;  %4920 = vrsqrt.f32 %v723_v54  ;;  %v693_v4 = vmul.f32 0.03125, %v633_v58  ;;  %v782_v7 = vmul.f32 %v4911_v11, %v5874_v1  ;;  %v858_v13 = vadd.f32 %v6018_v32, %v819_v40 }
 0x1b8   : > { %v694_v6 = vmul.f32 0.03125, %v636_v24  ;;  %4922 = vrsqrt.f32 %v724_v52  ;;  %v885_v56 = vpack.c.bf16 %v857_v62, %v856_v9  ;;  %v820_v14 = vmul.f32 %v6011_v28, %v781_v63 }
 0x1b9   : > { %v4913_v27 = vpop.eup %4912  ;;  %v725_v18 = vadd.f32 1e-05, %v693_v4  ;;  %v821_v1 = vmul.f32 %v6011_v28, %v782_v7 }
 0x1ba   : > { %v726_v19 = vadd.f32 1e-05, %v694_v6  ;;  %v4915_v22 = vpop.eup %4914  ;;  %v639_v60 = vpop.xlane.xlu1 %638  ;;  %4376 = vmatmul.mubr.msk.bf16.gmra.mrb[4].mxu0 %vm386_vm0, %v885_v56  ;;  %v859_v2 = vadd.f32 %v6018_v32, %v820_v14  ;;  %v783_v44 = vmul.f32 %v4913_v27, %v5877_v17 }
 0x1bb   : > { %v642_v61 = vpop.xlane.xlu0 %641  ;;  %4924 = vrsqrt.f32 %v725_v18  ;;  %v695_v0 = vmul.f32 0.03125, %v639_v60  ;;  %v784_v34 = vmul.f32 %v4915_v22, %v5886_v43  ;;  %v860_v17 = vadd.f32 %v6018_v32, %v821_v1 }
 0x1bc   : > { %v696_v15 = vmul.f32 0.03125, %v642_v61  ;;  %4926 = vrsqrt.f32 %v726_v19  ;;  %v886_v10 = vpack.c.bf16 %v859_v2, %v858_v13  ;;  %v822_v30 = vmul.f32 %v6011_v28, %v783_v44 }
 0x1bd   : > { %v4917_v35 = vpop.eup %4916  ;;  %v727_v38 = vadd.f32 1e-05, %v695_v0  ;;  %v823_v46 = vmul.f32 %v6011_v28, %v784_v34 }
 0x1be   : > { %v728_v5 = vadd.f32 1e-05, %v696_v15  ;;  %v4919_v48 = vpop.eup %4918  ;;  %v645_v42 = vpop.xlane.xlu1 %644  ;;  %4379 = vmatprep.mubr.msk.bf16.mxu0 %vm386_vm0, %v886_v10  ;;  %v861_v20 = vadd.f32 %v6018_v32, %v822_v30  ;;  %v785_v26 = vmul.f32 %v4917_v35, %v5889_v21 }
 0x1bf   : > { %v648_v55 = vpop.xlane.xlu0 %647  ;;  %4928 = vrsqrt.f32 %v727_v38  ;;  %v697_v36 = vmul.f32 0.03125, %v645_v42  ;;  %v786_v43 = vmul.f32 %v4919_v48, %v5898_v59  ;;  %v862_v21 = vadd.f32 %v6018_v32, %v823_v46 }
 0x1c0   : > { %v698_v50 = vmul.f32 0.03125, %v648_v55  ;;  %4930 = vrsqrt.f32 %v728_v5  ;;  %v887_v51 = vpack.c.bf16 %v861_v20, %v860_v17  ;;  %v824_v54 = vmul.f32 %v6011_v28, %v785_v26 }
 0x1c1   : > { %v4921_v52 = vpop.eup %4920  ;;  %v729_v11 = vadd.f32 1e-05, %v697_v36  ;;  %v825_v59 = vmul.f32 %v6011_v28, %v786_v43 }
 0x1c2   : > { %v730_v58 = vadd.f32 1e-05, %v698_v50  ;;  %v4923_v24 = vpop.eup %4922  ;;  %v651_v9 = vpop.xlane.xlu1 %650  ;;  %4380 = vmatmul.mubr.msk.bf16.gmra.mrb[8].mxu0 %vm386_vm0, %v887_v51  ;;  %v863_v63 = vadd.f32 %v6018_v32, %v824_v54  ;;  %v787_v40 = vmul.f32 %v4921_v52, %v5901_v25 }
 0x1c3   : > { %v654_v62 = vpop.xlane.xlu0 %653  ;;  %4932 = vrsqrt.f32 %v729_v11  ;;  %v699_v4 = vmul.f32 0.03125, %v651_v9  ;;  %v788_v14 = vmul.f32 %v4923_v24, %v5910_v16  ;;  %v864_v25 = vadd.f32 %v6018_v32, %v825_v59 }
 0x1c4   : > { %v700_v6 = vmul.f32 0.03125, %v654_v62  ;;  %4934 = vrsqrt.f32 %v730_v58  ;;  %v888_v7 = vpack.c.bf16 %v863_v63, %v862_v21  ;;  %v826_v56 = vmul.f32 %v6011_v28, %v787_v40 }
 0x1c5   : > { %v4925_v27 = vpop.eup %4924  ;;  %v731_v18 = vadd.f32 1e-05, %v699_v4  ;;  %v827_v44 = vmul.f32 %v6011_v28, %v788_v14 }
 0x1c6   : > { %v732_v19 = vadd.f32 1e-05, %v700_v6  ;;  %v4927_v22 = vpop.eup %4926  ;;  %v657_v60 = vpop.xlane.xlu1 %656  ;;  %4383 = vmatprep.mubr.msk.bf16.mxu0 %vm386_vm0, %v888_v7  ;;  %v865_v13 = vadd.f32 %v6018_v32, %v826_v56  ;;  %v789_v2 = vmul.f32 %v4925_v27, %v5913_v29 }
 0x1c7   : > { %v660_v61 = vpop.xlane.xlu0 %659  ;;  %4936 = vrsqrt.f32 %v731_v18  ;;  %v701_v1 = vmul.f32 0.03125, %v657_v60  ;;  %v790_v16 = vmul.f32 %v4927_v22, %v5922_v31  ;;  %v866_v29 = vadd.f32 %v6018_v32, %v827_v44 }
 0x1c8   : > { %v702_v0 = vmul.f32 0.03125, %v660_v61  ;;  %4938 = vrsqrt.f32 %v732_v19  ;;  %v889_v15 = vpack.c.bf16 %v865_v13, %v864_v25  ;;  %v828_v10 = vmul.f32 %v6011_v28, %v789_v2 }
 0x1c9   : > { %v4929_v30 = vpop.eup %4928  ;;  %v733_v34 = vadd.f32 1e-05, %v701_v1  ;;  %v829_v31 = vmul.f32 %v6011_v28, %v790_v16 }
 0x1ca   : > { %v734_v35 = vadd.f32 1e-05, %v702_v0  ;;  %v4931_v38 = vpop.eup %4930  ;;  %v663_v5 = vpop.xlane.xlu1 %662  ;;  %4384 = vmatmul.mubr.msk.bf16.gmra.mrb[12].mxu0 %vm386_vm0, %v889_v15  ;;  %v867_v42 = vadd.f32 %v6018_v32, %v828_v10  ;;  %v791_v55 = vmul.f32 %v4929_v30, %v5925_v33 }
 0x1cb   : > { %v666_v48 = vpop.xlane.xlu0 %665  ;;  %4940 = vrsqrt.f32 %v733_v34  ;;  %v703_v17 = vmul.f32 0.03125, %v663_v5  ;;  %v792_v36 = vmul.f32 %v4931_v38, %v5934_v47  ;;  %v868_v33 = vadd.f32 %v6018_v32, %v829_v31 }
 0x1cc   : > { %v704_v20 = vmul.f32 0.03125, %v666_v48  ;;  %4942 = vrsqrt.f32 %v734_v35  ;;  %v890_v26 = vpack.c.bf16 %v867_v42, %v866_v29  ;;  %v830_v46 = vmul.f32 %v6011_v28, %v791_v55 }
 0x1cd   : > { %v4933_v50 = vpop.eup %4932  ;;  %v735_v43 = vadd.f32 1e-05, %v703_v17  ;;  %v831_v9 = vmul.f32 %v6011_v28, %v792_v36 }
 0x1ce   : > { %v736_v51 = vadd.f32 1e-05, %v704_v20  ;;  %v4935_v54 = vpop.eup %4934  ;;  %v669_v52 = vpop.xlane.xlu1 %668  ;;  %4387 = vmatprep.mubr.msk.bf16.mxu0 %vm386_vm0, %v890_v26  ;;  %v869_v58 = vadd.f32 %v6018_v32, %v830_v46  ;;  %v793_v24 = vmul.f32 %v4933_v50, %v5937_v37 }
 0x1cf   : > { %v672_v11 = vpop.xlane.xlu0 %671  ;;  %4944 = vrsqrt.f32 %v735_v43  ;;  %v705_v62 = vmul.f32 0.03125, %v669_v52  ;;  %v794_v47 = vmul.f32 %v4935_v54, %v5946_v41  ;;  %v870_v37 = vadd.f32 %v6018_v32, %v831_v9 }
 0x1d0   : > { %v706_v21 = vmul.f32 0.03125, %v672_v11  ;;  %4946 = vrsqrt.f32 %v736_v51  ;;  %v891_v63 = vpack.c.bf16 %v869_v58, %v868_v33  ;;  %v832_v40 = vmul.f32 %v6011_v28, %v793_v24  ;;  %v6132_v11 = vld [vmem:[%s7678_s5] ss:$0 sm:$0xff] }
 0x1d1   : > { %v4937_v59 = vpop.eup %4936  ;;  %v737_v4 = vadd.f32 1e-05, %v705_v62  ;;  %v833_v18 = vmul.f32 %v6011_v28, %v794_v47 }
 0x1d2   : > { %v738_v6 = vadd.f32 1e-05, %v706_v21  ;;  %v4939_v7 = vpop.eup %4938  ;;  %v675_v56 = vpop.xlane.xlu1 %674  ;;  %4388 = vmatmul.mubr.msk.bf16.gmra.mrb[16].mxu0 %vm386_vm0, %v891_v63  ;;  %v871_v14 = vadd.f32 %v6018_v32, %v832_v40  ;;  %v795_v27 = vmul.f32 %v4937_v59, %v5949_v3 }
 0x1d3   : > { %4948 = vrsqrt.f32 %v737_v4  ;;  %v707_v41 = vmul.f32 0.03125, %v675_v56  ;;  %v796_v19 = vmul.f32 %v4939_v7, %v5958_v45  ;;  %v872_v2 = vadd.f32 %v6018_v32, %v833_v18 }
 0x1d4   : > { %4950 = vrsqrt.f32 %v738_v6  ;;  %v892_v22 = vpack.c.bf16 %v871_v14, %v870_v37  ;;  %v834_v60 = vmul.f32 %v6011_v28, %v795_v27 }
 0x1d5   : > { %v4941_v61 = vpop.eup %4940  ;;  %v739_v25 = vadd.f32 1e-05, %v707_v41  ;;  %v835_v1 = vmul.f32 %v6011_v28, %v796_v19 }
 0x1d6   : > { %v4943_v13 = vpop.eup %4942  ;;  %4391 = vmatprep.mubr.msk.bf16.mxu0 %vm386_vm0, %v892_v22  ;;  %v873_v44 = vadd.f32 %v6018_v32, %v834_v60  ;;  %v797_v3 = vmul.f32 %v4941_v61, %v5961_v23 }
 0x1d7   : > { %4952 = vrsqrt.f32 %v739_v25  ;;  %v798_v45 = vmul.f32 %v4943_v13, %v5970_v49  ;;  %v874_v30 = vadd.f32 %v6018_v32, %v835_v1 }
 0x1d8   : > { %v893_v0 = vpack.c.bf16 %v873_v44, %v872_v2  ;;  %v836_v16 = vmul.f32 %v6011_v28, %v797_v3 }
 0x1d9   : > { %v4945_v15 = vpop.eup %4944  ;;  %v837_v23 = vmul.f32 %v6011_v28, %v798_v45 }
 0x1da   : > { %v4947_v10 = vpop.eup %4946  ;;  %4392 = vmatmul.mubr.msk.bf16.gmra.mrb[20].mxu0 %vm386_vm0, %v893_v0  ;;  %v875_v34 = vadd.f32 %v6018_v32, %v836_v16  ;;  %v799_v35 = vmul.f32 %v4945_v15, %v5973_v39 }
 0x1db   : > { %v800_v38 = vmul.f32 %v4947_v10, %v5982_v8  ;;  %v876_v42 = vadd.f32 %v6018_v32, %v837_v23 }
 0x1dc   : > { %v894_v5 = vpack.c.bf16 %v875_v34, %v874_v30  ;;  %v838_v49 = vmul.f32 %v6011_v28, %v799_v35 }
 0x1dd   : > { %v4949_v48 = vpop.eup %4948  ;;  %v839_v17 = vmul.f32 %v6011_v28, %v800_v38 }
 0x1de   : > { %v4951_v29 = vpop.eup %4950  ;;  %4395 = vmatprep.mubr.msk.bf16.mxu0 %vm386_vm0, %v894_v5  ;;  %v877_v55 = vadd.f32 %v6018_v32, %v838_v49  ;;  %v801_v31 = vmul.f32 %v4949_v48, %v5985_v53 }
 0x1df   : > { %v802_v39 = vmul.f32 %v4951_v29, %v5994_v12  ;;  %v878_v46 = vadd.f32 %v6018_v32, %v839_v17 }
 0x1e0   : > { %v895_v20 = vpack.c.bf16 %v877_v55, %v876_v42  ;;  %v840_v8 = vmul.f32 %v6011_v28, %v801_v31 }
 0x1e1   : > { %v4953_v26 = vpop.eup %4952  ;;  %v841_v43 = vmul.f32 %v6011_v28, %v802_v39 }
 0x1e2   : > { %4396 = vmatmul.mubr.msk.bf16.gmra.mrb[24].mxu0 %vm386_vm0, %v895_v20  ;;  %v879_v36 = vadd.f32 %v6018_v32, %v840_v8  ;;  %v803_v50 = vmul.f32 %v4953_v26, %v5997_v57 }
 0x1e3   : > { %v880_v12 = vadd.f32 %v6018_v32, %v841_v43 }
 0x1e4   : > { %v896_v51 = vpack.c.bf16 %v879_v36, %v878_v46  ;;  %v842_v53 = vmul.f32 %v6011_v28, %v803_v50 }
 0x1e6   : > { %4399 = vmatprep.mubr.msk.bf16.mxu0 %vm386_vm0, %v896_v51  ;;  %v881_v54 = vadd.f32 %v6018_v32, %v842_v53 }
 0x1e8   : > { %v897_v52 = vpack.c.bf16 %v881_v54, %v880_v12 }
 0x1ea   : > { %4400 = vmatmul.mubr.msk.bf16.gmra.mrb[28].mxu0 %vm386_vm0, %v897_v52 }
 0x285   : > { %v4373_v57 = vpop.f32.mrb[0].mxu0 }
 0x286   : > { %v1012_v33 = vadd.f32 %v4373_v57, %v6132_v11  ;;  %v1003_v58 = vpop.f32.mrb[1].mxu0 }
 0x287   : > { %v1004_v28 = vadd.f32 %v6132_v11, %v1003_v58  ;;  %v4374_v24 = vpop.f32.mrb[2].mxu0 }
 0x288   : > { %v1015_v9 = vadd.f32 %v4374_v24, %v6132_v11  ;;  %v1006_v62 = vpop.f32.mrb[3].mxu0 }
 0x289   : > { %v6137_v32 = vpack.c.bf16 %v1012_v33, %v1004_v28  ;;  %v1007_v21 = vadd.f32 %v6132_v11, %v1006_v62 }
 0x28b   : > { %7717 = vst [vmem:[#allocation12_spill] sm:$0xff] %v6137_v32  ;;  %v6140_v47 = vpack.c.bf16 %v1015_v9, %v1007_v21  ;;  %1158 = vrot.lane.b32.xlu0 %v6137_v32, %s5407_s19  ;;  %4411 = vmatprep.mubr.msk.bf16.mxu0 %vm1166_vm1, %v6137_v32 }
 0x28d   : > { %v4377_v63 = vpop.f32.mrb[4].mxu0  ;;  %4427 = vmatprep.mubr.msk.bf16.mxu1 %vm1166_vm1, %v6140_v47 }
 0x28e   : > { %v1028_v40 = vadd.f32 %v4377_v63, %v6132_v11  ;;  %v1019_v59 = vpop.f32.mrb[5].mxu0 }
 0x28f   : > { %v1020_v4 = vadd.f32 %v6132_v11, %v1019_v59  ;;  %v4378_v6 = vpop.f32.mrb[6].mxu0 }
 0x290   : > { %v1031_v7 = vadd.f32 %v4378_v6, %v6132_v11  ;;  %v1022_v56 = vpop.f32.mrb[7].mxu0 }
 0x291   : > { %v6151_v37 = vpack.c.bf16 %v1028_v40, %v1020_v4  ;;  %v1023_v14 = vadd.f32 %v6132_v11, %v1022_v56 }
 0x293   : > { %7718 = vst [vmem:[#allocation13_spill] sm:$0xff] %v6151_v37  ;;  %v6154_v27 = vpack.c.bf16 %v1031_v7, %v1023_v14  ;;  %1160 = vrot.lane.b32.xlu1 %v6151_v37, %s5407_s19 }
 0x295   : > { %v4381_v18 = vpop.f32.mrb[8].mxu0 }
 0x296   : > { %v1044_v41 = vadd.f32 %v4381_v18, %v6132_v11  ;;  %v1035_v19 = vpop.f32.mrb[9].mxu0 }
 0x297   : > { %v1036_v22 = vadd.f32 %v6132_v11, %v1035_v19  ;;  %v4382_v60 = vpop.f32.mrb[10].mxu0 }
 0x298   : > { %v1047_v61 = vadd.f32 %v4382_v60, %v6132_v11  ;;  %v1038_v25 = vpop.f32.mrb[11].mxu0 }
 0x299   : > { %v6161_v13 = vpack.c.bf16 %v1044_v41, %v1036_v22  ;;  %v1039_v2 = vadd.f32 %v6132_v11, %v1038_v25 }
 0x29b   : > { %7719 = vst [vmem:[#allocation14_spill] sm:$0xff] %v6161_v13  ;;  %v6164_v44 = vpack.c.bf16 %v1047_v61, %v1039_v2  ;;  %1162 = vrot.lane.b32.xlu1 %v6161_v13, %s5407_s19 }
 0x29d   : > { %v4385_v3 = vpop.f32.mrb[12].mxu0 }
 0x29e   : > { %v1060_v1 = vadd.f32 %v4385_v3, %v6132_v11  ;;  %v1051_v45 = vpop.f32.mrb[13].mxu0 }
 0x29f   : > { %v1052_v0 = vadd.f32 %v6132_v11, %v1051_v45  ;;  %1260 = vrot.lane.b32.xlu1 %v6140_v47, %s5407_s19  ;;  %v4386_v16 = vpop.f32.mrb[14].mxu0 }
 0x2a0   : > { %v1063_v15 = vadd.f32 %v4386_v16, %v6132_v11  ;;  %v1054_v10 = vpop.f32.mrb[15].mxu0 }
 0x2a1   : > { %v6173_v30 = vpack.c.bf16 %v1060_v1, %v1052_v0  ;;  %v1055_v34 = vadd.f32 %v6132_v11, %v1054_v10 }
 0x2a3   : > { %v6176_v35 = vpack.c.bf16 %v1063_v15, %v1055_v34  ;;  %1262 = vrot.lane.b32.xlu1 %v6154_v27, %s5407_s19  ;;  %1164 = vrot.lane.b32.xlu0 %v6173_v30, %s5407_s19 }
 0x2a5   : > { %v4389_v23 = vpop.f32.mrb[16].mxu0 }
 0x2a6   : > { %v1076_v38 = vadd.f32 %v4389_v23, %v6132_v11  ;;  %v1067_v5 = vpop.f32.mrb[17].mxu0 }
 0x2a7   : > { %v1068_v49 = vadd.f32 %v6132_v11, %v1067_v5  ;;  %1264 = vrot.lane.b32.xlu0 %v6164_v44, %s5407_s19  ;;  %v4390_v48 = vpop.f32.mrb[18].mxu0 }
 0x2a8   : > { %v1079_v29 = vadd.f32 %v4390_v48, %v6132_v11  ;;  %v1070_v42 = vpop.f32.mrb[19].mxu0 }
 0x2a9   : > { %v6187_v55 = vpack.c.bf16 %v1076_v38, %v1068_v49  ;;  %v1071_v31 = vadd.f32 %v6132_v11, %v1070_v42 }
 0x2ab   : > { %v6190_v17 = vpack.c.bf16 %v1079_v29, %v1071_v31  ;;  %1266 = vrot.lane.b32.xlu0 %v6176_v35, %s5407_s19  ;;  %1361 = vrot.lane.b32.xlu1 %v6187_v55, %s5407_s19 }
 0x2ad   : > { %v4393_v39 = vpop.f32.mrb[20].mxu0 }
 0x2ae   : > { %v1092_v20 = vadd.f32 %v4393_v39, %v6132_v11  ;;  %v1083_v8 = vpop.f32.mrb[21].mxu0 }
 0x2af   : > { %v1084_v26 = vadd.f32 %v6132_v11, %v1083_v8  ;;  %v4394_v46 = vpop.f32.mrb[22].mxu0 }
 0x2b0   : > { %v1095_v36 = vadd.f32 %v4394_v46, %v6132_v11  ;;  %v1086_v50 = vpop.f32.mrb[23].mxu0 }
 0x2b1   : > { %v6199_v43 = vpack.c.bf16 %v1092_v20, %v1084_v26  ;;  %v1087_v51 = vadd.f32 %v6132_v11, %v1086_v50 }
 0x2b3   : > { %v6202_v53 = vpack.c.bf16 %v1095_v36, %v1087_v51  ;;  %1363 = vrot.lane.b32.xlu1 %v6199_v43, %s5407_s19 }
 0x2b5   : > { %v4397_v12 = vpop.f32.mrb[24].mxu0 }
 0x2b6   : > { %v1108_v54 = vadd.f32 %v4397_v12, %v6132_v11  ;;  %v1099_v52 = vpop.f32.mrb[25].mxu0 }
 0x2b7   : > { %v1100_v57 = vadd.f32 %v6132_v11, %v1099_v52  ;;  %1462 = vrot.lane.b32.xlu1 %v6190_v17, %s5407_s19  ;;  %v4398_v33 = vpop.f32.mrb[26].mxu0 }
 0x2b8   : > { %v1111_v58 = vadd.f32 %v4398_v33, %v6132_v11  ;;  %v1102_v28 = vpop.f32.mrb[27].mxu0 }
 0x2b9   : > { %v6211_v24 = vpack.c.bf16 %v1108_v54, %v1100_v57  ;;  %v1103_v9 = vadd.f32 %v6132_v11, %v1102_v28 }
 0x2bb   : > { %v6214_v62 = vpack.c.bf16 %v1111_v58, %v1103_v9  ;;  %1464 = vrot.lane.b32.xlu1 %v6202_v53, %s5407_s19  ;;  %1365 = vrot.lane.b32.xlu0 %v6211_v24, %s5407_s19 }
 0x2bd   : > { %v4401_v21 = vpop.f32.mrb[28].mxu0 }
 0x2be   : > { %v1124_v63 = vadd.f32 %v4401_v21, %v6132_v11  ;;  %v1115_v40 = vpop.f32.mrb[29].mxu0 }
 0x2bf   : > { %v1116_v59 = vadd.f32 %v6132_v11, %v1115_v40  ;;  %v4402_v4 = vpop.f32.mrb[30].mxu0 }
 0x2c0   : > { %v1127_v6 = vadd.f32 %v4402_v4, %v6132_v11  ;;  %v1118_v7 = vpop.f32.mrb[31].mxu0 }
 0x2c1   : > { %v6223_v56 = vpack.c.bf16 %v1124_v63, %v1116_v59  ;;  %v1119_v14 = vadd.f32 %v6132_v11, %v1118_v7 }
 0x2c3   : > { %v6226_v18 = vpack.c.bf16 %v1127_v6, %v1119_v14  ;;  %1367 = vrot.lane.b32.xlu0 %v6223_v56, %s5407_s19  ;;  %v6341_v6 = vld [vmem:[#allocation5 + $0x10] sm:$0xff]  ;;  %v6343_v14 = vld [vmem:[#allocation5] sm:$0xff] }
 0x2c5   : > { %7720 = vst [vmem:[#allocation15_spill] sm:$0xff] %v6226_v18  ;;  %1468 = vrot.lane.b32.xlu1 %v6226_v18, %s5407_s19 }
 0x2c7   : > { %1466 = vrot.lane.b32.xlu0 %v6214_v62, %s5407_s19 }
 0x2c9   : > { %1962 = vrot.lane.b32.xlu1 %v6151_v37, %s5408_s14 }
 0x2cb   : > { %1960 = vrot.lane.b32.xlu0 %v6137_v32, %s5408_s14 }
 0x2cd   : > { %2049 = vrot.lane.b32.xlu1 %v6140_v47, %s5408_s14 }
 0x2cf   : > { %1964 = vrot.lane.b32.xlu0 %v6161_v13, %s5408_s14 }
 0x2d1   : > { %2138 = vrot.lane.b32.xlu1 %v6187_v55, %s5408_s14 }
 0x2d3   : > { %1966 = vrot.lane.b32.xlu0 %v6173_v30, %s5408_s14 }
 0x2d5   : > { %2053 = vrot.lane.b32.xlu1 %v6164_v44, %s5408_s14 }
 0x2d7   : > { %2051 = vrot.lane.b32.xlu0 %v6154_v27, %s5408_s14 }
 0x2d9   : > { %2142 = vrot.lane.b32.xlu1 %v6211_v24, %s5408_s14 }
 0x2db   : > { %2140 = vrot.lane.b32.xlu0 %v6199_v43, %s5408_s14 }
 0x2dd   : > { %2227 = vrot.lane.b32.xlu1 %v6190_v17, %s5408_s14 }
 0x2df   : > { %2055 = vrot.lane.b32.xlu0 %v6176_v35, %s5408_s14 }
 0x2e1   : > { %2229 = vrot.lane.b32.xlu1 %v6202_v53, %s5408_s14 }
 0x2e3   : > { %2144 = vrot.lane.b32.xlu0 %v6223_v56, %s5408_s14 }
 0x2e5   : > { %2231 = vrot.lane.b32.xlu1 %v6214_v62, %s5408_s14 }
 0x2e7   : > { %2333 = vrot.lane.b32.xlu0 %v6137_v32, %s5409_s17 }
 0x2e9   : > { %2335 = vrot.lane.b32.xlu1 %v6151_v37, %s5409_s17 }
 0x2eb   : > { %2337 = vrot.lane.b32.xlu0 %v6161_v13, %s5409_s17 }
 0x2ed   : > { %2438 = vrot.lane.b32.xlu1 %v6140_v47, %s5409_s17 }
 0x2ef   : > { %2440 = vrot.lane.b32.xlu0 %v6154_v27, %s5409_s17 }
 0x2f1   : > { %2339 = vrot.lane.b32.xlu1 %v6173_v30, %s5409_s17 }
 0x2f3   : > { %2327 = vrot.lane.b32.xlu0 %v6151_v37, %s5410_s15 }
 0x2f5   : > { %2325 = vrot.lane.b32.xlu1 %v6137_v32, %s5410_s15 }
 0x2f9   : > { %2442 = vrot.lane.b32.xlu1 %v6164_v44, %s5409_s17 }
 0x2fd   : > { %2233 = vrot.lane.b32.xlu1 %v6226_v18, %s5408_s14  ;;  %v1159_v11 = vpop.permute.xlu0 %1158 }
 0x2fe   : > { %4695 = vmatprep.subr.msk.bf16.mxu0 %vm1166_vm1, %v1159_v11  ;;  %v1180_v41 = vsel %vm1166_vm1, %v1159_v11, 0 }
 0x2ff   : > { %4404 = vmatpush3.bf16.xpose.msra.mxu0 %v1180_v41 }
 0x305   : > { %v1161_v19 = vpop.permute.xlu1 %1160 }
 0x306   : > { %4696 = vmatprep.subr.msk.bf16.mxu0 %vm1166_vm1, %v1161_v19  ;;  %v1183_v22 = vsel %vm1166_vm1, %v1161_v19, 0  ;;  %v6348_v19 = vld [vmem:[#allocation5 + $0x8] sm:$0xff] }
 0x307   : > { %4406 = vmatpush3.bf16.xpose.msra.mxu0 %v1183_v22 }
 0x30d   : > { %v1163_v60 = vpop.permute.xlu1 %1162 }
 0x30e   : > { %4697 = vmatprep.subr.msk.bf16.mxu0 %vm1166_vm1, %v1163_v60  ;;  %v1186_v61 = vsel %vm1166_vm1, %v1163_v60, 0 }
 0x30f   : > { %4408 = vmatpush3.bf16.xpose.msra.mxu0 %v1186_v61 }
 0x311   : > { %v1261_v25 = vpop.permute.xlu1 %1260 }
 0x312   : > { %4699 = vmatprep.subr.msk.bf16.mxu1 %vm1166_vm1, %v1261_v25  ;;  %v1281_v2 = vsel %vm1166_vm1, %v1261_v25, 0 }
 0x313   : > { %4420 = vmatpush3.bf16.xpose.msra.mxu1 %v1281_v2  ;;  %v6355_v2 = vld [vmem:[#allocation5 + $0x18] sm:$0xff] }
 0x315   : > { %v1263_v3 = vpop.permute.xlu1 %1262  ;;  %v1165_v1 = vpop.permute.xlu0 %1164 }
 0x316   : > { %4698 = vmatprep.subr.msk.bf16.mxu0 %vm1166_vm1, %v1165_v1  ;;  %4700 = vmatprep.subr.msk.bf16.mxu1 %vm1166_vm1, %v1263_v3  ;;  %v1189_v45 = vsel %vm1166_vm1, %v1165_v1, 0  ;;  %v1284_v0 = vsel %vm1166_vm1, %v1263_v3, 0 }
 0x317   : > { %4410 = vmatpush3.bf16.xpose.msra.mxu0 %v1189_v45 }
 0x319   : > { %v1265_v16 = vpop.permute.xlu0 %1264 }
 0x31a   : > { %v1287_v34 = vsel %vm1166_vm1, %v1265_v16, 0 }
 0x31b   : > { %4422 = vmatpush3.bf16.xpose.msra.mxu1 %v1284_v0 }
 0x31c   : > { %4701 = vmatprep.subr.msk.bf16.mxu1 %vm1166_vm1, %v1265_v16 }
 0x31d   : > { %v1362_v15 = vpop.permute.xlu1 %1361  ;;  %v1267_v23 = vpop.permute.xlu0 %1266 }
 0x31e   : > { %4412 = vmatmul.mubr.msk.bf16.vlgmr.msra.gmra.mrb[32].mxu0 %vm1166_vm1, %v6151_v37  ;;  %4703 = vmatprep.subr.msk.bf16.mxu0 %vm1166_vm1, %v1362_v15  ;;  %v1382_v10 = vsel %vm1166_vm1, %v1362_v15, 0  ;;  %v1290_v49 = vsel %vm1166_vm1, %v1267_v23, 0 }
 0x31f   : > { %4415 = vmatprep.mubr.msk.bf16.mxu0 %vm1166_vm1, %v6161_v13  ;;  %4436 = vmatpush3.bf16.xpose.msra.mxu0 %v1382_v10 }
 0x323   : > { %4424 = vmatpush3.bf16.xpose.msra.mxu1 %v1287_v34 }
 0x324   : > { %4702 = vmatprep.subr.msk.bf16.mxu1 %vm1166_vm1, %v1267_v23 }
 0x325   : > { %v1364_v38 = vpop.permute.xlu1 %1363 }
 0x326   : > { %4416 = vmatmul.mubr.msk.bf16.gmra.mrb[36].mxu0 %vm1166_vm1, %v6173_v30  ;;  %4704 = vmatprep.subr.msk.bf16.mxu0 %vm1166_vm1, %v1364_v38  ;;  %v1385_v5 = vsel %vm1166_vm1, %v1364_v38, 0 }
 0x327   : > { %4438 = vmatpush3.bf16.xpose.msra.mxu0 %v1385_v5  ;;  %4443 = vmatprep.mubr.msk.bf16.mxu0 %vm1166_vm1, %v6187_v55 }
 0x329   : > { %v1463_v48 = vpop.permute.xlu1 %1462 }
 0x32a   : > { %v1483_v31 = vsel %vm1166_vm1, %v1463_v48, 0 }
 0x32b   : > { %4426 = vmatpush3.bf16.xpose.msra.mxu1 %v1290_v49 }
 0x32c   : > { %4707 = vmatprep.subr.msk.bf16.mxu1 %vm1166_vm1, %v1463_v48 }
 0x32d   : > { %v1366_v29 = vpop.permute.xlu0 %1365  ;;  %v1465_v39 = vpop.permute.xlu1 %1464 }
 0x32e   : > { %4705 = vmatprep.subr.msk.bf16.mxu0 %vm1166_vm1, %v1366_v29  ;;  %v1388_v42 = vsel %vm1166_vm1, %v1366_v29, 0  ;;  %v1486_v36 = vsel %vm1166_vm1, %v1465_v39, 0 }
 0x32f   : > { %4440 = vmatpush3.bf16.xpose.msra.mxu0 %v1388_v42 }
 0x332   : > { %4428 = vmatmul.mubr.msk.bf16.vlgmr.msra.gmra.mrb[0].mxu1 %vm1166_vm1, %v6154_v27 }
 0x333   : > { %4431 = vmatprep.mubr.msk.bf16.mxu1 %vm1166_vm1, %v6164_v44  ;;  %4452 = vmatpush3.bf16.xpose.msra.mxu1 %v1483_v31 }
 0x334   : > { %4708 = vmatprep.subr.msk.bf16.mxu1 %vm1166_vm1, %v1465_v39 }
 0x335   : > { %v1368_v20 = vpop.permute.xlu0 %1367 }
 0x336   : > { %4706 = vmatprep.subr.msk.bf16.mxu0 %vm1166_vm1, %v1368_v20  ;;  %v1391_v8 = vsel %vm1166_vm1, %v1368_v20, 0  ;;  %v6380_v20 = vld [vmem:[#allocation5 + $0x30] sm:$0xff] }
 0x337   : > { %4442 = vmatpush3.bf16.xpose.msra.mxu0 %v1391_v8  ;;  %v1469_v26 = vpop.permute.xlu1 %1468 }
 0x338   : > { %v1492_v58 = vsel %vm1166_vm1, %v1469_v26, 0 }
 0x339   : > { %v1467_v46 = vpop.permute.xlu0 %1466 }
 0x33a   : > { %4432 = vmatmul.mubr.msk.bf16.gmra.mrb[4].mxu1 %vm1166_vm1, %v6176_v35  ;;  %v1489_v54 = vsel %vm1166_vm1, %v1467_v46, 0 }
 0x33b   : > { %4454 = vmatpush3.bf16.xpose.msra.mxu1 %v1486_v36  ;;  %4459 = vmatprep.mubr.msk.bf16.mxu1 %vm1166_vm1, %v6190_v17  ;;  %v1963_v51 = vpop.permute.xlu1 %1962 }
 0x33c   : > { %4709 = vmatprep.subr.msk.bf16.mxu1 %vm1166_vm1, %v1467_v46  ;;  %v6387_v46 = vld [vmem:[#allocation5 + $0x38] sm:$0xff] }
 0x33d   : > { %v1961_v50 = vpop.permute.xlu0 %1960 }
 0x33e   : > { %4444 = vmatmul.mubr.msk.bf16.vlgmr.msra.gmra.mrb[40].mxu0 %vm1166_vm1, %v6199_v43  ;;  %4467 = vmatprep.subr.bf16.mxu0 %v1961_v50 }
 0x33f   : > { %4447 = vmatprep.mubr.msk.bf16.mxu0 %vm1166_vm1, %v6211_v24  ;;  %4468 = vmatpush3.bf16.msra.mxu0 %v1961_v50  ;;  %v6319_v52 = vpop.permute.xlu1 %2049 }
 0x340   : > { %4469 = vmatprep.subr.bf16.mxu0 %v1963_v51 }
 0x341   : > { %v1965_v12 = vpop.permute.xlu0 %1964 }
 0x343   : > { %4456 = vmatpush3.bf16.xpose.msra.mxu1 %v1489_v54  ;;  %4470 = vmatpush3.bf16.msra.mxu0 %v1963_v51  ;;  %v2139_v28 = vpop.permute.xlu1 %2138  ;;  %v6394_v51 = vld [vmem:[#allocation5 + $0x20] sm:$0xff] }
 0x344   : > { %4710 = vmatprep.subr.msk.bf16.mxu1 %vm1166_vm1, %v1469_v26  ;;  %4471 = vmatprep.subr.bf16.mxu0 %v1965_v12 }
 0x345   : > { %v1967_v57 = vpop.permute.xlu0 %1966 }
 0x346   : > { %4448 = vmatmul.mubr.msk.bf16.gmra.mrb[44].mxu0 %vm1166_vm1, %v6223_v56 }
 0x347   : > { %4472 = vmatpush3.bf16.msra.mxu0 %v1965_v12  ;;  %v6327_v21 = vpop.permute.xlu1 %2053 }
 0x348   : > { %4473 = vmatprep.subr.bf16.mxu0 %v1967_v57 }
 0x349   : > { %v6323_v33 = vpop.permute.xlu0 %2051 }
 0x34b   : > { %4458 = vmatpush3.bf16.xpose.msra.mxu1 %v1492_v58  ;;  %4474 = vmatpush3.bf16.msra.mxu0 %v1967_v57  ;;  %v2143_v40 = vpop.permute.xlu1 %2142 }
 0x34c   : > { %4483 = vmatprep.subr.bf16.mxu0 %v6319_v52  ;;  %4499 = vmatprep.subr.bf16.mxu1 %v2139_v28 }
 0x34d   : > { %v2141_v9 = vpop.permute.xlu0 %2140 }
 0x351   : > { %v6331_v63 = vpop.permute.xlu0 %2055 }
 0x352   : > { %4460 = vmatmul.mubr.msk.bf16.vlgmr.msra.gmra.mrb[8].mxu1 %vm1166_vm1, %v6202_v53 }
 0x353   : > { %4463 = vmatprep.mubr.msk.bf16.mxu1 %vm1166_vm1, %v6214_v62  ;;  %4500 = vmatpush3.bf16.msra.mxu1 %v2139_v28  ;;  %v6401_v28 = vld [vmem:[#allocation5 + $0x28] sm:$0xff] }
 0x354   : > { %4501 = vmatprep.subr.bf16.mxu1 %v2141_v9 }
 0x355   : > { %v2145_v59 = vpop.permute.xlu0 %2144 }
 0x357   : > { %4502 = vmatpush3.bf16.msra.mxu1 %v2141_v9 }
 0x358   : > { %4503 = vmatprep.subr.bf16.mxu1 %v2143_v40 }
 0x359   : > { %v6337_v4 = vpop.permute.xlu0 %2333 }
 0x35a   : > { %4464 = vmatmul.mubr.msk.bf16.gmra.mrb[12].mxu1 %vm1166_vm1, %v6226_v18  ;;  %7721 = vst [vmem:[#allocation16_spill] sm:$0xff] %v6337_v4 }
 0x35b   : > { %4504 = vmatpush3.bf16.msra.mxu1 %v2143_v40 }
 0x35c   : > { %4505 = vmatprep.subr.bf16.mxu1 %v2145_v59 }
 0x35f   : > { %4506 = vmatpush3.bf16.msra.mxu1 %v2145_v59 }
 0x360   : > { %4711 = vmatprep.subr.msk.bf16.mxu1 %vm1166_vm1, %v6337_v4 }
 0x3f1   : > { %v4413_v7 = vpop.f32.mrb[32].mxu0 }
 0x3f2   : > { %v6346_v11 = vadd.f32 %v4413_v7, %v6341_v6  ;;  %v1225_v41 = vpop.f32.mrb[33].mxu0 }
 0x3f3   : > { %v4414_v22 = vpop.f32.mrb[34].mxu0  ;;  %v6351_v60 = vadd.f32 %v1225_v41, %v6343_v14 }
 0x3f4   : > { %v1228_v61 = vpop.f32.mrb[35].mxu0  ;;  %v1566_v25 = vsel %vm1559_vm2, %v6346_v11, -inf  ;;  %v6363_v45 = vadd.f32 %v4414_v22, %v6355_v2 }
 0x3f5   : > { %v6358_v3 = vadd.f32 %v1228_v61, %v6348_v19  ;;  %1567 = vmax.xlane.f32.xlu0 %v1566_v25  ;;  %v1560_v0 = vsel %vm1559_vm2, %v6351_v60, -inf }
 0x3f6   : > { %v1569_v23 = vsel %vm1559_vm2, %v6363_v45, -inf }
 0x3f7   : > { %v1563_v1 = vsel %vm1559_vm2, %v6358_v3, -inf }
 0x3f8   : > { %1564 = vmax.xlane.f32.xlu1 %v1563_v1 }
 0x3f9   : > { %v4417_v16 = vpop.f32.mrb[36].mxu0  ;;  %1561 = vmax.xlane.f32.xlu0 %v1560_v0 }
 0x3fa   : > { %v1241_v15 = vpop.f32.mrb[37].mxu0  ;;  %v6390_v36 = vadd.f32 %v4417_v16, %v6380_v20 }
 0x3fb   : > { %v4418_v10 = vpop.f32.mrb[38].mxu0  ;;  %v6404_v40 = vadd.f32 %v1241_v15, %v6394_v51 }
 0x3fc   : > { %v1244_v34 = vpop.f32.mrb[39].mxu0  ;;  %v6397_v54 = vadd.f32 %v4418_v10, %v6387_v46  ;;  %v1578_v7 = vsel %vm1559_vm2, %v6390_v36, -inf }
 0x3fd   : > { %1570 = vmax.xlane.f32.xlu0 %v1569_v23  ;;  %v6409_v22 = vadd.f32 %v1244_v34, %v6401_v28  ;;  %v1572_v15 = vsel %vm1559_vm2, %v6404_v40, -inf }
 0x3fe   : > { %v1581_v25 = vsel %vm1559_vm2, %v6397_v54, -inf }
 0x3ff   : > { %v1575_v34 = vsel %vm1559_vm2, %v6409_v22, -inf }
 0x405   : > { %v4429_v38 = vpop.f32.mrb[0].mxu1 }
 0x406   : > { %v6370_v5 = vadd.f32 %v4429_v38, %v6341_v6  ;;  %v1326_v49 = vpop.f32.mrb[1].mxu1 }
 0x407   : > { %v4430_v48 = vpop.f32.mrb[2].mxu1  ;;  %v6373_v29 = vadd.f32 %v1326_v49, %v6343_v14 }
 0x408   : > { %v6376_v42 = vadd.f32 %v4430_v48, %v6355_v2  ;;  %v1329_v31 = vpop.f32.mrb[3].mxu1  ;;  %v1590_v39 = vsel %vm1559_vm2, %v6370_v5, -inf }
 0x409   : > { %1591 = vmax.xlane.f32.xlu0 %v1590_v39  ;;  %v6383_v8 = vadd.f32 %v1329_v31, %v6348_v19  ;;  %v1584_v50 = vsel %vm1559_vm2, %v6373_v29, -inf }
 0x40a   : > { %v1593_v26 = vsel %vm1559_vm2, %v6376_v42, -inf }
 0x40b   : > { %1594 = vmax.xlane.f32.xlu1 %v1593_v26  ;;  %v1587_v58 = vsel %vm1559_vm2, %v6383_v8, -inf }
 0x40d   : > { %v4433_v12 = vpop.f32.mrb[4].mxu1  ;;  %1585 = vmax.xlane.f32.xlu0 %v1584_v50 }
 0x40e   : > { %v1342_v57 = vpop.f32.mrb[5].mxu1  ;;  %v6414_v0 = vadd.f32 %v4433_v12, %v6380_v20 }
 0x40f   : > { %v4434_v9 = vpop.f32.mrb[6].mxu1  ;;  %1588 = vmax.xlane.f32.xlu1 %v1587_v58  ;;  %v6424_v23 = vadd.f32 %v1342_v57, %v6394_v51 }
 0x410   : > { %v1345_v59 = vpop.f32.mrb[7].mxu1  ;;  %v6419_v10 = vadd.f32 %v4434_v9, %v6387_v46  ;;  %v1602_v38 = vsel %vm1559_vm2, %v6414_v0, -inf }
 0x411   : > { %1579 = vmax.xlane.f32.xlu0 %v1578_v7  ;;  %v4445_v41 = vpop.f32.mrb[40].mxu0  ;;  %v6429_v48 = vadd.f32 %v1345_v59, %v6401_v28  ;;  %v1596_v58 = vsel %vm1559_vm2, %v6424_v23, -inf }
 0x412   : > { %v1427_v61 = vpop.f32.mrb[41].mxu0  ;;  %v1605_v39 = vsel %vm1559_vm2, %v6419_v10, -inf  ;;  %v6434_v50 = vadd.f32 %v4445_v41, %v6341_v6 }
 0x413   : > { %1582 = vmax.xlane.f32.xlu1 %v1581_v25  ;;  %v4446_v1 = vpop.f32.mrb[42].mxu0  ;;  %v1599_v7 = vsel %vm1559_vm2, %v6429_v48, -inf  ;;  %v6450_v41 = vadd.f32 %v1427_v61, %v6343_v14 }
 0x414   : > { %v1430_v16 = vpop.f32.mrb[43].mxu0  ;;  %v6445_v59 = vadd.f32 %v4446_v1, %v6355_v2  ;;  %v1614_v25 = vsel %vm1559_vm2, %v6434_v50, -inf }
 0x415   : > { %1573 = vmax.xlane.f32.xlu0 %v1572_v15  ;;  %v6455_v15 = vadd.f32 %v1430_v16, %v6348_v19  ;;  %v1608_v1 = vsel %vm1559_vm2, %v6450_v41, -inf }
 0x417   : > { %1576 = vmax.xlane.f32.xlu1 %v1575_v34  ;;  %v1617_v34 = vsel %vm1559_vm2, %v6445_v59, -inf }
 0x419   : > { %1603 = vmax.xlane.f32.xlu0 %v1602_v38  ;;  %v4449_v49 = vpop.f32.mrb[44].mxu0 }
 0x41a   : > { %v1443_v31 = vpop.f32.mrb[45].mxu0 }
 0x41b   : > { %1606 = vmax.xlane.f32.xlu1 %v1605_v39  ;;  %v4450_v26 = vpop.f32.mrb[46].mxu0 }
 0x41c   : > { %v6437_v12 = vadd.f32 %v4450_v26, %v6387_v46  ;;  %v1446_v57 = vpop.f32.mrb[47].mxu0  ;;  %v1611_v26 = vsel %vm1559_vm2, %v6455_v15, -inf }
 0x41d   : > { %v6442_v9 = vadd.f32 %v1446_v57, %v6401_v28  ;;  %1597 = vmax.xlane.f32.xlu0 %v1596_v58 }
 0x41f   : > { %1600 = vmax.xlane.f32.xlu1 %v1599_v7 }
 0x421   : > { %1615 = vmax.xlane.f32.xlu0 %v1614_v25 }
 0x423   : > { %1618 = vmax.xlane.f32.xlu1 %v1617_v34 }
 0x425   : > { %1609 = vmax.xlane.f32.xlu0 %v1608_v1  ;;  %v4461_v38 = vpop.f32.mrb[8].mxu1  ;;  %v6480_v1 = vadd.f32 %v4449_v49, %v6380_v20  ;;  %v6493_v49 = vadd.f32 %v1443_v31, %v6394_v51 }
 0x426   : > { %v6462_v39 = vadd.f32 %v4461_v38, %v6341_v6  ;;  %v1528_v61 = vpop.f32.mrb[9].mxu1 }
 0x427   : > { %1612 = vmax.xlane.f32.xlu1 %v1611_v26  ;;  %v4462_v57 = vpop.f32.mrb[10].mxu1  ;;  %v6467_v16 = vadd.f32 %v1528_v61, %v6343_v14 }
 0x428   : > { %v6470_v58 = vadd.f32 %v4462_v57, %v6355_v2  ;;  %v1531_v7 = vpop.f32.mrb[11].mxu1  ;;  %v1638_v25 = vsel %vm1559_vm2, %v6462_v39, -inf }
 0x429   : > { %1639 = vmax.xlane.f32.xlu0 %v1638_v25  ;;  %v6475_v6 = vadd.f32 %v1531_v7, %v6348_v19  ;;  %v1632_v14 = vsel %vm1559_vm2, %v6467_v16, -inf }
 0x42a   : > { %v1641_v34 = vsel %vm1559_vm2, %v6470_v58, -inf }
 0x42b   : > { %1642 = vmax.xlane.f32.xlu1 %v1641_v34  ;;  %v1635_v19 = vsel %vm1559_vm2, %v6475_v6, -inf }
 0x42d   : > { %v4465_v2 = vpop.f32.mrb[12].mxu1  ;;  %1633 = vmax.xlane.f32.xlu0 %v1632_v14  ;;  %v1620_v14 = vsel %vm1559_vm2, %v6493_v49, -inf }
 0x42e   : > { %v6485_v38 = vadd.f32 %v4465_v2, %v6380_v20  ;;  %v1544_v61 = vpop.f32.mrb[13].mxu1  ;;  %v1626_v20 = vsel %vm1559_vm2, %v6480_v1, -inf }
 0x42f   : > { %v6490_v26 = vadd.f32 %v1544_v61, %v6394_v51  ;;  %v4466_v57 = vpop.f32.mrb[14].mxu1  ;;  %1636 = vmax.xlane.f32.xlu1 %v1635_v19  ;;  %v1629_v51 = vsel %vm1559_vm2, %v6437_v12, -inf }
 0x430   : > { %v6496_v7 = vadd.f32 %v4466_v57, %v6387_v46  ;;  %v1547_v25 = vpop.f32.mrb[15].mxu1  ;;  %v6509_v46 = vpop.permute.xlu1 %2227  ;;  %v1650_v2 = vsel %vm1559_vm2, %v6485_v38, -inf }
 0x431   : > { %v6501_v34 = vadd.f32 %v1547_v25, %v6401_v28  ;;  %1627 = vmax.xlane.f32.xlu0 %v1626_v20  ;;  %v1623_v28 = vsel %vm1559_vm2, %v6442_v9, -inf  ;;  %v1644_v57 = vsel %vm1559_vm2, %v6490_v26, -inf }
 0x432   : > { %v1653_v19 = vsel %vm1559_vm2, %v6496_v7, -inf }
 0x433   : > { %v1647_v25 = vsel %vm1559_vm2, %v6501_v34, -inf }
 0x434   : > { %v6513_v31 = vpop.permute.xlu1 %2229 }
 0x435   : > { %1621 = vmax.xlane.f32.xlu0 %v1620_v14  ;;  %v6529_v14 = vpop.permute.xlu0 %2337 }
 0x436   : > { %7724 = vst [vmem:[#allocation19_spill] sm:$0xff] %v6529_v14 }
 0x438   : > { %v6519_v61 = vpop.permute.xlu1 %2231 }
 0x439   : > { %7722 = vst [vmem:[#allocation17_spill] sm:$0xff] %v6519_v61 }
 0x43c   : > { %v6527_v20 = vpop.permute.xlu1 %2335 }
 0x43d   : > { %7723 = vst [vmem:[#allocation18_spill] sm:$0xff] %v6527_v20 }
 0x440   : > { %2329 = vrot.lane.b32.xlu1 %v6161_v13, %s5410_s15 }
 0x44b   : > { %2543 = vrot.lane.b32.xlu0 %v6187_v55, %s5409_s17 }
 0x464   : > { %1630 = vmax.xlane.f32.xlu1 %v1629_v51  ;;  %v6531_v51 = vpop.permute.xlu1 %2438 }
 0x465   : > { %7725 = vst [vmem:[#allocation20_spill] sm:$0xff] %v6531_v51 }
 0x468   : > { %1624 = vmax.xlane.f32.xlu1 %v1623_v28  ;;  %v6533_v28 = vpop.permute.xlu0 %2440 }
 0x469   : > { %7726 = vst [vmem:[#allocation21_spill] sm:$0xff] %v6533_v28 }
 0x46a   : > { %1651 = vmax.xlane.f32.xlu0 %v1650_v2  ;;  %v6535_v2 = vpop.permute.xlu1 %2339 }
 0x46b   : > { %7727 = vst [vmem:[#allocation22_spill] sm:$0xff] %v6535_v2 }
 0x46c   : > { %1654 = vmax.xlane.f32.xlu1 %v1653_v19  ;;  %v6537_v13 = vpop.permute.xlu0 %2327 }
 0x46d   : > { %7728 = vst [vmem:[#allocation23_spill] sm:$0xff] %v6537_v13 }
 0x46e   : > { %1645 = vmax.xlane.f32.xlu0 %v1644_v57  ;;  %v6539_v19 = vpop.permute.xlu1 %2325 }
 0x46f   : > { %7729 = vst [vmem:[#allocation24_spill] sm:$0xff] %v6539_v19 }
 0x470   : > { %1648 = vmax.xlane.f32.xlu1 %v1647_v25 }
 0x472   : > { %v6543_v20 = vpop.permute.xlu1 %2442 }
 0x473   : > { %7730 = vst [vmem:[#allocation25_spill] sm:$0xff] %v6543_v20 }
 0x476   : > { %v6546_v61 = vpop.permute.xlu1 %2233 }
 0x477   : > { %7731 = vst [vmem:[#allocation26_spill] sm:$0xff] %v6546_v61 }
 0x482   : > { %v1568_v32 = vpop.xlane.xlu0 %1567 }
 0x483   : > { %v1658_v57 = vsub.f32 %v6346_v11, %v1568_v32 }
 0x485   : > { %v1692_v37 = vmul.f32 1.442695, %v1658_v57  ;;  %v1565_v19 = vpop.xlane.xlu1 %1564 }
 0x486   : > { %v1562_v4 = vpop.xlane.xlu0 %1561 }
 0x487   : > { %4954 = vpow2.f32 %v1692_v37  ;;  %v1656_v25 = vsub.f32 %v6351_v60, %v1562_v4  ;;  %v1657_v4 = vsub.f32 %v6358_v3, %v1565_v19 }
 0x489   : > { %v1688_v14 = vmul.f32 1.442695, %v1656_v25 }
 0x48a   : > { %v1571_v51 = vpop.xlane.xlu0 %1570 }
 0x48b   : > { %4956 = vpow2.f32 %v1688_v14  ;;  %v1659_v28 = vsub.f32 %v6363_v45, %v1571_v51 }
 0x48d   : > { %v1694_v2 = vmul.f32 1.442695, %v1659_v28  ;;  %v1690_v28 = vmul.f32 1.442695, %v1657_v4 }
 0x48f   : > { %4958 = vpow2.f32 %v1694_v2 }
 0x491   : > { %v6548_v13 = vpop.eup %4954 }
 0x492   : > { %v1758_v32 = vsel %vm1559_vm2, %v6548_v13, 0.0 }
 0x493   : > { %1759 = vadd.xlane.f32.xlu0 %v1758_v32 }
 0x495   : > { %v6552_v37 = vpop.eup %4956 }
 0x496   : > { %v1592_v11 = vpop.xlane.xlu0 %1591  ;;  %v1752_v60 = vsel %vm1559_vm2, %v6552_v37, 0.0 }
 0x497   : > { %v1666_v45 = vsub.f32 %v6370_v5, %v1592_v11  ;;  %1753 = vadd.xlane.f32.xlu0 %v1752_v60 }
 0x498   : > { %v1595_v14 = vpop.xlane.xlu1 %1594 }
 0x499   : > { %v6558_v51 = vpop.eup %4958  ;;  %v1708_v2 = vmul.f32 1.442695, %v1666_v45  ;;  %v1667_v19 = vsub.f32 %v6376_v42, %v1595_v14 }
 0x49a   : > { %v1586_v57 = vpop.xlane.xlu0 %1585  ;;  %v1761_v25 = vsel %vm1559_vm2, %v6558_v51, 0.0 }
 0x49b   : > { %4960 = vpow2.f32 %v1708_v2  ;;  %v1664_v32 = vsub.f32 %v6373_v29, %v1586_v57  ;;  %1762 = vadd.xlane.f32.xlu1 %v1761_v25  ;;  %v1710_v61 = vmul.f32 1.442695, %v1667_v19 }
 0x49c   : > { %v1589_v3 = vpop.xlane.xlu1 %1588  ;;  %4962 = vpow2.f32 %v1690_v28 }
 0x49d   : > { %v1704_v20 = vmul.f32 1.442695, %v1664_v32  ;;  %v1665_v4 = vsub.f32 %v6383_v8, %v1589_v3 }
 0x49e   : > { %v1580_v5 = vpop.xlane.xlu0 %1579 }
 0x49f   : > { %v1662_v11 = vsub.f32 %v6390_v36, %v1580_v5  ;;  %4964 = vpow2.f32 %v1704_v20  ;;  %v1706_v42 = vmul.f32 1.442695, %v1665_v4 }
 0x4a0   : > { %v1583_v60 = vpop.xlane.xlu1 %1582 }
 0x4a1   : > { %v1700_v45 = vmul.f32 1.442695, %v1662_v11  ;;  %v1663_v29 = vsub.f32 %v6397_v54, %v1583_v60 }
 0x4a2   : > { %v1574_v18 = vpop.xlane.xlu0 %1573 }
 0x4a3   : > { %4966 = vpow2.f32 %v1700_v45  ;;  %v1660_v2 = vsub.f32 %v6404_v40, %v1574_v18  ;;  %v1702_v8 = vmul.f32 1.442695, %v1663_v29 }
 0x4a4   : > { %v1577_v57 = vpop.xlane.xlu1 %1576  ;;  %4968 = vpow2.f32 %v1710_v61 }
 0x4a5   : > { %v6568_v28 = vpop.eup %4960  ;;  %v1696_v14 = vmul.f32 1.442695, %v1660_v2  ;;  %v1661_v4 = vsub.f32 %v6409_v22, %v1577_v57 }
 0x4a6   : > { %v1604_v25 = vpop.xlane.xlu0 %1603  ;;  %v1782_v36 = vsel %vm1559_vm2, %v6568_v28, 0.0  ;;  %v6572_v20 = vpop.eup %4962 }
 0x4a7   : > { %4970 = vpow2.f32 %v1696_v14  ;;  %1783 = vadd.xlane.f32.xlu1 %v1782_v36  ;;  %v1670_v32 = vsub.f32 %v6414_v0, %v1604_v25  ;;  %v1755_v61 = vsel %vm1559_vm2, %v6572_v20, 0.0  ;;  %v1698_v22 = vmul.f32 1.442695, %v1661_v4 }
 0x4a8   : > { %v1607_v18 = vpop.xlane.xlu1 %1606  ;;  %4972 = vpow2.f32 %v1706_v42 }
 0x4a9   : > { %v1671_v54 = vsub.f32 %v6419_v10, %v1607_v18  ;;  %v6578_v3 = vpop.eup %4964  ;;  %4974 = vpow2.f32 %v1702_v8  ;;  %v1716_v5 = vmul.f32 1.442695, %v1670_v32 }
 0x4aa   : > { %v1598_v40 = vpop.xlane.xlu0 %1597  ;;  %v1776_v10 = vsel %vm1559_vm2, %v6578_v3, 0.0 }
 0x4ab   : > { %v1718_v19 = vmul.f32 1.442695, %v1671_v54  ;;  %1756 = vadd.xlane.f32.xlu1 %v1755_v61  ;;  %v1668_v57 = vsub.f32 %v6424_v23, %v1598_v40 }
 0x4ac   : > { %v1601_v11 = vpop.xlane.xlu1 %1600 }
 0x4ad   : > { %v6580_v60 = vpop.eup %4966  ;;  %4976 = vpow2.f32 %v1718_v19  ;;  %v1669_v0 = vsub.f32 %v6429_v48, %v1601_v11  ;;  %v1712_v19 = vmul.f32 1.442695, %v1668_v57 }
 0x4ae   : > { %v1616_v45 = vpop.xlane.xlu0 %1615  ;;  %v1770_v2 = vsel %vm1559_vm2, %v6580_v60, 0.0  ;;  %v6588_v29 = vpop.eup %4968  ;;  %4978 = vpow2.f32 %v1716_v5 }
 0x4af   : > { %v1714_v42 = vmul.f32 1.442695, %v1669_v0  ;;  %1777 = vadd.xlane.f32.xlu1 %v1776_v10  ;;  %1771 = vadd.xlane.f32.xlu0 %v1770_v2  ;;  %v1785_v36 = vsel %vm1559_vm2, %v6588_v29, 0.0  ;;  %v1674_v54 = vsub.f32 %v6434_v50, %v1616_v45 }
 0x4b0   : > { %v1619_v14 = vpop.xlane.xlu1 %1618 }
 0x4b1   : > { %v6590_v25 = vpop.eup %4970  ;;  %4980 = vpow2.f32 %v1714_v42  ;;  %v1724_v4 = vmul.f32 1.442695, %v1674_v54 }
 0x4b2   : > { %v1610_v48 = vpop.xlane.xlu0 %1609  ;;  %v1764_v8 = vsel %vm1559_vm2, %v6590_v25, 0.0  ;;  %v6597_v32 = vpop.eup %4972  ;;  %4982 = vpow2.f32 %v1698_v22 }
 0x4b3   : > { %v1672_v18 = vsub.f32 %v6450_v41, %v1610_v48  ;;  %1786 = vadd.xlane.f32.xlu1 %v1785_v36  ;;  %1765 = vadd.xlane.f32.xlu0 %v1764_v8  ;;  %v6601_v40 = vpop.eup %4974  ;;  %v1779_v5 = vsel %vm1559_vm2, %v6597_v32, 0.0  ;;  %v1675_v41 = vsub.f32 %v6445_v59, %v1619_v14 }
 0x4b4   : > { %v1613_v61 = vpop.xlane.xlu1 %1612  ;;  %v1773_v42 = vsel %vm1559_vm2, %v6601_v40, 0.0 }
 0x4b5   : > { %v1720_v23 = vmul.f32 1.442695, %v1672_v18  ;;  %v1726_v59 = vmul.f32 1.442695, %v1675_v41 }
 0x4b6   : > { %v1640_v0 = vpop.xlane.xlu0 %1639 }
 0x4b7   : > { %v6605_v11 = vpop.eup %4976  ;;  %4984 = vpow2.f32 %v1720_v23  ;;  %1780 = vadd.xlane.f32.xlu1 %v1779_v5  ;;  %v1682_v36 = vsub.f32 %v6462_v39, %v1640_v0  ;;  %v1673_v5 = vsub.f32 %v6455_v15, %v1613_v61 }
 0x4b8   : > { %v1643_v10 = vpop.xlane.xlu1 %1642  ;;  %v1797_v50 = vsel %vm1559_vm2, %v6605_v11, 0.0  ;;  %4986 = vpow2.f32 %v1712_v19  ;;  %v6611_v2 = vpop.eup %4978 }
 0x4b9   : > { %v1683_v45 = vsub.f32 %v6470_v58, %v1643_v10  ;;  %1798 = vadd.xlane.f32.xlu0 %v1797_v50  ;;  %4988 = vpow2.f32 %v1724_v4  ;;  %v1794_v18 = vsel %vm1559_vm2, %v6611_v2, 0.0  ;;  %v1740_v4 = vmul.f32 1.442695, %v1682_v36 }
 0x4ba   : > { %v1634_v8 = vpop.xlane.xlu0 %1633  ;;  %v1722_v10 = vmul.f32 1.442695, %v1673_v5 }
 0x4bb   : > { %v6615_v22 = vpop.eup %4980  ;;  %v1742_v57 = vmul.f32 1.442695, %v1683_v45  ;;  %1774 = vadd.xlane.f32.xlu1 %v1773_v42  ;;  %v1680_v50 = vsub.f32 %v6467_v16, %v1634_v8 }
 0x4bc   : > { %v1637_v14 = vpop.xlane.xlu1 %1636  ;;  %v1791_v48 = vsel %vm1559_vm2, %v6615_v22, 0.0  ;;  %v6623_v54 = vpop.eup %4982 }
 0x4bd   : > { %4990 = vpow2.f32 %v1742_v57  ;;  %v1681_v58 = vsub.f32 %v6475_v6, %v1637_v14  ;;  %1792 = vadd.xlane.f32.xlu0 %v1791_v48  ;;  %v1767_v39 = vsel %vm1559_vm2, %v6623_v54, 0.0  ;;  %v1736_v57 = vmul.f32 1.442695, %v1680_v50 }
 0x4be   : > { %4992 = vpow2.f32 %v1726_v59  ;;  %v1628_v0 = vpop.xlane.xlu0 %1627 }
 0x4bf   : > { %v1738_v19 = vmul.f32 1.442695, %v1681_v58  ;;  %1795 = vadd.xlane.f32.xlu1 %v1794_v18  ;;  %v1678_v59 = vsub.f32 %v6480_v1, %v1628_v0 }
 0x4c1   : > { %v6625_v23 = vpop.eup %4984  ;;  %4994 = vpow2.f32 %v1738_v19  ;;  %v1732_v8 = vmul.f32 1.442695, %v1678_v59 }
 0x4c2   : > { %v1800_v6 = vsel %vm1559_vm2, %v6625_v23, 0.0  ;;  %v6632_v41 = vpop.eup %4986  ;;  %4996 = vpow2.f32 %v1740_v4  ;;  %v1622_v48 = vpop.xlane.xlu0 %1621 }
 0x4c3   : > { %1768 = vadd.xlane.f32.xlu1 %v1767_v39  ;;  %1801 = vadd.xlane.f32.xlu0 %v1800_v6  ;;  %v6635_v45 = vpop.eup %4988  ;;  %v1788_v15 = vsel %vm1559_vm2, %v6632_v41, 0.0  ;;  %4998 = vpow2.f32 %v1722_v10  ;;  %v1676_v18 = vsub.f32 %v6493_v49, %v1622_v48 }
 0x4c4   : > { %v1806_v16 = vsel %vm1559_vm2, %v6635_v45, 0.0  ;;  %5000 = vpow2.f32 %v1736_v57  ;;  %v6675_v57 = vpop.permute.xlu1 %2329 }
 0x4c5   : > { %5002 = vpow2.f32 %v1732_v8  ;;  %v1728_v5 = vmul.f32 1.442695, %v1676_v18  ;;  %7733 = vst [vmem:[#allocation28_spill] sm:$0xff] %v6675_v57 }
 0x4c7   : > { %v6639_v61 = vpop.eup %4990  ;;  %1789 = vadd.xlane.f32.xlu1 %v1788_v15  ;;  %5004 = vpow2.f32 %v1728_v5 }
 0x4c8   : > { %v1833_v42 = vsel %vm1559_vm2, %v6639_v61, 0.0  ;;  %v6644_v14 = vpop.eup %4992 }
 0x4c9   : > { %1834 = vadd.xlane.f32.xlu0 %v1833_v42  ;;  %v1809_v1 = vsel %vm1559_vm2, %v6644_v14, 0.0 }
 0x4cb   : > { %v6648_v36 = vpop.eup %4994  ;;  %1807 = vadd.xlane.f32.xlu1 %v1806_v16  ;;  %v6678_v16 = vpop.permute.xlu0 %2543 }
 0x4cc   : > { %v1827_v58 = vsel %vm1559_vm2, %v6648_v36, 0.0  ;;  %v6655_v19 = vpop.eup %4996 }
 0x4cd   : > { %1828 = vadd.xlane.f32.xlu0 %v1827_v58  ;;  %v1830_v4 = vsel %vm1559_vm2, %v6655_v19, 0.0  ;;  %v6659_v39 = vpop.eup %4998 }
 0x4ce   : > { %v1803_v6 = vsel %vm1559_vm2, %v6659_v39, 0.0  ;;  %v6663_v49 = vpop.eup %5000 }
 0x4cf   : > { %1810 = vadd.xlane.f32.xlu1 %v1809_v1  ;;  %v1824_v0 = vsel %vm1559_vm2, %v6663_v49, 0.0  ;;  %v6667_v10 = vpop.eup %5002 }
 0x4d0   : > { %7732 = vst [vmem:[#allocation27_spill] sm:$0xff] %v6667_v10  ;;  %v1818_v50 = vsel %vm1559_vm2, %v6667_v10, 0.0 }
 0x4d1   : > { %v6671_v15 = vpop.eup %5004 }
 0x4d2   : > { %v1812_v42 = vsel %vm1559_vm2, %v6671_v15, 0.0 }
 0x4d3   : > { %1831 = vadd.xlane.f32.xlu1 %v1830_v4 }
 0x4d7   : > { %1804 = vadd.xlane.f32.xlu1 %v1803_v6 }
 0x4db   : > { %1825 = vadd.xlane.f32.xlu1 %v1824_v0 }
 0x4df   : > { %1819 = vadd.xlane.f32.xlu1 %v1818_v50 }
 0x4e3   : > { %1813 = vadd.xlane.f32.xlu1 %v1812_v42 }
 0x4f1   : > { %v1631_v59 = vpop.xlane.xlu1 %1630 }
 0x4f2   : > { %v1679_v48 = vsub.f32 %v6437_v12, %v1631_v59 }
 0x4f4   : > { %v1734_v58 = vmul.f32 1.442695, %v1679_v48 }
 0x4f5   : > { %v1625_v8 = vpop.xlane.xlu1 %1624 }
 0x4f6   : > { %5006 = vpow2.f32 %v1734_v58  ;;  %v1677_v18 = vsub.f32 %v6442_v9, %v1625_v8 }
 0x4f7   : > { %v1652_v1 = vpop.xlane.xlu0 %1651 }
 0x4f8   : > { %v1730_v5 = vmul.f32 1.442695, %v1677_v18  ;;  %v1686_v4 = vsub.f32 %v6485_v38, %v1652_v1 }
 0x4f9   : > { %v1655_v38 = vpop.xlane.xlu1 %1654 }
 0x4fa   : > { %5008 = vpow2.f32 %v1730_v5  ;;  %v1748_v6 = vmul.f32 1.442695, %v1686_v4  ;;  %v1687_v5 = vsub.f32 %v6496_v7, %v1655_v38 }
 0x4fb   : > { %v1646_v58 = vpop.xlane.xlu0 %1645 }
 0x4fc   : > { %5010 = vpow2.f32 %v1748_v6  ;;  %v1684_v18 = vsub.f32 %v6490_v26, %v1646_v58 }
 0x4fd   : > { %v1649_v48 = vpop.xlane.xlu1 %1648 }
 0x4fe   : > { %v1685_v8 = vsub.f32 %v6501_v34, %v1649_v48  ;;  %v1744_v4 = vmul.f32 1.442695, %v1684_v18 }
 0x500   : > { %v6682_v0 = vpop.eup %5006  ;;  %v1746_v1 = vmul.f32 1.442695, %v1685_v8 }
 0x501   : > { %v1821_v50 = vsel %vm1559_vm2, %v6682_v0, 0.0 }
 0x502   : > { %1822 = vadd.xlane.f32.xlu1 %v1821_v50  ;;  %5012 = vpow2.f32 %v1746_v1  ;;  %v1750_v50 = vmul.f32 1.442695, %v1687_v5 }
 0x503   : > { %5014 = vpow2.f32 %v1744_v4 }
 0x504   : > { %v6686_v12 = vpop.eup %5008  ;;  %5016 = vpow2.f32 %v1750_v50 }
 0x505   : > { %v1815_v42 = vsel %vm1559_vm2, %v6686_v12, 0.0 }
 0x506   : > { %v6690_v59 = vpop.eup %5010  ;;  %1816 = vadd.xlane.f32.xlu0 %v1815_v42 }
 0x507   : > { %7734 = vst [vmem:[#allocation29_spill] sm:$0xff] %v6690_v59  ;;  %v1842_v9 = vsel %vm1559_vm2, %v6690_v59, 0.0 }
 0x508   : > { %1843 = vadd.xlane.f32.xlu1 %v1842_v9 }
 0x50c   : > { %v6701_v57 = vpop.eup %5012 }
 0x50d   : > { %7735 = vst [vmem:[#allocation30_spill] sm:$0xff] %v6701_v57  ;;  %v6703_v48 = vpop.eup %5014  ;;  %v1839_v26 = vsel %vm1559_vm2, %v6701_v57, 0.0 }
 0x50e   : > { %7736 = vst [vmem:[#allocation31_spill] sm:$0xff] %v6703_v48  ;;  %v1836_v38 = vsel %vm1559_vm2, %v6703_v48, 0.0  ;;  %v6709_v58 = vpop.eup %5016 }
 0x50f   : > { %v1845_v1 = vsel %vm1559_vm2, %v6709_v58, 0.0 }
 0x519   : > { %2444 = vrot.lane.b32.xlu1 %v6176_v35, %s5409_s17 }
 0x51c   : > { %2331 = vrot.lane.b32.xlu0 %v6173_v30, %s5410_s15 }
 0x520   : > { %v1760_v6 = vpop.xlane.xlu0 %1759 }
 0x524   : > { %v1754_v9 = vpop.xlane.xlu0 %1753 }
 0x528   : > { %v1763_v42 = vpop.xlane.xlu1 %1762 }
 0x529   : > { %5018 = vrcp.f32 %v1763_v42 }
 0x52a   : > { %5020 = vrcp.f32 %v1754_v9 }
 0x52b   : > { %5022 = vrcp.f32 %v1760_v6 }
 0x533   : > { %v5019_v8 = vpop.eup %5018 }
 0x534   : > { %v1784_v59 = vpop.xlane.xlu1 %1783  ;;  %v5021_v5 = vpop.eup %5020  ;;  %v1915_v50 = vmul.f32 %v5019_v8, %v6558_v51 }
 0x535   : > { %v5023_v4 = vpop.eup %5022 }
 0x536   : > { %v1914_v57 = vmul.f32 %v5023_v4, %v6548_v13 }
 0x538   : > { %v1757_v34 = vpop.xlane.xlu1 %1756  ;;  %v1945_v48 = vpack.c.bf16 %v1915_v50, %v1914_v57 }
 0x539   : > { %5024 = vrcp.f32 %v1757_v34  ;;  %v1912_v34 = vmul.f32 %v5021_v5, %v6552_v37 }
 0x53b   : > { %1840 = vadd.xlane.f32.xlu0 %v1839_v26 }
 0x53c   : > { %v1778_v7 = vpop.xlane.xlu1 %1777  ;;  %v1772_v42 = vpop.xlane.xlu0 %1771 }
 0x53d   : > { %1837 = vadd.xlane.f32.xlu1 %v1836_v38  ;;  %5026 = vrcp.f32 %v1778_v7 }
 0x540   : > { %v1787_v18 = vpop.xlane.xlu1 %1786 }
 0x541   : > { %1846 = vadd.xlane.f32.xlu1 %v1845_v1  ;;  %v1766_v1 = vpop.xlane.xlu0 %1765 }
 0x542   : > { %5028 = vrcp.f32 %v1766_v1 }
 0x543   : > { %v5025_v6 = vpop.eup %5024 }
 0x544   : > { %v1781_v9 = vpop.xlane.xlu1 %1780  ;;  %v1913_v26 = vmul.f32 %v5025_v6, %v6572_v20 }
 0x546   : > { %v1944_v38 = vpack.c.bf16 %v1913_v26, %v1912_v34  ;;  %v1799_v13 = vpop.xlane.xlu0 %1798 }
 0x548   : > { %v1775_v10 = vpop.xlane.xlu1 %1774  ;;  %4475 = vmatprep.mubr.msk.bf16.mxu0 %vm1559_vm2, %v1944_v38 }
 0x549   : > { %4476 = vmatmul.mubr.msk.bf16.vlgmr.msra.gmra.mrb[48].mxu0 %vm1559_vm2, %v1945_v48  ;;  %5030 = vrcp.f32 %v1775_v10 }
 0x54a   : > { %4484 = vmatpush3.bf16.msra.mxu0 %v6319_v52  ;;  %5032 = vrcp.f32 %v1781_v9  ;;  %v1793_v20 = vpop.xlane.xlu0 %1792 }
 0x54b   : > { %4485 = vmatprep.subr.bf16.mxu0 %v6323_v33  ;;  %5034 = vrcp.f32 %v1772_v42 }
 0x54c   : > { %v1796_v51 = vpop.xlane.xlu1 %1795 }
 0x54e   : > { %4486 = vmatpush3.bf16.msra.mxu0 %v6323_v33  ;;  %v5027_v33 = vpop.eup %5026 }
 0x54f   : > { %4487 = vmatprep.subr.bf16.mxu0 %v6327_v21  ;;  %v5029_v10 = vpop.eup %5028 }
 0x550   : > { %v1769_v37 = vpop.xlane.xlu1 %1768  ;;  %v1802_v8 = vpop.xlane.xlu0 %1801 }
 0x551   : > { %5036 = vrcp.f32 %v1769_v37  ;;  %2545 = vrot.lane.b32.xlu0 %v6199_v43, %s5409_s17 }
 0x552   : > { %4488 = vmatpush3.bf16.msra.mxu0 %v6327_v21  ;;  %2430 = vrot.lane.b32.xlu1 %v6140_v47, %s5410_s15  ;;  %5038 = vrcp.f32 %v1787_v18 }
 0x553   : > { %4489 = vmatprep.subr.bf16.mxu0 %v6331_v63  ;;  %5040 = vrcp.f32 %v1784_v59  ;;  %v5031_v21 = vpop.eup %5030  ;;  %v1916_v59 = vmul.f32 %v5029_v10, %v6590_v25 }
 0x554   : > { %v1790_v52 = vpop.xlane.xlu1 %1789  ;;  %v5033_v48 = vpop.eup %5032  ;;  %v1919_v18 = vmul.f32 %v5031_v21, %v6601_v40  ;;  %v1920_v40 = vmul.f32 %v5027_v33, %v6578_v3 }
 0x555   : > { %2432 = vrot.lane.b32.xlu0 %v6154_v27, %s5410_s15  ;;  %5042 = vrcp.f32 %v1790_v52  ;;  %v5035_v7 = vpop.eup %5034  ;;  %v1921_v6 = vmul.f32 %v5033_v48, %v6597_v32 }
 0x556   : > { %4490 = vmatpush3.bf16.msra.mxu0 %v6331_v63  ;;  %2547 = vrot.lane.b32.xlu1 %v6211_v24, %s5409_s17  ;;  %5044 = vrcp.f32 %v1793_v20  ;;  %v1918_v50 = vmul.f32 %v5035_v7, %v6580_v60  ;;  %v1835_v42 = vpop.xlane.xlu0 %1834 }
 0x557   : > { %4515 = vmatprep.subr.bf16.mxu0 %v6509_v46  ;;  %5046 = vrcp.f32 %v1796_v51  ;;  %v1948_v32 = vpack.c.bf16 %v1921_v6, %v1920_v40  ;;  %v7740_v40 = vld [vmem:[#allocation16_spill] sm:$0xff] }
 0x558   : > { %v1808_v57 = vpop.xlane.xlu1 %1807  ;;  %v1947_v34 = vpack.c.bf16 %v1919_v18, %v1918_v50  ;;  %5048 = vrcp.f32 %v1799_v13 }
 0x559   : > { %2648 = vrot.lane.b32.xlu0 %v6190_v17, %s5409_s17 }
 0x55a   : > { %2434 = vrot.lane.b32.xlu1 %v6164_v44, %s5410_s15  ;;  %v1829_v1 = vpop.xlane.xlu0 %1828 }
 0x55b   : > { %v5037_v63 = vpop.eup %5036 }
 0x55c   : > { %v1811_v5 = vpop.xlane.xlu1 %1810  ;;  %v1917_v4 = vmul.f32 %v5037_v63, %v6623_v54  ;;  %v5039_v26 = vpop.eup %5038  ;;  %v7738_v63 = vld [vmem:[#allocation17_spill] sm:$0xff] }
 0x55d   : > { %2436 = vrot.lane.b32.xlu0 %v6176_v35, %s5410_s15  ;;  %v5041_v54 = vpop.eup %5040  ;;  %5050 = vrcp.f32 %v1811_v5  ;;  %v1923_v3 = vmul.f32 %v5039_v26, %v6588_v29 }
 0x55e   : > { %2549 = vrot.lane.b32.xlu1 %v6223_v56, %s5409_s17  ;;  %v1946_v9 = vpack.c.bf16 %v1917_v4, %v1916_v59  ;;  %5052 = vrcp.f32 %v1802_v8  ;;  %v1922_v13 = vmul.f32 %v5041_v54, %v6568_v28 }
 0x55f   : > { %v5043_v60 = vpop.eup %5042  ;;  %5054 = vrcp.f32 %v1808_v57  ;;  %v7737_v57 = vld [vmem:[#allocation15_spill] sm:$0xff] }
 0x560   : > { %v1832_v25 = vpop.xlane.xlu1 %1831  ;;  %4479 = vmatprep.mubr.msk.bf16.mxu0 %vm1559_vm2, %v1946_v9  ;;  %v5045_v38 = vpop.eup %5044  ;;  %v1924_v37 = vmul.f32 %v5043_v60, %v6632_v41  ;;  %v1949_v52 = vpack.c.bf16 %v1923_v3, %v1922_v13  ;;  %v7746_v60 = vld [vmem:[#allocation19_spill] sm:$0xff] }
 0x561   : > { %2650 = vrot.lane.b32.xlu0 %v6202_v53, %s5409_s17  ;;  %4480 = vmatmul.mubr.msk.bf16.gmra.mrb[52].mxu0 %vm1559_vm2, %v1947_v34  ;;  %v1925_v29 = vmul.f32 %v5045_v38, %v6615_v22  ;;  %v5047_v33 = vpop.eup %5046  ;;  %v2354_v34 = vsel %vm1166_vm1, %v7740_v40, 0  ;;  %v7747_v38 = vld [vmem:[#allocation21_spill] sm:$0xff] }
 0x562   : > { %2535 = vrot.lane.b32.xlu1 %v6187_v55, %s5410_s15  ;;  %4491 = vmatprep.mubr.msk.bf16.mxu0 %vm1559_vm2, %v1948_v32  ;;  %v5049_v10 = vpop.eup %5048  ;;  %v1926_v22 = vmul.f32 %v5047_v33, %v6611_v2  ;;  %v7745_v32 = vld [vmem:[#allocation14_spill] sm:$0xff] }
 0x563   : > { %v1950_v28 = vpack.c.bf16 %v1925_v29, %v1924_v37  ;;  %v1927_v48 = vmul.f32 %v5049_v10, %v6605_v11 }
 0x564   : > { %v1805_v51 = vpop.xlane.xlu1 %1804 }
 0x565   : > { %5056 = vrcp.f32 %v1805_v51  ;;  %2537 = vrot.lane.b32.xlu0 %v6199_v43, %s5410_s15  ;;  %v1951_v18 = vpack.c.bf16 %v1927_v48, %v1926_v22  ;;  %v7749_v51 = vld [vmem:[#allocation25_spill] sm:$0xff] }
 0x566   : > { %5058 = vrcp.f32 %v1832_v25  ;;  %2652 = vrot.lane.b32.xlu1 %v6214_v62, %s5409_s17  ;;  %v7744_v25 = vld [vmem:[#allocation12_spill] sm:$0xff] }
 0x567   : > { %5060 = vrcp.f32 %v1829_v1  ;;  %v5051_v41 = vpop.eup %5050  ;;  %v7748_v1 = vld [vmem:[#allocation22_spill] sm:$0xff] }
 0x568   : > { %5062 = vrcp.f32 %v1835_v42  ;;  %v1826_v20 = vpop.xlane.xlu1 %1825  ;;  %v5053_v21 = vpop.eup %5052  ;;  %v1931_v8 = vmul.f32 %v5051_v41, %v6644_v14  ;;  %v7750_v41 = vld [vmem:[#allocation27_spill] sm:$0xff] }
 0x569   : > { %5064 = vrcp.f32 %v1826_v20  ;;  %2539 = vrot.lane.b32.xlu0 %v6211_v24, %s5410_s15  ;;  %4492 = vmatmul.mubr.msk.bf16.vlgmr.msra.gmra.mrb[56].mxu0 %vm1559_vm2, %v1949_v52  ;;  %v5055_v7 = vpop.eup %5054  ;;  %v1928_v5 = vmul.f32 %v5053_v21, %v6625_v23 }
 0x56a   : > { %4516 = vmatpush3.bf16.msra.mxu0 %v6509_v46  ;;  %2541 = vrot.lane.b32.xlu1 %v6223_v56, %s5410_s15  ;;  %v1930_v11 = vmul.f32 %v5055_v7, %v6635_v45 }
 0x56b   : > { %4495 = vmatprep.mubr.msk.bf16.mxu0 %vm1559_vm2, %v1950_v28  ;;  %4517 = vmatprep.subr.bf16.mxu0 %v6513_v31 }
 0x56c   : > { %v1953_v50 = vpack.c.bf16 %v1931_v8, %v1930_v11  ;;  %v7752_v8 = vld [vmem:[#allocation23_spill] sm:$0xff] }
 0x56d   : > { %2654 = vrot.lane.b32.xlu0 %v7737_v57, %s5409_s17  ;;  %s7498_s17 = scalar_lea.vmem [#allocation8], %s4088_s16  ;;  %s4202_s16 = sshll.u32 %s5482_s9, 12 }
 0x56e   : > { %4518 = vmatpush3.bf16.msra.mxu0 %v6513_v31  ;;  %2640 = vrot.lane.b32.xlu1 %v6190_v17, %s5410_s15  ;;  %s7620_s13 = scalar_lea.hbm %s7681_s8, %s4202_s16 }
 0x56f   : > { %v5057_v46 = vpop.eup %5056  ;;  %4519 = vmatprep.subr.bf16.mxu0 %v7738_v63 }
 0x570   : > { %v5059_v2 = vpop.eup %5058  ;;  %v1929_v59 = vmul.f32 %v5057_v46, %v6659_v39  ;;  %v7739_v39 = vld [vmem:[#allocation26_spill] sm:$0xff]  ;;  %v7751_v46 = vld [vmem:[#allocation24_spill] sm:$0xff] }
 0x571   : > { %v5061_v4 = vpop.eup %5060  ;;  %2642 = vrot.lane.b32.xlu0 %v6202_v53, %s5410_s15  ;;  %4496 = vmatmul.mubr.msk.bf16.gmra.mrb[60].mxu0 %vm1559_vm2, %v1951_v18  ;;  %v1938_v23 = vmul.f32 %v5059_v2, %v6655_v19 }
 0x572   : > { %v5063_v31 = vpop.eup %5062  ;;  %4520 = vmatpush3.bf16.msra.mxu0 %v7738_v63  ;;  %2644 = vrot.lane.b32.xlu1 %v6214_v62, %s5410_s15  ;;  %v1952_v14 = vpack.c.bf16 %v1929_v59, %v1928_v5  ;;  %v1937_v42 = vmul.f32 %v5061_v4, %v6648_v36  ;;  %v7742_v36 = vld [vmem:[#allocation18_spill] sm:$0xff] }
 0x573   : > { %v5065_v6 = vpop.eup %5064  ;;  %4521 = vmatprep.subr.bf16.mxu0 %v7739_v39  ;;  %v1939_v9 = vmul.f32 %v5063_v31, %v6639_v61  ;;  %v7743_v61 = vld [vmem:[#allocation20_spill] sm:$0xff]  ;;  %v2357_v54 = vsel %vm1166_vm1, %v7742_v36, 0 }
 0x574   : > { %4507 = vmatprep.mubr.msk.bf16.mxu1 %vm1559_vm2, %v1952_v14  ;;  %v1936_v45 = vmul.f32 %v5065_v6, %v6663_v49  ;;  %v7741_v49 = vld [vmem:[#allocation13_spill] sm:$0xff]  ;;  %v2459_v3 = vsel %vm1166_vm1, %v7743_v61, 0 }
 0x575   : > { %2646 = vrot.lane.b32.xlu0 %v7737_v57, %s5410_s15  ;;  %4508 = vmatmul.mubr.msk.bf16.vlgmr.msra.gmra.mrb[16].mxu1 %vm1559_vm2, %v1953_v50  ;;  %v1957_v26 = vpack.c.bf16 %v1939_v9, %v1938_v23  ;;  %v7754_v50 = vld [vmem:[#allocation31_spill] sm:$0xff]  ;;  %s3987_s15 = sshll.u32 %s7498_s17, 4  ;;  %s7622_s15 = int_to_ptr.vmem [resolvable:$true] %s3987_s15 }
 0x576   : > { %4522 = vmatpush3.bf16.msra.mxu0 %v7739_v39  ;;  %4532 = vmatpush3.bf16.xpose.msra.mxu1 %v2354_v34  ;;  %v1956_v19 = vpack.c.bf16 %v1937_v42, %v1936_v45  ;;  %v7755_v39 = vld [vmem:[#allocation30_spill] sm:$0xff]  ;;  %s5328_s20 = scalar_lea.vmem %s7622_s15, 4096 }
 0x577   : > { %3147 = vrot.lane.b32.xlu1 %v7741_v49, %s5411_s11  ;;  %4712 = vmatprep.subr.msk.bf16.mxu1 %vm1166_vm1, %v7742_v36  ;;  %v7756_v49 = vld [vmem:[#allocation29_spill] sm:$0xff]  ;;  %p5329_p11 = scmp.ne.s32.totalorder %s7622_s15, %s5328_s20 }
 0x578   : > { %4715 = vmatprep.subr.msk.bf16.mxu0 %vm1166_vm1, %v7743_v61  ;;  %4523 = vmatprep.mubr.msk.bf16.mxu0 %vm1559_vm2, %v1956_v19 }
 0x579   : > { %3145 = vrot.lane.b32.xlu0 %v7744_v25, %s5411_s11  ;;  %4524 = vmatmul.mubr.msk.bf16.vlgmr.msra.gmra.mrb[64].mxu0 %vm1559_vm2, %v1957_v26  ;;  %p5330_p2 = pnand %p5329_p11, %p7797_p0 }
 0x57b   : > { %3234 = vrot.lane.b32.xlu1 %v6140_v47, %s5411_s11  ;;  %v1820_v47 = vpop.xlane.xlu1 %1819  ;;  %p5331_p3 = pneg %p5330_p2 }
 0x57d   : > { %3149 = vrot.lane.b32.xlu0 %v7745_v32, %s5411_s11 }
 0x57e   : > { %4534 = vmatpush3.bf16.xpose.msra.mxu1 %v2357_v54 }
 0x57f   : > { %3236 = vrot.lane.b32.xlu1 %v6154_v27, %s5411_s11  ;;  %4713 = vmatprep.subr.msk.bf16.mxu1 %vm1166_vm1, %v7746_v60  ;;  %v2360_v27 = vsel %vm1166_vm1, %v7746_v60, 0 }
 0x580   : > { %4548 = vmatpush3.bf16.xpose.msra.mxu0 %v2459_v3 }
 0x581   : > { %4716 = vmatprep.subr.msk.bf16.mxu0 %vm1166_vm1, %v7747_v38  ;;  %3151 = vrot.lane.b32.xlu0 %v6173_v30, %s5411_s11  ;;  %v2462_v30 = vsel %vm1166_vm1, %v7747_v38, 0 }
 0x583   : > { %3240 = vrot.lane.b32.xlu1 %v6176_v35, %s5411_s11  ;;  %v2363_v35 = vsel %vm1166_vm1, %v7748_v1, 0 }
 0x585   : > { %3238 = vrot.lane.b32.xlu0 %v6164_v44, %s5411_s11  ;;  %v1814_v44 = vpop.xlane.xlu1 %1813 }
 0x586   : > { %4536 = vmatpush3.bf16.xpose.msra.mxu1 %v2360_v27 }
 0x587   : > { %3325 = vrot.lane.b32.xlu1 %v6199_v43, %s5411_s11  ;;  %4714 = vmatprep.subr.msk.bf16.mxu1 %vm1166_vm1, %v7748_v1  ;;  %v2465_v43 = vsel %vm1166_vm1, %v7749_v51, 0 }
 0x588   : > { %4550 = vmatpush3.bf16.xpose.msra.mxu0 %v2462_v30 }
 0x589   : > { %4717 = vmatprep.subr.msk.bf16.mxu0 %vm1166_vm1, %v7749_v51  ;;  %3323 = vrot.lane.b32.xlu0 %v6187_v55, %s5411_s11 }
 0x58b   : > { %3329 = vrot.lane.b32.xlu1 %v6223_v56, %s5411_s11 }
 0x58d   : > { %3327 = vrot.lane.b32.xlu0 %v6211_v24, %s5411_s11 }
 0x58e   : > { %4538 = vmatpush3.bf16.xpose.msra.mxu1 %v2363_v35 }
 0x58f   : > { %4719 = vmatprep.subr.msk.bf16.mxu1 %vm1166_vm1, %v6678_v16  ;;  %v1823_v13 = vpop.xlane.xlu1 %1822 }
 0x590   : > { %4552 = vmatpush3.bf16.xpose.msra.mxu0 %v2465_v43  ;;  %5066 = vrcp.f32 %v1823_v13 }
 0x591   : > { %5068 = vrcp.f32 %v1814_v44 }
 0x592   : > { %5070 = vrcp.f32 %v1820_v47 }
 0x593   : > { %v1817_v55 = vpop.xlane.xlu0 %1816 }
 0x594   : > { %5072 = vrcp.f32 %v1817_v55 }
 0x595   : > { %v1844_v56 = vpop.xlane.xlu1 %1843 }
 0x599   : > { %v2445_v37 = vpop.permute.xlu1 %2444 }
 0x59a   : > { %4718 = vmatprep.subr.msk.bf16.mxu0 %vm1166_vm1, %v2445_v37  ;;  %v2468_v24 = vsel %vm1166_vm1, %v2445_v37, 0  ;;  %v5067_v52 = vpop.eup %5066 }
 0x59b   : > { %4554 = vmatpush3.bf16.xpose.msra.mxu0 %v2468_v24  ;;  %v5069_v29 = vpop.eup %5068  ;;  %v1935_v28 = vmul.f32 %v5067_v52, %v6682_v0  ;;  %v2564_v0 = vsel %vm1166_vm1, %v6678_v16, 0 }
 0x59c   : > { %v5071_v33 = vpop.eup %5070  ;;  %v1932_v10 = vmul.f32 %v5069_v29, %v6671_v15  ;;  %v7753_v15 = vld [vmem:[#allocation28_spill] sm:$0xff] }
 0x59d   : > { %v1934_v21 = vmul.f32 %v5071_v33, %v7750_v41 }
 0x59e   : > { %v5073_v20 = vpop.eup %5072 }
 0x59f   : > { %v1933_v22 = vmul.f32 %v5073_v20, %v6686_v12  ;;  %v1955_v7 = vpack.c.bf16 %v1935_v28, %v1934_v21  ;;  %v2332_v12 = vpop.permute.xlu0 %2331 }
 0x5a1   : > { %v1954_v48 = vpack.c.bf16 %v1933_v22, %v1932_v10 }
 0x5a3   : > { %4511 = vmatprep.mubr.msk.bf16.mxu1 %vm1559_vm2, %v1954_v48 }
 0x5a4   : > { %4512 = vmatmul.mubr.msk.bf16.gmra.mrb[20].mxu1 %vm1559_vm2, %v1955_v7 }
 0x5a5   : > { %4539 = vmatprep.mubr.msk.bf16.mxu1 %vm1166_vm1, %v7751_v46 }
 0x5ac   : > { %4540 = vmatmul.mubr.msk.bf16.vlgmr.msra.gmra.mrb[24].mxu1 %vm1166_vm1, %v7752_v8 }
 0x5ad   : > { %4564 = vmatpush3.bf16.xpose.msra.mxu1 %v2564_v0  ;;  %4543 = vmatprep.mubr.msk.bf16.mxu1 %vm1166_vm1, %v7753_v15 }
 0x5b4   : > { %4544 = vmatmul.mubr.msk.bf16.gmra.mrb[28].mxu1 %vm1166_vm1, %v2332_v12 }
 0x5c8   : > { %v1841_v63 = vpop.xlane.xlu0 %1840 }
 0x5c9   : > { %5074 = vrcp.f32 %v1841_v63 }
 0x5ca   : > { %v1838_v18 = vpop.xlane.xlu1 %1837 }
 0x5cb   : > { %5076 = vrcp.f32 %v1838_v18 }
 0x5cc   : > { %v2546_v2 = vpop.permute.xlu0 %2545  ;;  %5078 = vrcp.f32 %v1844_v56 }
 0x5cd   : > { %4720 = vmatprep.subr.msk.bf16.mxu1 %vm1166_vm1, %v2546_v2  ;;  %v2567_v5 = vsel %vm1166_vm1, %v2546_v2, 0 }
 0x5ce   : > { %v1847_v59 = vpop.xlane.xlu1 %1846  ;;  %4566 = vmatpush3.bf16.xpose.msra.mxu1 %v2567_v5 }
 0x5cf   : > { %5080 = vrcp.f32 %v1847_v59 }
 0x5d0   : > { %v2433_v16 = vpop.permute.xlu0 %2432 }
 0x5d2   : > { %v2431_v4 = vpop.permute.xlu1 %2430 }
 0x5d3   : > { %v5075_v11 = vpop.eup %5074 }
 0x5d4   : > { %v2649_v31 = vpop.permute.xlu0 %2648  ;;  %v1941_v45 = vmul.f32 %v5075_v11, %v7755_v39 }
 0x5d5   : > { %v5077_v14 = vpop.eup %5076  ;;  %4723 = vmatprep.subr.msk.bf16.mxu0 %vm1166_vm1, %v2649_v31 }
 0x5d6   : > { %v2548_v6 = vpop.permute.xlu1 %2547  ;;  %v1940_v23 = vmul.f32 %v5077_v14, %v7754_v50  ;;  %v5079_v42 = vpop.eup %5078 }
 0x5d7   : > { %4721 = vmatprep.subr.msk.bf16.mxu1 %vm1166_vm1, %v2548_v6  ;;  %v2570_v9 = vsel %vm1166_vm1, %v2548_v6, 0  ;;  %v1942_v36 = vmul.f32 %v5079_v42, %v7756_v49 }
 0x5d8   : > { %4568 = vmatpush3.bf16.xpose.msra.mxu1 %v2570_v9  ;;  %v2437_v40 = vpop.permute.xlu0 %2436  ;;  %v1958_v34 = vpack.c.bf16 %v1941_v45, %v1940_v23 }
 0x5d9   : > { %v5081_v19 = vpop.eup %5080 }
 0x5da   : > { %v2435_v26 = vpop.permute.xlu1 %2434  ;;  %4527 = vmatprep.mubr.msk.bf16.mxu0 %vm1559_vm2, %v1958_v34  ;;  %v1943_v61 = vmul.f32 %v5081_v19, %v6709_v58  ;;  %v2669_v58 = vsel %vm1166_vm1, %v2649_v31, 0  ;;  %v6962_v19 = vld [vmem:[#allocation5 + $0x50] sm:$0xff] }
 0x5dc   : > { %v2651_v25 = vpop.permute.xlu0 %2650  ;;  %v1959_v32 = vpack.c.bf16 %v1943_v61, %v1942_v36 }
 0x5dd   : > { %v2672_v35 = vsel %vm1166_vm1, %v2651_v25, 0 }
 0x5de   : > { %v2550_v54 = vpop.permute.xlu1 %2549  ;;  %4528 = vmatmul.mubr.msk.bf16.gmra.mrb[68].mxu0 %vm1559_vm2, %v1959_v32  ;;  %v6971_v32 = vld [vmem:[#allocation5 + $0x48] sm:$0xff] }
 0x5df   : > { %4555 = vmatprep.mubr.msk.bf16.mxu0 %vm1166_vm1, %v2431_v4  ;;  %4722 = vmatprep.subr.msk.bf16.mxu1 %vm1166_vm1, %v2550_v54  ;;  %v2573_v60 = vsel %vm1166_vm1, %v2550_v54, 0 }
 0x5e0   : > { %4570 = vmatpush3.bf16.xpose.msra.mxu1 %v2573_v60  ;;  %v2538_v3 = vpop.permute.xlu0 %2537 }
 0x5e2   : > { %v2536_v38 = vpop.permute.xlu1 %2535 }
 0x5e3   : > { %4571 = vmatprep.mubr.msk.bf16.mxu1 %vm1166_vm1, %v2536_v38 }
 0x5e4   : > { %v2540_v47 = vpop.permute.xlu0 %2539 }
 0x5e6   : > { %v2653_v27 = vpop.permute.xlu1 %2652  ;;  %4556 = vmatmul.mubr.msk.bf16.vlgmr.msra.gmra.mrb[72].mxu0 %vm1166_vm1, %v2433_v16 }
 0x5e7   : > { %4580 = vmatpush3.bf16.xpose.msra.mxu0 %v2669_v58  ;;  %4559 = vmatprep.mubr.msk.bf16.mxu0 %vm1166_vm1, %v2435_v26  ;;  %v2675_v37 = vsel %vm1166_vm1, %v2653_v27, 0  ;;  %v6964_v26 = vld [vmem:[#allocation5 + $0x40] sm:$0xff] }
 0x5e8   : > { %4572 = vmatmul.mubr.msk.bf16.vlgmr.msra.gmra.mrb[32].mxu1 %vm1166_vm1, %v2538_v3  ;;  %4724 = vmatprep.subr.msk.bf16.mxu0 %vm1166_vm1, %v2651_v25  ;;  %v2655_v1 = vpop.permute.xlu0 %2654  ;;  %v6969_v25 = vld [vmem:[#allocation5 + $0x58] sm:$0xff] }
 0x5e9   : > { %4575 = vmatprep.mubr.msk.bf16.mxu1 %vm1166_vm1, %v2540_v47  ;;  %v2678_v29 = vsel %vm1166_vm1, %v2655_v1, 0 }
 0x5ea   : > { %v2542_v30 = vpop.permute.xlu1 %2541 }
 0x5ec   : > { %v2643_v51 = vpop.permute.xlu0 %2642 }
 0x5ee   : > { %v2641_v44 = vpop.permute.xlu1 %2640  ;;  %4560 = vmatmul.mubr.msk.bf16.gmra.mrb[76].mxu0 %vm1166_vm1, %v2437_v40 }
 0x5ef   : > { %4582 = vmatpush3.bf16.xpose.msra.mxu0 %v2672_v35  ;;  %4587 = vmatprep.mubr.msk.bf16.mxu0 %vm1166_vm1, %v2641_v44 }
 0x5f0   : > { %4576 = vmatmul.mubr.msk.bf16.gmra.mrb[36].mxu1 %vm1166_vm1, %v2542_v30  ;;  %4725 = vmatprep.subr.msk.bf16.mxu0 %vm1166_vm1, %v2653_v27  ;;  %v2647_v43 = vpop.permute.xlu0 %2646 }
 0x5f2   : > { %v2645_v13 = vpop.permute.xlu1 %2644 }
 0x5f4   : > { %v3146_v55 = vpop.permute.xlu0 %3145 }
 0x5f5   : > { %4595 = vmatprep.subr.bf16.mxu1 %v3146_v55 }
 0x5f6   : > { %v3148_v56 = vpop.permute.xlu1 %3147  ;;  %4596 = vmatpush3.bf16.msra.mxu1 %v3146_v55 }
 0x5f7   : > { %4584 = vmatpush3.bf16.xpose.msra.mxu0 %v2675_v37  ;;  %4597 = vmatprep.subr.bf16.mxu1 %v3148_v56 }
 0x5f8   : > { %4726 = vmatprep.subr.msk.bf16.mxu0 %vm1166_vm1, %v2655_v1  ;;  %v3150_v24 = vpop.permute.xlu0 %3149 }
 0x5fa   : > { %4598 = vmatpush3.bf16.msra.mxu1 %v3148_v56  ;;  %v3235_v33 = vpop.permute.xlu1 %3234 }
 0x5fb   : > { %4599 = vmatprep.subr.bf16.mxu1 %v3150_v24 }
 0x5fc   : > { %v3152_v52 = vpop.permute.xlu0 %3151 }
 0x5fe   : > { %4600 = vmatpush3.bf16.msra.mxu1 %v3150_v24  ;;  %v3237_v10 = vpop.permute.xlu1 %3236 }
 0x5ff   : > { %4586 = vmatpush3.bf16.xpose.msra.mxu0 %v2678_v29  ;;  %4601 = vmatprep.subr.bf16.mxu1 %v3152_v52 }
 0x600   : > { %4611 = vmatprep.subr.bf16.mxu0 %v3235_v33  ;;  %v3239_v20 = vpop.permute.xlu0 %3238 }
 0x602   : > { %4602 = vmatpush3.bf16.msra.mxu1 %v3152_v52  ;;  %v3241_v22 = vpop.permute.xlu1 %3240 }
 0x604   : > { %v6900_v28 = vpop.permute.xlu0 %3323 }
 0x605   : > { %4627 = vmatprep.subr.bf16.mxu1 %v6900_v28 }
 0x606   : > { %4588 = vmatmul.mubr.msk.bf16.vlgmr.msra.gmra.mrb[80].mxu0 %vm1166_vm1, %v2643_v51 }
 0x607   : > { %4591 = vmatprep.mubr.msk.bf16.mxu0 %vm1166_vm1, %v2645_v13  ;;  %4612 = vmatpush3.bf16.msra.mxu0 %v3235_v33 }
 0x608   : > { %4613 = vmatprep.subr.bf16.mxu0 %v3237_v10 }
 0x60b   : > { %4614 = vmatpush3.bf16.msra.mxu0 %v3237_v10 }
 0x60c   : > { %4615 = vmatprep.subr.bf16.mxu0 %v3239_v20 }
 0x60e   : > { %4592 = vmatmul.mubr.msk.bf16.gmra.mrb[84].mxu0 %vm1166_vm1, %v2647_v43 }
 0x60f   : > { %4616 = vmatpush3.bf16.msra.mxu0 %v3239_v20 }
 0x610   : > { %4617 = vmatprep.subr.bf16.mxu0 %v3241_v22 }
 0x613   : > { %4618 = vmatpush3.bf16.msra.mxu0 %v3241_v22 }
 0x61c   : > { %v6906_v41 = vpop.f32.mrb[48].mxu0 }
 0x61d   : > { %v6908_v21 = vpop.f32.mrb[49].mxu0 }
 0x61e   : > { %v6910_v48 = vpop.f32.mrb[50].mxu0 }
 0x61f   : > { %v6912_v7 = vpop.f32.mrb[51].mxu0 }
 0x634   : > { %v6914_v46 = vpop.f32.mrb[52].mxu0 }
 0x635   : > { %v6916_v8 = vpop.f32.mrb[53].mxu0 }
 0x636   : > { %v6918_v0 = vpop.f32.mrb[54].mxu0 }
 0x637   : > { %v6920_v15 = vpop.f32.mrb[55].mxu0 }
 0x63c   : > { %v6922_v12 = vpop.f32.mrb[56].mxu0 }
 0x63d   : > { %v6924_v63 = vpop.f32.mrb[57].mxu0 }
 0x63e   : > { %v6926_v18 = vpop.f32.mrb[58].mxu0 }
 0x63f   : > { %v6928_v2 = vpop.f32.mrb[59].mxu0 }
 0x644   : > { %v6930_v5 = vpop.f32.mrb[60].mxu0 }
 0x645   : > { %7757 = vst [vmem:[#allocation15_spill] sm:$0xff] %v6930_v5  ;;  %v6932_v59 = vpop.f32.mrb[61].mxu0 }
 0x646   : > { %7758 = vst [vmem:[#allocation17_spill] sm:$0xff] %v6932_v59  ;;  %v6934_v16 = vpop.f32.mrb[62].mxu0 }
 0x647   : > { %7759 = vst [vmem:[#allocation26_spill] sm:$0xff] %v6934_v16  ;;  %v6936_v4 = vpop.f32.mrb[63].mxu0 }
 0x648   : > { %7760 = vst [vmem:[#allocation16_spill] sm:$0xff] %v6936_v4  ;;  %v6938_v11 = vpop.f32.mrb[16].mxu1 }
 0x649   : > { %7761 = vst [vmem:[#allocation13_spill] sm:$0xff] %v6938_v11  ;;  %v6940_v31 = vpop.f32.mrb[17].mxu1 }
 0x64a   : > { %7762 = vst [vmem:[#allocation18_spill] sm:$0xff] %v6940_v31  ;;  %v6942_v14 = vpop.f32.mrb[18].mxu1 }
 0x64b   : > { %7763 = vst [vmem:[#allocation20_spill] sm:$0xff] %v6942_v14  ;;  %v6944_v6 = vpop.f32.mrb[19].mxu1 }
 0x64c   : > { %7764 = vst [vmem:[#allocation12_spill] sm:$0xff] %v6944_v6  ;;  %v6946_v50 = vpop.f32.mrb[64].mxu0 }
 0x64d   : > { %7765 = vst [vmem:[#allocation14_spill] sm:$0xff] %v6946_v50  ;;  %v6948_v23 = vpop.f32.mrb[65].mxu0 }
 0x64e   : > { %7766 = vst [vmem:[#allocation19_spill] sm:$0xff] %v6948_v23  ;;  %v6950_v39 = vpop.f32.mrb[66].mxu0 }
 0x64f   : > { %7767 = vst [vmem:[#allocation21_spill] sm:$0xff] %v6950_v39  ;;  %v6952_v45 = vpop.f32.mrb[67].mxu0 }
 0x650   : > { %7768 = vst [vmem:[#allocation22_spill] sm:$0xff] %v6952_v45 }
 0x677   : > { %v6954_v42 = vpop.f32.mrb[20].mxu1 }
 0x678   : > { %7769 = vst [vmem:[#allocation25_spill] sm:$0xff] %v6954_v42  ;;  %v6956_v9 = vpop.f32.mrb[21].mxu1 }
 0x679   : > { %7770 = vst [vmem:[#allocation27_spill] sm:$0xff] %v6956_v9  ;;  %v6958_v40 = vpop.f32.mrb[22].mxu1 }
 0x67a   : > { %7771 = vst [vmem:[#allocation24_spill] sm:$0xff] %v6958_v40  ;;  %v6960_v34 = vpop.f32.mrb[23].mxu1 }
 0x67b   : > { %7772 = vst [vmem:[#allocation23_spill] sm:$0xff] %v6960_v34 }
 0x67f   : > { %v4541_v49 = vpop.f32.mrb[24].mxu1 }
 0x680   : > { %v6967_v36 = vadd.f32 %v4541_v49, %v6962_v19  ;;  %v2399_v61 = vpop.f32.mrb[25].mxu1 }
 0x681   : > { %v6974_v54 = vadd.f32 %v2399_v61, %v6964_v26  ;;  %v4542_v60 = vpop.f32.mrb[26].mxu1 }
 0x682   : > { %v2402_v3 = vpop.f32.mrb[27].mxu1  ;;  %v2751_v38 = vsel %vm1559_vm2, %v6967_v36, -inf  ;;  %v6979_v47 = vadd.f32 %v4542_v60, %v6969_v25 }
 0x683   : > { %v6982_v27 = vadd.f32 %v2402_v3, %v6971_v32  ;;  %2752 = vmax.xlane.f32.xlu0 %v2751_v38  ;;  %v2745_v58 = vsel %vm1559_vm2, %v6974_v54, -inf  ;;  %v7009_v3 = vld [vmem:[#allocation5 + $0x70] sm:$0xff] }
 0x684   : > { %2746 = vmax.xlane.f32.xlu1 %v2745_v58  ;;  %v2754_v51 = vsel %vm1559_vm2, %v6979_v47, -inf }
 0x685   : > { %v2748_v1 = vsel %vm1559_vm2, %v6982_v27, -inf }
 0x687   : > { %2749 = vmax.xlane.f32.xlu0 %v2748_v1  ;;  %v4545_v30 = vpop.f32.mrb[28].mxu1 }
 0x688   : > { %2755 = vmax.xlane.f32.xlu1 %v2754_v51  ;;  %v2415_v44 = vpop.f32.mrb[29].mxu1 }
 0x689   : > { %v4546_v35 = vpop.f32.mrb[30].mxu1 }
 0x68a   : > { %v2418_v43 = vpop.f32.mrb[31].mxu1 }
 0x6b1   : > { %v6990_v13 = vpop.f32.mrb[68].mxu0 }
 0x6b2   : > { %7773 = vst [vmem:[#allocation28_spill] sm:$0xff] %v6990_v13  ;;  %v6992_v55 = vpop.f32.mrb[69].mxu0 }
 0x6b3   : > { %7774 = vst [vmem:[#allocation31_spill] sm:$0xff] %v6992_v55  ;;  %v6994_v56 = vpop.f32.mrb[70].mxu0  ;;  %v7023_v55 = vld [vmem:[#allocation5 + $0x60] sm:$0xff] }
 0x6b4   : > { %7775 = vst [vmem:[#allocation30_spill] sm:$0xff] %v6994_v56  ;;  %v6996_v37 = vpop.f32.mrb[71].mxu0  ;;  %v7030_v56 = vld [vmem:[#allocation5 + $0x68] sm:$0xff]  ;;  %v7033_v23 = vadd.f32 %v2415_v44, %v7023_v55 }
 0x6b5   : > { %7776 = vst [vmem:[#allocation29_spill] sm:$0xff] %v6996_v37 }
 0x6b6   : > { %v2757_v44 = vsel %vm1559_vm2, %v7033_v23, -inf }
 0x6b9   : > { %v4557_v24 = vpop.f32.mrb[72].mxu0 }
 0x6ba   : > { %v6999_v52 = vadd.f32 %v4557_v24, %v6962_v19  ;;  %v2504_v29 = vpop.f32.mrb[73].mxu0  ;;  %v7016_v24 = vld [vmem:[#allocation5 + $0x78] sm:$0xff] }
 0x6bb   : > { %v4573_v33 = vpop.f32.mrb[32].mxu1  ;;  %v4558_v20 = vpop.f32.mrb[74].mxu0  ;;  %v7002_v10 = vadd.f32 %v2504_v29, %v6964_v26  ;;  %v7019_v29 = vadd.f32 %v4545_v30, %v7009_v3 }
 0x6bc   : > { %v7005_v22 = vadd.f32 %v4558_v20, %v6969_v25  ;;  %v2609_v49 = vpop.f32.mrb[33].mxu1  ;;  %v2507_v61 = vpop.f32.mrb[75].mxu0  ;;  %v2775_v60 = vsel %vm1559_vm2, %v6999_v52, -inf }
 0x6bd   : > { %v4574_v38 = vpop.f32.mrb[34].mxu1  ;;  %2776 = vmax.xlane.f32.xlu0 %v2775_v60  ;;  %v7012_v58 = vadd.f32 %v2507_v61, %v6971_v32  ;;  %v2769_v20 = vsel %vm1559_vm2, %v7002_v10, -inf  ;;  %v7026_v61 = vadd.f32 %v4546_v35, %v7016_v24  ;;  %v7038_v35 = vadd.f32 %v2418_v43, %v7030_v56 }
 0x6be   : > { %v2612_v1 = vpop.f32.mrb[35].mxu1  ;;  %v2778_v51 = vsel %vm1559_vm2, %v7005_v22, -inf }
 0x6bf   : > { %2779 = vmax.xlane.f32.xlu1 %v2778_v51  ;;  %v2772_v13 = vsel %vm1559_vm2, %v7012_v58, -inf  ;;  %v2766_v34 = vsel %vm1559_vm2, %v7026_v61, -inf }
 0x6c1   : > { %2770 = vmax.xlane.f32.xlu0 %v2769_v20  ;;  %v4561_v60 = vpop.f32.mrb[76].mxu0  ;;  %v2763_v20 = vsel %vm1559_vm2, %v7019_v29, -inf }
 0x6c2   : > { %v2520_v37 = vpop.f32.mrb[77].mxu0 }
 0x6c3   : > { %v4577_v51 = vpop.f32.mrb[36].mxu1  ;;  %2773 = vmax.xlane.f32.xlu1 %v2772_v13  ;;  %v4562_v30 = vpop.f32.mrb[78].mxu0  ;;  %v7043_v13 = vadd.f32 %v4561_v60, %v7009_v3  ;;  %v7053_v43 = vadd.f32 %v2520_v37, %v7023_v55  ;;  %v7068_v37 = vadd.f32 %v4574_v38, %v6969_v25 }
 0x6c4   : > { %v2625_v45 = vpop.f32.mrb[37].mxu1  ;;  %v2523_v50 = vpop.f32.mrb[79].mxu0  ;;  %v7048_v42 = vadd.f32 %v4562_v30, %v7016_v24  ;;  %v7063_v30 = vadd.f32 %v4573_v33, %v6962_v19  ;;  %v7078_v33 = vadd.f32 %v2612_v1, %v6971_v32 }
 0x6c5   : > { %v4578_v39 = vpop.f32.mrb[38].mxu1  ;;  %2764 = vmax.xlane.f32.xlu0 %v2763_v20  ;;  %v2760_v20 = vsel %vm1559_vm2, %v7038_v35, -inf  ;;  %v7058_v60 = vadd.f32 %v2523_v50, %v7030_v56  ;;  %v7073_v50 = vadd.f32 %v2609_v49, %v6964_v26 }
 0x6c6   : > { %v2628_v9 = vpop.f32.mrb[39].mxu1  ;;  %v2796_v31 = vsel %vm1559_vm2, %v7078_v33, -inf }
 0x6c7   : > { %2767 = vmax.xlane.f32.xlu1 %v2766_v34  ;;  %v2787_v34 = vsel %vm1559_vm2, %v7043_v13, -inf  ;;  %v2793_v38 = vsel %vm1559_vm2, %v7073_v50, -inf }
 0x6c9   : > { %2758 = vmax.xlane.f32.xlu0 %v2757_v44  ;;  %v2790_v44 = vsel %vm1559_vm2, %v7048_v42, -inf }
 0x6cb   : > { %2761 = vmax.xlane.f32.xlu1 %v2760_v20  ;;  %v2781_v20 = vsel %vm1559_vm2, %v7053_v43, -inf }
 0x6cd   : > { %2788 = vmax.xlane.f32.xlu0 %v2787_v34  ;;  %v2784_v34 = vsel %vm1559_vm2, %v7058_v60, -inf }
 0x6cf   : > { %2791 = vmax.xlane.f32.xlu1 %v2790_v44  ;;  %v2799_v44 = vsel %vm1559_vm2, %v7063_v30, -inf }
 0x6d1   : > { %2782 = vmax.xlane.f32.xlu0 %v2781_v20  ;;  %v2802_v20 = vsel %vm1559_vm2, %v7068_v37, -inf }
 0x6d3   : > { %2785 = vmax.xlane.f32.xlu1 %v2784_v34 }
 0x6d5   : > { %2800 = vmax.xlane.f32.xlu0 %v2799_v44 }
 0x6d7   : > { %2803 = vmax.xlane.f32.xlu1 %v2802_v20 }
 0x6d9   : > { %v4589_v40 = vpop.f32.mrb[80].mxu0  ;;  %2794 = vmax.xlane.f32.xlu0 %v2793_v38  ;;  %v7108_v38 = vadd.f32 %v4578_v39, %v7016_v24 }
 0x6da   : > { %v7085_v34 = vadd.f32 %v4589_v40, %v6962_v19  ;;  %v2714_v49 = vpop.f32.mrb[81].mxu0 }
 0x6db   : > { %v4590_v44 = vpop.f32.mrb[82].mxu0  ;;  %2797 = vmax.xlane.f32.xlu1 %v2796_v31  ;;  %v7090_v1 = vadd.f32 %v2714_v49, %v6964_v26  ;;  %v7103_v31 = vadd.f32 %v4577_v51, %v7009_v3  ;;  %v2814_v39 = vsel %vm1559_vm2, %v7108_v38, -inf }
 0x6dc   : > { %v7093_v6 = vadd.f32 %v4590_v44, %v6969_v25  ;;  %v2717_v20 = vpop.f32.mrb[83].mxu0  ;;  %v2823_v11 = vsel %vm1559_vm2, %v7085_v34, -inf  ;;  %v7113_v44 = vadd.f32 %v2625_v45, %v7023_v55 }
 0x6dd   : > { %2824 = vmax.xlane.f32.xlu0 %v2823_v11  ;;  %v7098_v40 = vadd.f32 %v2717_v20, %v6971_v32  ;;  %v2817_v26 = vsel %vm1559_vm2, %v7090_v1, -inf  ;;  %v2811_v51 = vsel %vm1559_vm2, %v7103_v31, -inf }
 0x6de   : > { %v2826_v19 = vsel %vm1559_vm2, %v7093_v6, -inf }
 0x6df   : > { %2827 = vmax.xlane.f32.xlu1 %v2826_v19  ;;  %v2820_v11 = vsel %vm1559_vm2, %v7098_v40, -inf  ;;  %v7118_v19 = vadd.f32 %v2628_v9, %v7030_v56 }
 0x6e1   : > { %v4593_v25 = vpop.f32.mrb[84].mxu0  ;;  %2818 = vmax.xlane.f32.xlu0 %v2817_v26 }
 0x6e2   : > { %v2730_v49 = vpop.f32.mrb[85].mxu0  ;;  %v7123_v26 = vadd.f32 %v4593_v25, %v7009_v3 }
 0x6e3   : > { %v4594_v32 = vpop.f32.mrb[86].mxu0  ;;  %2821 = vmax.xlane.f32.xlu1 %v2820_v11  ;;  %v2805_v11 = vsel %vm1559_vm2, %v7113_v44, -inf  ;;  %v7133_v9 = vadd.f32 %v2730_v49, %v7023_v55  ;;  %v7148_v55 = vpop.permute.xlu1 %3325 }
 0x6e4   : > { %v2733_v20 = vpop.f32.mrb[87].mxu0  ;;  %v7128_v45 = vadd.f32 %v4594_v32, %v7016_v24 }
 0x6e5   : > { %2812 = vmax.xlane.f32.xlu0 %v2811_v51  ;;  %v2808_v51 = vsel %vm1559_vm2, %v7118_v19, -inf  ;;  %v7138_v3 = vadd.f32 %v2733_v20, %v7030_v56  ;;  %v2829_v24 = vsel %vm1559_vm2, %v7133_v9, -inf  ;;  %v7152_v56 = vpop.permute.xlu0 %3327 }
 0x6e6   : > { %v2838_v25 = vsel %vm1559_vm2, %v7128_v45, -inf }
 0x6e7   : > { %2815 = vmax.xlane.f32.xlu1 %v2814_v39  ;;  %v2835_v39 = vsel %vm1559_vm2, %v7123_v26, -inf  ;;  %v2832_v32 = vsel %vm1559_vm2, %v7138_v3, -inf  ;;  %v7154_v49 = vpop.permute.xlu1 %3329 }
 0x6e9   : > { %2806 = vmax.xlane.f32.xlu0 %v2805_v11 }
 0x6eb   : > { %2809 = vmax.xlane.f32.xlu1 %v2808_v51 }
 0x6ed   : > { %2836 = vmax.xlane.f32.xlu0 %v2835_v39 }
 0x6ef   : > { %2839 = vmax.xlane.f32.xlu1 %v2838_v25 }
 0x6f1   : > { %2830 = vmax.xlane.f32.xlu0 %v2829_v24 }
 0x6f3   : > { %2833 = vmax.xlane.f32.xlu1 %v2832_v32 }
 0x704   : > { %3414 = vrot.lane.b32.xlu1 %v6202_v53, %s5411_s11 }
 0x707   : > { %3412 = vrot.lane.b32.xlu0 %v6190_v17, %s5411_s11 }
 0x710   : > { %v2753_v20 = vpop.xlane.xlu0 %2752 }
 0x711   : > { %v2843_v11 = vsub.f32 %v6967_v36, %v2753_v20  ;;  %v2747_v51 = vpop.xlane.xlu1 %2746 }
 0x712   : > { %v2841_v25 = vsub.f32 %v6974_v54, %v2747_v51 }
 0x713   : > { %v2877_v39 = vmul.f32 1.442695, %v2843_v11 }
 0x714   : > { %v2750_v24 = vpop.xlane.xlu0 %2749  ;;  %v2873_v59 = vmul.f32 1.442695, %v2841_v25 }
 0x715   : > { %v2756_v32 = vpop.xlane.xlu1 %2755  ;;  %v2842_v53 = vsub.f32 %v6982_v27, %v2750_v24  ;;  %5082 = vpow2.f32 %v2877_v39 }
 0x716   : > { %v2844_v14 = vsub.f32 %v6979_v47, %v2756_v32 }
 0x717   : > { %v2875_v4 = vmul.f32 1.442695, %v2842_v53 }
 0x718   : > { %v2879_v17 = vmul.f32 1.442695, %v2844_v14 }
 0x71a   : > { %5084 = vpow2.f32 %v2879_v17 }
 0x71b   : > { %5086 = vpow2.f32 %v2873_v59 }
 0x71c   : > { %5088 = vpow2.f32 %v2875_v4 }
 0x71f   : > { %v7160_v5 = vpop.eup %5082 }
 0x720   : > { %v2943_v54 = vsel %vm1559_vm2, %v7160_v5, 0.0 }
 0x724   : > { %v7162_v36 = vpop.eup %5084 }
 0x725   : > { %v7166_v20 = vpop.eup %5086  ;;  %v2946_v47 = vsel %vm1559_vm2, %v7162_v36, 0.0 }
 0x726   : > { %2944 = vadd.xlane.f32.xlu0 %v2943_v54  ;;  %v7170_v27 = vpop.eup %5088  ;;  %v2937_v59 = vsel %vm1559_vm2, %v7166_v20, 0.0 }
 0x727   : > { %v2940_v4 = vsel %vm1559_vm2, %v7170_v27, 0.0 }
 0x728   : > { %2947 = vadd.xlane.f32.xlu1 %v2946_v47 }
 0x72a   : > { %2938 = vadd.xlane.f32.xlu0 %v2937_v59 }
 0x72c   : > { %2941 = vadd.xlane.f32.xlu1 %v2940_v4 }
 0x74a   : > { %v2777_v14 = vpop.xlane.xlu0 %2776 }
 0x74b   : > { %v2851_v11 = vsub.f32 %v6999_v52, %v2777_v14 }
 0x74c   : > { %v2780_v51 = vpop.xlane.xlu1 %2779 }
 0x74d   : > { %v2893_v39 = vmul.f32 1.442695, %v2851_v11  ;;  %v2852_v25 = vsub.f32 %v7005_v22, %v2780_v51 }
 0x74e   : > { %v2771_v24 = vpop.xlane.xlu0 %2770 }
 0x74f   : > { %5090 = vpow2.f32 %v2893_v39  ;;  %v2849_v32 = vsub.f32 %v7002_v10, %v2771_v24  ;;  %v2895_v17 = vmul.f32 1.442695, %v2852_v25 }
 0x750   : > { %v2774_v53 = vpop.xlane.xlu1 %2773 }
 0x751   : > { %v2889_v54 = vmul.f32 1.442695, %v2849_v32  ;;  %v2850_v47 = vsub.f32 %v7012_v58, %v2774_v53 }
 0x752   : > { %v2765_v59 = vpop.xlane.xlu0 %2764 }
 0x753   : > { %5092 = vpow2.f32 %v2889_v54  ;;  %v2847_v4 = vsub.f32 %v7019_v29, %v2765_v59  ;;  %v2891_v52 = vmul.f32 1.442695, %v2850_v47 }
 0x754   : > { %v2768_v16 = vpop.xlane.xlu1 %2767  ;;  %5094 = vpow2.f32 %v2895_v17 }
 0x755   : > { %v2885_v14 = vmul.f32 1.442695, %v2847_v4  ;;  %v2848_v11 = vsub.f32 %v7026_v61, %v2768_v16 }
 0x756   : > { %v2759_v22 = vpop.xlane.xlu0 %2758 }
 0x757   : > { %5096 = vpow2.f32 %v2885_v14  ;;  %v2845_v51 = vsub.f32 %v7033_v23, %v2759_v22  ;;  %v2887_v25 = vmul.f32 1.442695, %v2848_v11 }
 0x758   : > { %v2762_v10 = vpop.xlane.xlu1 %2761  ;;  %5098 = vpow2.f32 %v2891_v52 }
 0x759   : > { %v7183_v39 = vpop.eup %5090  ;;  %v2881_v58 = vmul.f32 1.442695, %v2845_v51  ;;  %v2846_v24 = vsub.f32 %v7038_v35, %v2762_v10 }
 0x75a   : > { %v2789_v32 = vpop.xlane.xlu0 %2788  ;;  %v2967_v29 = vsel %vm1559_vm2, %v7183_v39, 0.0 }
 0x75b   : > { %5100 = vpow2.f32 %v2881_v58  ;;  %v2855_v53 = vsub.f32 %v7043_v13, %v2789_v32  ;;  %2968 = vadd.xlane.f32.xlu1 %v2967_v29  ;;  %v2883_v23 = vmul.f32 1.442695, %v2846_v24 }
 0x75c   : > { %v2792_v16 = vpop.xlane.xlu1 %2791  ;;  %5102 = vpow2.f32 %v2887_v25 }
 0x75d   : > { %v7189_v61 = vpop.eup %5092  ;;  %v2901_v17 = vmul.f32 1.442695, %v2855_v53  ;;  %v2856_v54 = vsub.f32 %v7048_v42, %v2792_v16 }
 0x75e   : > { %v2783_v47 = vpop.xlane.xlu0 %2782  ;;  %v2961_v35 = vsel %vm1559_vm2, %v7189_v61, 0.0  ;;  %v7194_v59 = vpop.eup %5094 }
 0x75f   : > { %5104 = vpow2.f32 %v2901_v17  ;;  %v2853_v4 = vsub.f32 %v7053_v43, %v2783_v47  ;;  %2962 = vadd.xlane.f32.xlu1 %v2961_v35  ;;  %v2903_v13 = vmul.f32 1.442695, %v2856_v54  ;;  %v2970_v42 = vsel %vm1559_vm2, %v7194_v59, 0.0 }
 0x760   : > { %v2786_v52 = vpop.xlane.xlu1 %2785  ;;  %5106 = vpow2.f32 %v2883_v23 }
 0x761   : > { %v7197_v14 = vpop.eup %5096  ;;  %v2897_v11 = vmul.f32 1.442695, %v2853_v4  ;;  %v2854_v22 = vsub.f32 %v7058_v60, %v2786_v52 }
 0x762   : > { %v2801_v51 = vpop.xlane.xlu0 %2800  ;;  %v2955_v10 = vsel %vm1559_vm2, %v7197_v14, 0.0  ;;  %v7204_v25 = vpop.eup %5098 }
 0x763   : > { %5108 = vpow2.f32 %v2897_v11  ;;  %v2899_v43 = vmul.f32 1.442695, %v2854_v22  ;;  %v2859_v58 = vsub.f32 %v7063_v30, %v2801_v51  ;;  %2971 = vadd.xlane.f32.xlu1 %v2970_v42  ;;  %2956 = vadd.xlane.f32.xlu0 %v2955_v10  ;;  %v2964_v53 = vsel %vm1559_vm2, %v7204_v25, 0.0 }
 0x764   : > { %5110 = vpow2.f32 %v2903_v13  ;;  %v2804_v24 = vpop.xlane.xlu1 %2803 }
 0x765   : > { %v7207_v32 = vpop.eup %5100  ;;  %5112 = vpow2.f32 %v2899_v43  ;;  %v2909_v60 = vmul.f32 1.442695, %v2859_v58  ;;  %v2860_v47 = vsub.f32 %v7068_v37, %v2804_v24 }
 0x766   : > { %v2795_v29 = vpop.xlane.xlu0 %2794  ;;  %v2949_v16 = vsel %vm1559_vm2, %v7207_v32, 0.0  ;;  %v7213_v23 = vpop.eup %5102 }
 0x767   : > { %v2857_v17 = vsub.f32 %v7073_v50, %v2795_v29  ;;  %2965 = vadd.xlane.f32.xlu1 %v2964_v53  ;;  %2950 = vadd.xlane.f32.xlu0 %v2949_v16  ;;  %5114 = vpow2.f32 %v2909_v60  ;;  %v2958_v52 = vsel %vm1559_vm2, %v7213_v23, 0.0  ;;  %v2911_v10 = vmul.f32 1.442695, %v2860_v47 }
 0x768   : > { %v2798_v30 = vpop.xlane.xlu1 %2797 }
 0x769   : > { %v7216_v54 = vpop.eup %5104  ;;  %v2905_v35 = vmul.f32 1.442695, %v2857_v17  ;;  %v2858_v4 = vsub.f32 %v7078_v33, %v2798_v30 }
 0x76a   : > { %v2825_v13 = vpop.xlane.xlu0 %2824  ;;  %v2979_v11 = vsel %vm1559_vm2, %v7216_v54, 0.0  ;;  %v7224_v22 = vpop.eup %5106 }
 0x76b   : > { %v2907_v50 = vmul.f32 1.442695, %v2858_v4  ;;  %v2867_v51 = vsub.f32 %v7085_v34, %v2825_v13  ;;  %2959 = vadd.xlane.f32.xlu1 %v2958_v52  ;;  %2980 = vadd.xlane.f32.xlu0 %v2979_v11  ;;  %5116 = vpow2.f32 %v2905_v35  ;;  %v2952_v60 = vsel %vm1559_vm2, %v7224_v22, 0.0 }
 0x76c   : > { %v2828_v42 = vpop.xlane.xlu1 %2827 }
 0x76d   : > { %v7227_v37 = vpop.eup %5108  ;;  %5118 = vpow2.f32 %v2907_v50  ;;  %v2925_v33 = vmul.f32 1.442695, %v2867_v51  ;;  %v2868_v43 = vsub.f32 %v7093_v6, %v2828_v42 }
 0x76e   : > { %v7230_v58 = vpop.eup %5110  ;;  %v2819_v24 = vpop.xlane.xlu0 %2818  ;;  %v2973_v34 = vsel %vm1559_vm2, %v7227_v37, 0.0 }
 0x76f   : > { %v7236_v29 = vpop.eup %5112  ;;  %5120 = vpow2.f32 %v2925_v33  ;;  %v2865_v53 = vsub.f32 %v7090_v1, %v2819_v24  ;;  %2953 = vadd.xlane.f32.xlu1 %v2952_v60  ;;  %2974 = vadd.xlane.f32.xlu0 %v2973_v34  ;;  %v2927_v17 = vmul.f32 1.442695, %v2868_v43  ;;  %v2982_v4 = vsel %vm1559_vm2, %v7230_v58, 0.0 }
 0x770   : > { %v2822_v16 = vpop.xlane.xlu1 %2821  ;;  %5122 = vpow2.f32 %v2911_v10  ;;  %v2976_v35 = vsel %vm1559_vm2, %v7236_v29, 0.0 }
 0x771   : > { %v2921_v6 = vmul.f32 1.442695, %v2865_v53  ;;  %v2866_v30 = vsub.f32 %v7098_v40, %v2822_v16  ;;  %v7244_v13 = vpop.eup %5114 }
 0x772   : > { %v2813_v47 = vpop.xlane.xlu0 %2812  ;;  %v2991_v10 = vsel %vm1559_vm2, %v7244_v13, 0.0 }
 0x773   : > { %5124 = vpow2.f32 %v2921_v6  ;;  %v2863_v1 = vsub.f32 %v7103_v31, %v2813_v47  ;;  %2977 = vadd.xlane.f32.xlu1 %v2976_v35  ;;  %2983 = vadd.xlane.f32.xlu0 %v2982_v4  ;;  %v2923_v11 = vmul.f32 1.442695, %v2866_v30 }
 0x774   : > { %v2816_v52 = vpop.xlane.xlu1 %2815  ;;  %5126 = vpow2.f32 %v2927_v17 }
 0x775   : > { %v2917_v50 = vmul.f32 1.442695, %v2863_v1  ;;  %v2864_v40 = vsub.f32 %v7108_v38, %v2816_v52  ;;  %v7248_v51 = vpop.eup %5116 }
 0x776   : > { %v2807_v42 = vpop.xlane.xlu0 %2806  ;;  %v2985_v17 = vsel %vm1559_vm2, %v7248_v51, 0.0 }
 0x777   : > { %v7252_v33 = vpop.eup %5118  ;;  %5128 = vpow2.f32 %v2917_v50  ;;  %v2861_v43 = vsub.f32 %v7113_v44, %v2807_v42  ;;  %2992 = vadd.xlane.f32.xlu0 %v2991_v10  ;;  %v2919_v38 = vmul.f32 1.442695, %v2864_v40 }
 0x778   : > { %v2810_v31 = vpop.xlane.xlu1 %2809  ;;  %v2988_v24 = vsel %vm1559_vm2, %v7252_v33, 0.0  ;;  %5130 = vpow2.f32 %v2923_v11 }
 0x779   : > { %v7257_v60 = vpop.eup %5120  ;;  %v2913_v34 = vmul.f32 1.442695, %v2861_v43  ;;  %v2862_v53 = vsub.f32 %v7118_v19, %v2810_v31  ;;  %2989 = vadd.xlane.f32.xlu1 %v2988_v24 }
 0x77a   : > { %v2837_v16 = vpop.xlane.xlu0 %2836  ;;  %v7262_v6 = vpop.eup %5122  ;;  %v3015_v47 = vsel %vm1559_vm2, %v7257_v60, 0.0 }
 0x77b   : > { %5132 = vpow2.f32 %v2913_v34  ;;  %v2871_v44 = vsub.f32 %v7123_v26, %v2837_v16  ;;  %2986 = vadd.xlane.f32.xlu0 %v2985_v17  ;;  %v2915_v4 = vmul.f32 1.442695, %v2862_v53  ;;  %v2994_v11 = vsel %vm1559_vm2, %v7262_v6, 0.0 }
 0x77c   : > { %v2840_v30 = vpop.xlane.xlu1 %2839  ;;  %5134 = vpow2.f32 %v2919_v38 }
 0x77d   : > { %v7267_v35 = vpop.eup %5124  ;;  %v2933_v19 = vmul.f32 1.442695, %v2871_v44  ;;  %v2872_v1 = vsub.f32 %v7128_v45, %v2840_v30  ;;  %3016 = vadd.xlane.f32.xlu1 %v3015_v47 }
 0x77e   : > { %v2831_v52 = vpop.xlane.xlu0 %2830  ;;  %v7272_v50 = vpop.eup %5126  ;;  %v3009_v42 = vsel %vm1559_vm2, %v7267_v35, 0.0 }
 0x77f   : > { %5136 = vpow2.f32 %v2933_v19  ;;  %v2869_v26 = vsub.f32 %v7133_v9, %v2831_v52  ;;  %2995 = vadd.xlane.f32.xlu0 %v2994_v11  ;;  %v2935_v43 = vmul.f32 1.442695, %v2872_v1  ;;  %v3018_v38 = vsel %vm1559_vm2, %v7272_v50, 0.0 }
 0x780   : > { %v2834_v40 = vpop.xlane.xlu1 %2833  ;;  %5138 = vpow2.f32 %v2915_v4 }
 0x781   : > { %v7277_v10 = vpop.eup %5128  ;;  %v2929_v45 = vmul.f32 1.442695, %v2869_v26  ;;  %v2870_v31 = vsub.f32 %v7138_v3, %v2834_v40  ;;  %3010 = vadd.xlane.f32.xlu1 %v3009_v42 }
 0x782   : > { %v7280_v24 = vpop.permute.xlu0 %3412  ;;  %v7284_v34 = vpop.eup %5130  ;;  %v3003_v9 = vsel %vm1559_vm2, %v7277_v10, 0.0 }
 0x783   : > { %5140 = vpow2.f32 %v2929_v45  ;;  %3019 = vadd.xlane.f32.xlu0 %v3018_v38  ;;  %4643 = vmatprep.subr.bf16.mxu0 %v7280_v24  ;;  %v2931_v16 = vmul.f32 1.442695, %v2870_v31  ;;  %v3012_v3 = vsel %vm1559_vm2, %v7284_v34, 0.0 }
 0x784   : > { %5142 = vpow2.f32 %v2935_v43  ;;  %v7323_v45 = vpop.permute.xlu1 %3414 }
 0x785   : > { %v7289_v53 = vpop.eup %5132  ;;  %3004 = vadd.xlane.f32.xlu1 %v3003_v9  ;;  %5144 = vpow2.f32 %v2931_v16 }
 0x786   : > { %v7293_v17 = vpop.eup %5134  ;;  %v2997_v44 = vsel %vm1559_vm2, %v7289_v53, 0.0 }
 0x787   : > { %3013 = vadd.xlane.f32.xlu0 %v3012_v3  ;;  %v3006_v47 = vsel %vm1559_vm2, %v7293_v17, 0.0 }
 0x789   : > { %v7297_v30 = vpop.eup %5136  ;;  %2998 = vadd.xlane.f32.xlu1 %v2997_v44 }
 0x78a   : > { %v7301_v4 = vpop.eup %5138  ;;  %v3027_v19 = vsel %vm1559_vm2, %v7297_v30, 0.0 }
 0x78b   : > { %3007 = vadd.xlane.f32.xlu0 %v3006_v47  ;;  %v3000_v52 = vsel %vm1559_vm2, %v7301_v4, 0.0 }
 0x78d   : > { %v7305_v1 = vpop.eup %5140  ;;  %3028 = vadd.xlane.f32.xlu1 %v3027_v19 }
 0x78e   : > { %v7309_v11 = vpop.eup %5142  ;;  %v3021_v26 = vsel %vm1559_vm2, %v7305_v1, 0.0 }
 0x78f   : > { %3001 = vadd.xlane.f32.xlu0 %v3000_v52  ;;  %v3030_v40 = vsel %vm1559_vm2, %v7309_v11, 0.0  ;;  %v7315_v42 = vpop.eup %5144 }
 0x790   : > { %v3024_v43 = vsel %vm1559_vm2, %v7315_v42, 0.0 }
 0x791   : > { %3022 = vadd.xlane.f32.xlu1 %v3021_v26 }
 0x793   : > { %3031 = vadd.xlane.f32.xlu0 %v3030_v40 }
 0x797   : > { %3025 = vadd.xlane.f32.xlu0 %v3024_v43 }
 0x7a2   : > { %3416 = vrot.lane.b32.xlu1 %v6214_v62, %s5411_s11 }
 0x7ad   : > { %3418 = vrot.lane.b32.xlu0 %v7737_v57, %s5411_s11 }
 0x7b3   : > { %v2945_v31 = vpop.xlane.xlu0 %2944 }
 0x7b5   : > { %v2948_v38 = vpop.xlane.xlu1 %2947 }
 0x7b6   : > { %5146 = vrcp.f32 %v2948_v38 }
 0x7b7   : > { %v2939_v9 = vpop.xlane.xlu0 %2938 }
 0x7b8   : > { %5148 = vrcp.f32 %v2939_v9 }
 0x7b9   : > { %5150 = vrcp.f32 %v2945_v31  ;;  %v2942_v16 = vpop.xlane.xlu1 %2941 }
 0x7ba   : > { %5152 = vrcp.f32 %v2942_v16 }
 0x7c0   : > { %v5147_v3 = vpop.eup %5146 }
 0x7c1   : > { %v3100_v52 = vmul.f32 %v5147_v3, %v7162_v36 }
 0x7c2   : > { %v5149_v44 = vpop.eup %5148 }
 0x7c3   : > { %v5151_v47 = vpop.eup %5150  ;;  %v3097_v62 = vmul.f32 %v5149_v44, %v7166_v20 }
 0x7c4   : > { %v5153_v19 = vpop.eup %5152  ;;  %v3099_v26 = vmul.f32 %v5151_v47, %v7160_v5 }
 0x7c5   : > { %v3098_v57 = vmul.f32 %v5153_v19, %v7170_v27 }
 0x7c6   : > { %v3130_v43 = vpack.c.bf16 %v3100_v52, %v3099_v26 }
 0x7c7   : > { %v3129_v40 = vpack.c.bf16 %v3098_v57, %v3097_v62 }
 0x7c9   : > { %4603 = vmatprep.mubr.msk.bf16.mxu1 %vm1559_vm2, %v3129_v40 }
 0x7ca   : > { %4604 = vmatmul.mubr.msk.bf16.vlgmr.msra.gmra.mrb[40].mxu1 %vm1559_vm2, %v3130_v43 }
 0x7cb   : > { %4628 = vmatpush3.bf16.msra.mxu1 %v6900_v28 }
 0x7cc   : > { %4629 = vmatprep.subr.bf16.mxu1 %v7148_v55 }
 0x7cf   : > { %4630 = vmatpush3.bf16.msra.mxu1 %v7148_v55 }
 0x7d0   : > { %4631 = vmatprep.subr.bf16.mxu1 %v7152_v56 }
 0x7d3   : > { %4632 = vmatpush3.bf16.msra.mxu1 %v7152_v56 }
 0x7d4   : > { %4633 = vmatprep.subr.bf16.mxu1 %v7154_v49 }
 0x7d7   : > { %4634 = vmatpush3.bf16.msra.mxu1 %v7154_v49 }
 0x7e8   : > { %v2969_v5 = vpop.xlane.xlu1 %2968 }
 0x7ec   : > { %v2963_v36 = vpop.xlane.xlu1 %2962 }
 0x7f0   : > { %v2972_v20 = vpop.xlane.xlu1 %2971  ;;  %v2957_v27 = vpop.xlane.xlu0 %2956 }
 0x7f1   : > { %5154 = vrcp.f32 %v2972_v20 }
 0x7f2   : > { %5156 = vrcp.f32 %v2963_v36 }
 0x7f3   : > { %5158 = vrcp.f32 %v2969_v5 }
 0x7f4   : > { %v2966_v28 = vpop.xlane.xlu1 %2965  ;;  %v2951_v31 = vpop.xlane.xlu0 %2950 }
 0x7f5   : > { %5160 = vrcp.f32 %v2966_v28 }
 0x7f8   : > { %v2960_v38 = vpop.xlane.xlu1 %2959  ;;  %v2981_v55 = vpop.xlane.xlu0 %2980 }
 0x7f9   : > { %5162 = vrcp.f32 %v2960_v38 }
 0x7fa   : > { %5164 = vrcp.f32 %v2951_v31 }
 0x7fb   : > { %v5155_v9 = vpop.eup %5154  ;;  %5166 = vrcp.f32 %v2957_v27 }
 0x7fc   : > { %v2954_v56 = vpop.xlane.xlu1 %2953  ;;  %v2975_v16 = vpop.xlane.xlu0 %2974  ;;  %v3108_v47 = vmul.f32 %v5155_v9, %v7194_v59 }
 0x7fd   : > { %v5157_v3 = vpop.eup %5156  ;;  %5168 = vrcp.f32 %v2954_v56 }
 0x7fe   : > { %v5159_v49 = vpop.eup %5158  ;;  %5170 = vrcp.f32 %v2975_v16  ;;  %v3105_v62 = vmul.f32 %v5157_v3, %v7189_v61 }
 0x7ff   : > { %v5161_v44 = vpop.eup %5160  ;;  %5172 = vrcp.f32 %v2981_v55  ;;  %v3107_v26 = vmul.f32 %v5159_v49, %v7183_v39 }
 0x800   : > { %v2978_v19 = vpop.xlane.xlu1 %2977  ;;  %v2984_v52 = vpop.xlane.xlu0 %2983  ;;  %v3106_v57 = vmul.f32 %v5161_v44, %v7204_v25 }
 0x801   : > { %5174 = vrcp.f32 %v2978_v19  ;;  %v3134_v43 = vpack.c.bf16 %v3108_v47, %v3107_v26 }
 0x802   : > { %5176 = vrcp.f32 %v2984_v52  ;;  %v3133_v40 = vpack.c.bf16 %v3106_v57, %v3105_v62 }
 0x803   : > { %v5163_v5 = vpop.eup %5162 }
 0x804   : > { %4619 = vmatprep.mubr.msk.bf16.mxu0 %vm1559_vm2, %v3133_v40  ;;  %v2993_v36 = vpop.xlane.xlu0 %2992  ;;  %v5165_v20 = vpop.eup %5164  ;;  %v3104_v39 = vmul.f32 %v5163_v5, %v7213_v23 }
 0x805   : > { %4620 = vmatmul.mubr.msk.bf16.vlgmr.msra.gmra.mrb[88].mxu0 %vm1559_vm2, %v3134_v43  ;;  %v5167_v59 = vpop.eup %5166  ;;  %v3101_v28 = vmul.f32 %v5165_v20, %v7207_v32 }
 0x806   : > { %4644 = vmatpush3.bf16.msra.mxu0 %v7280_v24  ;;  %v2990_v27 = vpop.xlane.xlu1 %2989  ;;  %v3103_v55 = vmul.f32 %v5167_v59, %v7197_v14 }
 0x807   : > { %v5169_v61 = vpop.eup %5168  ;;  %5178 = vrcp.f32 %v2990_v27  ;;  %4645 = vmatprep.subr.bf16.mxu0 %v7323_v45 }
 0x808   : > { %v2987_v25 = vpop.xlane.xlu0 %2986  ;;  %v3102_v31 = vmul.f32 %v5169_v61, %v7224_v22  ;;  %v5171_v38 = vpop.eup %5170  ;;  %v3132_v3 = vpack.c.bf16 %v3104_v39, %v3103_v55 }
 0x809   : > { %5180 = vrcp.f32 %v2987_v25  ;;  %v5173_v9 = vpop.eup %5172  ;;  %v3109_v32 = vmul.f32 %v5171_v38, %v7227_v37 }
 0x80a   : > { %4646 = vmatpush3.bf16.msra.mxu0 %v7323_v45  ;;  %v3017_v24 = vpop.xlane.xlu1 %3016  ;;  %v3131_v56 = vpack.c.bf16 %v3102_v31, %v3101_v28  ;;  %5182 = vrcp.f32 %v2993_v36  ;;  %v3111_v14 = vmul.f32 %v5173_v9, %v7216_v54 }
 0x80b   : > { %v5175_v16 = vpop.eup %5174 }
 0x80c   : > { %v5177_v49 = vpop.eup %5176  ;;  %4607 = vmatprep.mubr.msk.bf16.mxu1 %vm1559_vm2, %v3131_v56  ;;  %v2996_v23 = vpop.xlane.xlu0 %2995  ;;  %v3110_v22 = vmul.f32 %v5175_v16, %v7236_v29 }
 0x80d   : > { %5184 = vrcp.f32 %v2996_v23  ;;  %4608 = vmatmul.mubr.msk.bf16.gmra.mrb[44].mxu1 %vm1559_vm2, %v3132_v3  ;;  %v3112_v45 = vmul.f32 %v5177_v49, %v7230_v58 }
 0x80e   : > { %v3011_v44 = vpop.xlane.xlu1 %3010  ;;  %v3135_v47 = vpack.c.bf16 %v3110_v22, %v3109_v32 }
 0x80f   : > { %v3136_v19 = vpack.c.bf16 %v3112_v45, %v3111_v14  ;;  %5186 = vrcp.f32 %v3011_v44 }
 0x810   : > { %4623 = vmatprep.mubr.msk.bf16.mxu0 %vm1559_vm2, %v3135_v47  ;;  %v3020_v52 = vpop.xlane.xlu0 %3019 }
 0x811   : > { %v5179_v62 = vpop.eup %5178  ;;  %4624 = vmatmul.mubr.msk.bf16.gmra.mrb[92].mxu0 %vm1559_vm2, %v3136_v19 }
 0x812   : > { %v3005_v57 = vpop.xlane.xlu1 %3004  ;;  %v3114_v40 = vmul.f32 %v5179_v62, %v7252_v33 }
 0x813   : > { %v5181_v37 = vpop.eup %5180 }
 0x814   : > { %v3014_v29 = vpop.xlane.xlu0 %3013  ;;  %v3113_v26 = vmul.f32 %v5181_v37, %v7248_v51  ;;  %v5183_v54 = vpop.eup %5182 }
 0x815   : > { %5188 = vrcp.f32 %v3014_v29  ;;  %v3115_v36 = vmul.f32 %v5183_v54, %v7244_v13  ;;  %v4888_v29 = vld [vmem:[%s7679_s6] sm:$0xff]  }
 0x816   : > { %v2999_v58 = vpop.xlane.xlu1 %2998  ;;  %v3137_v43 = vpack.c.bf16 %v3114_v40, %v3113_v26  ;;  %5190 = vrcp.f32 %v3017_v24  ;;  %4659 = vmatprep.subr.bf16.mxu1 %v4888_v29 }
 0x817   : > { %v5185_v5 = vpop.eup %5184  ;;  %5192 = vrcp.f32 %v3020_v52 }
 0x818   : > { %v3116_v20 = vmul.f32 %v5185_v5, %v7262_v6  ;;  %4635 = vmatprep.mubr.msk.bf16.mxu1 %vm1559_vm2, %v3137_v43  ;;  %v3008_v59 = vpop.xlane.xlu0 %3007 }
 0x819   : > { %5194 = vrcp.f32 %v3008_v59  ;;  %v5187_v33 = vpop.eup %5186 }
 0x81a   : > { %v3138_v27 = vpack.c.bf16 %v3116_v20, %v3115_v36  ;;  %v3029_v61 = vpop.xlane.xlu1 %3028  ;;  %5196 = vrcp.f32 %v2999_v58  ;;  %v3121_v28 = vmul.f32 %v5187_v33, %v7267_v35 }
 0x81b   : > { %5198 = vrcp.f32 %v3005_v57 }
 0x81c   : > { %4636 = vmatmul.mubr.msk.bf16.vlgmr.msra.gmra.mrb[48].mxu1 %vm1559_vm2, %v3138_v27  ;;  %v3002_v51 = vpop.xlane.xlu0 %3001 }
 0x81d   : > { %5200 = vrcp.f32 %v3002_v51  ;;  %4660 = vmatpush3.bf16.msra.mxu1 %v4888_v29 }
 0x81e   : > { %v3023_v39 = vpop.xlane.xlu1 %3022 }
 0x81f   : > { %v5189_v25 = vpop.eup %5188 }
 0x820   : > { %v3032_v13 = vpop.xlane.xlu0 %3031  ;;  %v3122_v6 = vmul.f32 %v5189_v25, %v7284_v34  ;;  %v5191_v31 = vpop.eup %5190 }
 0x821   : > { %5202 = vrcp.f32 %v3032_v13  ;;  %v5193_v9 = vpop.eup %5192  ;;  %v3123_v14 = vmul.f32 %v5191_v31, %v7257_v60 }
 0x822   : > { %v3417_v38 = vpop.permute.xlu1 %3416  ;;  %v3141_v55 = vpack.c.bf16 %v3122_v6, %v3121_v28  ;;  %5204 = vrcp.f32 %v3023_v39  ;;  %v3124_v35 = vmul.f32 %v5193_v9, %v7272_v50 }
 0x823   : > { %4647 = vmatprep.subr.bf16.mxu0 %v3417_v38  ;;  %v5195_v24 = vpop.eup %5194  ;;  %5206 = vrcp.f32 %v3029_v61 }
 0x824   : > { %4648 = vmatpush3.bf16.msra.mxu0 %v3417_v38  ;;  %4651 = vmatprep.mubr.msk.bf16.mxu0 %vm1559_vm2, %v3141_v55  ;;  %v3026_v56 = vpop.xlane.xlu0 %3025  ;;  %v5197_v16 = vpop.eup %5196  ;;  %v3120_v34 = vmul.f32 %v5195_v24, %v7293_v17  ;;  %v3142_v47 = vpack.c.bf16 %v3124_v35, %v3123_v14 }
 0x825   : > { %5208 = vrcp.f32 %v3026_v56  ;;  %v5199_v3 = vpop.eup %5198  ;;  %v3117_v32 = vmul.f32 %v5197_v16, %v7289_v53 }
 0x826   : > { %v3119_v45 = vmul.f32 %v5199_v3, %v7277_v10 }
 0x827   : > { %v5201_v49 = vpop.eup %5200 }
 0x828   : > { %v3419_v23 = vpop.permute.xlu0 %3418  ;;  %v3118_v22 = vmul.f32 %v5201_v49, %v7301_v4  ;;  %v3140_v19 = vpack.c.bf16 %v3120_v34, %v3119_v45 }
 0x829   : > { %4649 = vmatprep.subr.bf16.mxu0 %v3419_v23 }
 0x82a   : > { %4650 = vmatpush3.bf16.msra.mxu0 %v3419_v23  ;;  %v3139_v44 = vpack.c.bf16 %v3118_v22, %v3117_v32 }
 0x82b   : > { %v5203_v52 = vpop.eup %5202 }
 0x82c   : > { %4639 = vmatprep.mubr.msk.bf16.mxu1 %vm1559_vm2, %v3139_v44  ;;  %v5205_v50 = vpop.eup %5204  ;;  %v3128_v4 = vmul.f32 %v5203_v52, %v7309_v11 }
 0x82d   : > { %4640 = vmatmul.mubr.msk.bf16.gmra.mrb[52].mxu1 %vm1559_vm2, %v3140_v19  ;;  %4652 = vmatmul.mubr.msk.bf16.vlgmr.msra.gmra.mrb[96].mxu0 %vm1559_vm2, %v3142_v47  ;;  %v5207_v53 = vpop.eup %5206  ;;  %v3125_v60 = vmul.f32 %v5205_v50, %v7305_v1  ;;  %v4889_v1 = vld [vmem:[%s7679_s6 + $0x8] sm:$0xff]  }
 0x82e   : > { %v3127_v62 = vmul.f32 %v5207_v53, %v7297_v30  ;;  %4661 = vmatprep.subr.bf16.mxu1 %v4889_v1 }
 0x82f   : > { %v5209_v17 = vpop.eup %5208  ;;  %4662 = vmatpush3.bf16.msra.mxu1 %v4889_v1 }
 0x830   : > { %v3126_v10 = vmul.f32 %v5209_v17, %v7315_v42  ;;  %v3144_v37 = vpack.c.bf16 %v3128_v4, %v3127_v62 }
 0x832   : > { %v3143_v57 = vpack.c.bf16 %v3126_v10, %v3125_v60 }
 0x834   : > { %4655 = vmatprep.mubr.msk.bf16.mxu0 %vm1559_vm2, %v3143_v57 }
 0x835   : > { %4656 = vmatmul.mubr.msk.bf16.gmra.mrb[100].mxu0 %vm1559_vm2, %v3144_v37 }
 0x89d   : > { %v4605_v11 = vpop.f32.mrb[40].mxu1 }
 0x89e   : > { %v3203_v30 = vpop.f32.mrb[41].mxu1 }
 0x89f   : > { %v4606_v42 = vpop.f32.mrb[42].mxu1 }
 0x8a0   : > { %v4811_v26 = vpack.i.bf16 %v4606_v42, %v4605_v11  ;;  %v3206_v40 = vpop.f32.mrb[43].mxu1 }
 0x8a1   : > { %v4806_v54 = vpack.i.bf16 %v3206_v40, %v3203_v30 }
 0x8a2   : > { %4812 = vrot.lane.b32.xlu0 %v4811_v26, %s5412_s18 }
 0x8a3   : > { %4807 = vrot.lane.b32.xlu1 %v4806_v54, %s5412_s18 }
 0x8d8   : > { %v4621_v58 = vpop.f32.mrb[88].mxu0 }
 0x8d9   : > { %v3292_v43 = vpop.f32.mrb[89].mxu0 }
 0x8da   : > { %v4622_v5 = vpop.f32.mrb[90].mxu0 }
 0x8db   : > { %v4831_v36 = vpack.i.bf16 %v4622_v5, %v4621_v58  ;;  %v3295_v20 = vpop.f32.mrb[91].mxu0 }
 0x8dc   : > { %v4826_v59 = vpack.i.bf16 %v3295_v20, %v3292_v43 }
 0x8e0   : > { %v4609_v27 = vpop.f32.mrb[44].mxu1 }
 0x8e1   : > { %v3219_v61 = vpop.f32.mrb[45].mxu1 }
 0x8e2   : > { %v4610_v51 = vpop.f32.mrb[46].mxu1 }
 0x8e3   : > { %v4821_v33 = vpack.i.bf16 %v4610_v51, %v4609_v27  ;;  %v3222_v39 = vpop.f32.mrb[47].mxu1 }
 0x8e4   : > { %v4816_v25 = vpack.i.bf16 %v3222_v39, %v3219_v61  ;;  %v4625_v13 = vpop.f32.mrb[92].mxu0 }
 0x8e5   : > { %4822 = vrot.lane.b32.xlu0 %v4821_v33, %s5412_s18  ;;  %v3308_v28 = vpop.f32.mrb[93].mxu0 }
 0x8e6   : > { %4817 = vrot.lane.b32.xlu1 %v4816_v25, %s5412_s18  ;;  %v4626_v6 = vpop.f32.mrb[94].mxu0 }
 0x8e7   : > { %v4841_v31 = vpack.i.bf16 %v4626_v6, %v4625_v13  ;;  %v3311_v38 = vpop.f32.mrb[95].mxu0 }
 0x8e8   : > { %v4836_v55 = vpack.i.bf16 %v3311_v38, %v3308_v28 }
 0x8e9   : > { %4832 = vrot.lane.b32.xlu0 %v4831_v36, %s5412_s18 }
 0x8ea   : > { %4827 = vrot.lane.b32.xlu1 %v4826_v59, %s5412_s18 }
 0x8ed   : > { %4842 = vrot.lane.b32.xlu0 %v4841_v31, %s5412_s18 }
 0x8ee   : > { %4837 = vrot.lane.b32.xlu1 %v4836_v55, %s5412_s18 }
 0x8ef   : > { %v4637_v9 = vpop.f32.mrb[48].mxu1 }
 0x8f0   : > { %v3381_v24 = vpop.f32.mrb[49].mxu1 }
 0x8f1   : > { %v4638_v56 = vpop.f32.mrb[50].mxu1 }
 0x8f2   : > { %v4851_v16 = vpack.i.bf16 %v4638_v56, %v4637_v9  ;;  %v3384_v3 = vpop.f32.mrb[51].mxu1 }
 0x8f3   : > { %v4846_v49 = vpack.i.bf16 %v3384_v3, %v3381_v24 }
 0x8f4   : > { %4852 = vrot.lane.b32.xlu0 %v4851_v16, %s5412_s18 }
 0x8f5   : > { %4847 = vrot.lane.b32.xlu1 %v4846_v49, %s5412_s18  ;;  %v7777_v49 = vld [vmem:[#allocation26_spill] sm:$0xff] }
 0x900   : > { %v4641_v35 = vpop.f32.mrb[52].mxu1  ;;  %v4653_v34 = vpop.f32.mrb[96].mxu0 }
 0x901   : > { %v3397_v23 = vpop.f32.mrb[53].mxu1  ;;  %v3470_v32 = vpop.f32.mrb[97].mxu0 }
 0x902   : > { %v4642_v22 = vpop.f32.mrb[54].mxu1  ;;  %v4654_v14 = vpop.f32.mrb[98].mxu0 }
 0x903   : > { %v4861_v45 = vpack.i.bf16 %v4642_v22, %v4641_v35  ;;  %v4871_v44 = vpack.i.bf16 %v4654_v14, %v4653_v34  ;;  %v3400_v47 = vpop.f32.mrb[55].mxu1  ;;  %v3473_v19 = vpop.f32.mrb[99].mxu0  ;;  %v7778_v35 = vld [vmem:[#allocation15_spill] sm:$0xff] }
 0x904   : > { %v4856_v52 = vpack.i.bf16 %v3400_v47, %v3397_v23  ;;  %v4866_v50 = vpack.i.bf16 %v3473_v19, %v3470_v32  ;;  %v7779_v23 = vld [vmem:[#allocation16_spill] sm:$0xff]  ;;  %v7780_v32 = vld [vmem:[#allocation17_spill] sm:$0xff] }
 0x905   : > { %4862 = vrot.lane.b32.xlu0 %v4861_v45, %s5412_s18 }
 0x906   : > { %4857 = vrot.lane.b32.xlu1 %v4856_v52, %s5412_s18 }
 0x908   : > { %v4657_v53 = vpop.f32.mrb[100].mxu0 }
 0x909   : > { %4872 = vrot.lane.b32.xlu0 %v4871_v44, %s5412_s18  ;;  %v3486_v17 = vpop.f32.mrb[101].mxu0 }
 0x90a   : > { %4867 = vrot.lane.b32.xlu1 %v4866_v50, %s5412_s18  ;;  %v4658_v4 = vpop.f32.mrb[102].mxu0 }
 0x90b   : > { %v4881_v60 = vpack.i.bf16 %v4658_v4, %v4657_v53  ;;  %v3489_v10 = vpop.f32.mrb[103].mxu0  ;;  %v7781_v53 = vld [vmem:[#allocation20_spill] sm:$0xff]  ;;  %v7782_v4 = vld [vmem:[#allocation13_spill] sm:$0xff] }
 0x90c   : > { %v4876_v62 = vpack.i.bf16 %v3489_v10, %v3486_v17 }
 0x90d   : > { %4882 = vrot.lane.b32.xlu0 %v4881_v60, %s5412_s18 }
 0x90e   : > { %4877 = vrot.lane.b32.xlu1 %v4876_v62, %s5412_s18  ;;  %v7783_v62 = vld [vmem:[#allocation12_spill] sm:$0xff]  ;;  %s5332_s18 = sshll.u32 %s5413_s23, 4  ;;  %s5333_s18 = int_to_ptr.vmem [resolvable:$false] %s5332_s18 }
 0x90f   : > { %s5334_s19 = scalar_lea.vmem %s5333_s18, 8192  ;;  %p5335_p5 = scmp.lt.s32.totalorder %s7622_s15, %s5333_s18 }
 0x910   : > { %p5336_p9 = scmp.lt.s32.totalorder %s5334_s19, %s5328_s20 }
 0x912   : > { %p5337_p12 = por %p5336_p9, %p5335_p5 }
 0x914   : > { %v4813_v57 = vpop.permute.xlu0 %4812  ;;  %p5338_p1 = pnand %p5337_p12, %p5331_p3 }
 0x915   : > { %v4815_v37 = vunpack.i.h.bf16 %v4813_v57  ;;  %v4814_v29 = vunpack.i.l.bf16 %v4813_v57  ;;  %v4808_v1 = vpop.permute.xlu1 %4807 }
 0x916   : > { %v4810_v11 = vunpack.i.h.bf16 %v4808_v1  ;;  %v4809_v30 = vunpack.i.l.bf16 %v4808_v1 }
 0x917   : > { %v3632_v42 = vsel %vm1166_vm1, %v6910_v48, %v4815_v37  ;;  %v3631_v26 = vsel %vm1166_vm1, %v6906_v41, %v4814_v29  ;;  %v7784_v37 = vld [vmem:[#allocation18_spill] sm:$0xff] }
 0x918   : > { %v3662_v40 = vpack.c.bf16 %v3632_v42, %v3631_v26  ;;  %v3630_v54 = vsel %vm1166_vm1, %v6912_v7, %v4810_v11  ;;  %v3629_v58 = vsel %vm1166_vm1, %v6908_v21, %v4809_v30 }
 0x919   : > { %v3661_v43 = vpack.c.bf16 %v3630_v54, %v3629_v58  ;;  %v7785_v58 = vld [vmem:[#allocation24_spill] sm:$0xff] }
 0x91b   : > { %4663 = vmatprep.mubr.msk.bf16.mxu1 %vm386_vm0, %v3661_v43 }
 0x91c   : > { %4664 = vmatmul.mubr.msk.bf16.vlgmr.msra.gmra.mrb[56].mxu1 %vm386_vm0, %v3662_v40 }
 0x957   : > { %v4823_v5 = vpop.permute.xlu0 %4822 }
 0x958   : > { %v4825_v36 = vunpack.i.h.bf16 %v4823_v5  ;;  %v4824_v20 = vunpack.i.l.bf16 %v4823_v5  ;;  %v4818_v59 = vpop.permute.xlu1 %4817  ;;  %v7786_v5 = vld [vmem:[#allocation25_spill] sm:$0xff] }
 0x959   : > { %v4820_v48 = vunpack.i.h.bf16 %v4818_v59  ;;  %v4819_v27 = vunpack.i.l.bf16 %v4818_v59  ;;  %v7787_v59 = vld [vmem:[#allocation23_spill] sm:$0xff] }
 0x95a   : > { %v3636_v41 = vsel %vm1166_vm1, %v6918_v0, %v4825_v36  ;;  %v3635_v7 = vsel %vm1166_vm1, %v6914_v46, %v4824_v20 }
 0x95b   : > { %v3664_v61 = vpack.c.bf16 %v3636_v41, %v3635_v7  ;;  %v3634_v21 = vsel %vm1166_vm1, %v6920_v15, %v4820_v48  ;;  %v3633_v51 = vsel %vm1166_vm1, %v6916_v8, %v4819_v27  ;;  %v4833_v33 = vpop.permute.xlu0 %4832  ;;  %v7788_v27 = vld [vmem:[#allocation27_spill] sm:$0xff] }
 0x95c   : > { %v3663_v39 = vpack.c.bf16 %v3634_v21, %v3633_v51  ;;  %v4835_v25 = vunpack.i.h.bf16 %v4833_v33  ;;  %v4834_v13 = vunpack.i.l.bf16 %v4833_v33  ;;  %v4828_v28 = vpop.permute.xlu1 %4827 }
 0x95d   : > { %v4830_v6 = vunpack.i.h.bf16 %v4828_v28  ;;  %v4829_v31 = vunpack.i.l.bf16 %v4828_v28 }
 0x95e   : > { %v3640_v0 = vsel %vm1166_vm1, %v6926_v18, %v4835_v25  ;;  %v3639_v46 = vsel %vm1166_vm1, %v6922_v12, %v4834_v13  ;;  %4667 = vmatprep.mubr.msk.bf16.mxu1 %vm386_vm0, %v3663_v39  ;;  %v7789_v13 = vld [vmem:[#allocation21_spill] sm:$0xff] }
 0x95f   : > { %v3666_v38 = vpack.c.bf16 %v3640_v0, %v3639_v46  ;;  %v3638_v15 = vsel %vm1166_vm1, %v6928_v2, %v4830_v6  ;;  %v3637_v8 = vsel %vm1166_vm1, %v6924_v63, %v4829_v31  ;;  %v4843_v55 = vpop.permute.xlu0 %4842  ;;  %4668 = vmatmul.mubr.msk.bf16.gmra.mrb[60].mxu1 %vm386_vm0, %v3664_v61  ;;  %v7790_v6 = vld [vmem:[#allocation14_spill] sm:$0xff] }
 0x960   : > { %v3665_v9 = vpack.c.bf16 %v3638_v15, %v3637_v8  ;;  %v4845_v24 = vunpack.i.h.bf16 %v4843_v55  ;;  %v4844_v56 = vunpack.i.l.bf16 %v4843_v55  ;;  %v4838_v16 = vpop.permute.xlu1 %4837  ;;  %v7791_v46 = vld [vmem:[#allocation22_spill] sm:$0xff]  ;;  %v7792_v15 = vld [vmem:[#allocation19_spill] sm:$0xff] }
 0x961   : > { %v4840_v18 = vunpack.i.h.bf16 %v4838_v16  ;;  %v4839_v3 = vunpack.i.l.bf16 %v4838_v16 }
 0x962   : > { %v3644_v12 = vsel %vm1166_vm1, %v7777_v49, %v4845_v24  ;;  %v3643_v34 = vsel %vm1166_vm1, %v7778_v35, %v4844_v56  ;;  %4671 = vmatprep.mubr.msk.bf16.mxu1 %vm386_vm0, %v3665_v9  ;;  %v7793_v49 = vld [vmem:[#allocation30_spill] sm:$0xff]  ;;  %v7794_v35 = vld [vmem:[#allocation28_spill] sm:$0xff] }
 0x963   : > { %v3668_v2 = vpack.c.bf16 %v3644_v12, %v3643_v34  ;;  %v3642_v63 = vsel %vm1166_vm1, %v7779_v23, %v4840_v18  ;;  %v3641_v22 = vsel %vm1166_vm1, %v7780_v32, %v4839_v3  ;;  %v7795_v23 = vld [vmem:[#allocation29_spill] sm:$0xff]  ;;  %v7796_v32 = vld [vmem:[#allocation31_spill] sm:$0xff] }
 0x964   : > { %v3667_v14 = vpack.c.bf16 %v3642_v63, %v3641_v22 }
 0x966   : > { %v4853_v45 = vpop.permute.xlu0 %4852 }
 0x967   : > { %v4855_v44 = vunpack.i.h.bf16 %v4853_v45  ;;  %v4854_v47 = vunpack.i.l.bf16 %v4853_v45  ;;  %v4848_v19 = vpop.permute.xlu1 %4847  ;;  %4672 = vmatmul.mubr.msk.bf16.gmra.mrb[64].mxu1 %vm386_vm0, %v3666_v38  ;;  %v7488_v45 = vld [vmem:[%s7680_s7] ss:$0 sm:$0xff] }
 0x968   : > { %v4850_v52 = vunpack.i.h.bf16 %v4848_v19  ;;  %v4849_v50 = vunpack.i.l.bf16 %v4848_v19  ;;  %4675 = vmatprep.mubr.msk.bf16.mxu1 %vm386_vm0, %v3667_v14 }
 0x969   : > { %v3648_v17 = vsel %vm1166_vm1, %v7781_v53, %v4855_v44  ;;  %v3647_v60 = vsel %vm1166_vm1, %v7782_v4, %v4854_v47  ;;  %v5210_v53 = vld [vmem:[%s5645_s24 + $0x20] sm:$0xff] }
 0x96a   : > { %v3670_v10 = vpack.c.bf16 %v3648_v17, %v3647_v60  ;;  %v3646_v57 = vsel %vm1166_vm1, %v7783_v62, %v4850_v52  ;;  %v3645_v29 = vsel %vm1166_vm1, %v7784_v37, %v4849_v50  ;;  %v5212_v37 = vld [vmem:[%s5645_s24 + $0x30] sm:$0xff] }
 0x96b   : > { %v3669_v1 = vpack.c.bf16 %v3646_v57, %v3645_v29 }
 0x96f   : > { %4676 = vmatmul.mubr.msk.bf16.gmra.mrb[68].mxu1 %vm386_vm0, %v3668_v2 }
 0x970   : > { %4679 = vmatprep.mubr.msk.bf16.mxu1 %vm386_vm0, %v3669_v1  ;;  %v5213_v1 = vld [vmem:[%s5645_s24 + $0x10] sm:$0xff] }
 0x977   : > { %v4863_v11 = vpop.permute.xlu0 %4862  ;;  %4680 = vmatmul.mubr.msk.bf16.gmra.mrb[72].mxu1 %vm386_vm0, %v3670_v10  ;;  %v5211_v10 = vld [vmem:[%s5645_s24] sm:$0xff] }
 0x978   : > { %v4865_v30 = vunpack.i.h.bf16 %v4863_v11  ;;  %v4864_v42 = vunpack.i.l.bf16 %v4863_v11  ;;  %v4858_v26 = vpop.permute.xlu1 %4857 }
 0x979   : > { %v4860_v40 = vunpack.i.h.bf16 %v4858_v26  ;;  %v4859_v54 = vunpack.i.l.bf16 %v4858_v26 }
 0x97a   : > { %v3652_v43 = vsel %vm1166_vm1, %v7785_v58, %v4865_v30  ;;  %v3651_v36 = vsel %vm1166_vm1, %v7786_v5, %v4864_v42  ;;  %v5214_v58 = vld [vmem:[%s5645_s24 + $0x60] sm:$0xff] }
 0x97b   : > { %v3672_v20 = vpack.c.bf16 %v3652_v43, %v3651_v36  ;;  %v3650_v48 = vsel %vm1166_vm1, %v7787_v59, %v4860_v40  ;;  %v3649_v41 = vsel %vm1166_vm1, %v7788_v27, %v4859_v54  ;;  %v4873_v7 = vpop.permute.xlu0 %4872  ;;  %v5216_v27 = vld [vmem:[%s5645_s24 + $0x70] sm:$0xff] }
 0x97c   : > { %v3671_v61 = vpack.c.bf16 %v3650_v48, %v3649_v41  ;;  %v4875_v21 = vunpack.i.h.bf16 %v4873_v7  ;;  %v4874_v51 = vunpack.i.l.bf16 %v4873_v7  ;;  %v4868_v33 = vpop.permute.xlu1 %4867  ;;  %v5217_v7 = vld [vmem:[%s5645_s24 + $0x50] sm:$0xff] }
 0x97d   : > { %v4870_v39 = vunpack.i.h.bf16 %v4868_v33  ;;  %v4869_v25 = vunpack.i.l.bf16 %v4868_v33 }
 0x97e   : > { %v3656_v28 = vsel %vm1166_vm1, %v7789_v13, %v4875_v21  ;;  %v3655_v31 = vsel %vm1166_vm1, %v7790_v6, %v4874_v51  ;;  %4683 = vmatprep.mubr.msk.bf16.mxu1 %vm386_vm0, %v3671_v61  ;;  %v5218_v13 = vld [vmem:[%s5645_s24 + $0x28] sm:$0xff] }
 0x97f   : > { %v3674_v0 = vpack.c.bf16 %v3656_v28, %v3655_v31  ;;  %v3654_v38 = vsel %vm1166_vm1, %v7791_v46, %v4870_v39  ;;  %v3653_v8 = vsel %vm1166_vm1, %v7792_v15, %v4869_v25  ;;  %v4883_v55 = vpop.permute.xlu0 %4882  ;;  %4684 = vmatmul.mubr.msk.bf16.gmra.mrb[76].mxu1 %vm386_vm0, %v3672_v20  ;;  %v5215_v20 = vld [vmem:[%s5645_s24 + $0x40] sm:$0xff]  ;;  %v5220_v15 = vld [vmem:[%s5645_s24 + $0x38] sm:$0xff] }
 0x980   : > { %v3673_v9 = vpack.c.bf16 %v3654_v38, %v3653_v8  ;;  %v4885_v24 = vunpack.i.h.bf16 %v4883_v55  ;;  %v4884_v56 = vunpack.i.l.bf16 %v4883_v55  ;;  %v4878_v16 = vpop.permute.xlu1 %4877  ;;  %v5221_v55 = vld [vmem:[%s5645_s24 + $0x18] sm:$0xff] }
 0x981   : > { %v4880_v18 = vunpack.i.h.bf16 %v4878_v16  ;;  %v4879_v3 = vunpack.i.l.bf16 %v4878_v16 }
 0x982   : > { %v3660_v12 = vsel %vm1166_vm1, %v7793_v49, %v4885_v24  ;;  %v3659_v34 = vsel %vm1166_vm1, %v7794_v35, %v4884_v56  ;;  %4687 = vmatprep.mubr.msk.bf16.mxu1 %vm386_vm0, %v3673_v9  ;;  %v5222_v49 = vld [vmem:[%s5645_s24 + $0x68] sm:$0xff] }
 0x983   : > { %v3676_v2 = vpack.c.bf16 %v3660_v12, %v3659_v34  ;;  %v3658_v63 = vsel %vm1166_vm1, %v7795_v23, %v4880_v18  ;;  %v3657_v22 = vsel %vm1166_vm1, %v7796_v32, %v4879_v3  ;;  %v5224_v32 = vld [vmem:[%s5645_s24 + $0x78] sm:$0xff] }
 0x984   : > { %v3675_v14 = vpack.c.bf16 %v3658_v63, %v3657_v22 }
 0x987   : > { %4688 = vmatmul.mubr.msk.bf16.gmra.mrb[80].mxu1 %vm386_vm0, %v3674_v0  ;;  %v5219_v0 = vld [vmem:[%s5645_s24 + $0x8] sm:$0xff] }
 0x988   : > { %4691 = vmatprep.mubr.msk.bf16.mxu1 %vm386_vm0, %v3675_v14  ;;  %v5225_v14 = vld [vmem:[%s5645_s24 + $0x58] sm:$0xff] }
 0x98f   : > { %4692 = vmatmul.mubr.msk.bf16.gmra.mrb[84].mxu1 %vm386_vm0, %v3676_v2  ;;  %v5223_v2 = vld [vmem:[%s5645_s24 + $0x48] sm:$0xff] }
 0x9ef   : > { %v4665_v44 = vpop.f32.mrb[56].mxu1 }
 0x9f0   : > { %v3791_v47 = vadd.f32 %v4665_v44, %v7488_v45  ;;  %v3782_v19 = vpop.f32.mrb[57].mxu1 }
 0x9f1   : > { %v3783_v52 = vadd.f32 %v7488_v45, %v3782_v19  ;;  %v4666_v50 = vpop.f32.mrb[58].mxu1 }
 0x9f2   : > { %v3913_v17 = vadd.f32 %v5210_v53, %v3791_v47  ;;  %v3794_v4 = vadd.f32 %v4666_v50, %v7488_v45  ;;  %v3785_v60 = vpop.f32.mrb[59].mxu1 }
 0x9f3   : > { %v3909_v62 = vadd.f32 %v5211_v10, %v3783_v52  ;;  %v3786_v57 = vadd.f32 %v7488_v45, %v3785_v60 }
 0x9f4   : > { %3945 = vst.msk [vmem:[%s7498_s17 + $0x20] sm:$0xff] %vm386_vm0, %v3913_v17  ;;  %v3915_v29 = vadd.f32 %v5212_v37, %v3794_v4  ;;  %v5226_v17 = vld [vmem:[%s5645_s24 + $0xa0] sm:$0xff] }
 0x9f5   : > { %3941 = vst.msk [vmem:[%s7498_s17] sm:$0xff] %vm386_vm0, %v3909_v62  ;;  %v3911_v11 = vadd.f32 %v5213_v1, %v3786_v57  ;;  %v5227_v62 = vld [vmem:[%s5645_s24 + $0x80] sm:$0xff] }
 0x9f6   : > { %3947 = vst.msk [vmem:[%s7498_s17 + $0x30] sm:$0xff] %vm386_vm0, %v3915_v29  ;;  %v5228_v29 = vld [vmem:[%s5645_s24 + $0xb0] sm:$0xff] }
 0x9f7   : > { %3943 = vst.msk [vmem:[%s7498_s17 + $0x10] sm:$0xff] %vm386_vm0, %v3911_v11  ;;  %v5229_v11 = vld [vmem:[%s5645_s24 + $0x90] sm:$0xff] }
 0xa32   : > { %v4669_v30 = vpop.f32.mrb[60].mxu1 }
 0xa33   : > { %v3807_v42 = vadd.f32 %v4669_v30, %v7488_v45  ;;  %v3798_v26 = vpop.f32.mrb[61].mxu1 }
 0xa34   : > { %v3799_v40 = vadd.f32 %v7488_v45, %v3798_v26  ;;  %v4670_v54 = vpop.f32.mrb[62].mxu1 }
 0xa35   : > { %v3921_v43 = vadd.f32 %v5214_v58, %v3807_v42  ;;  %v3810_v5 = vadd.f32 %v4670_v54, %v7488_v45  ;;  %v3801_v36 = vpop.f32.mrb[63].mxu1 }
 0xa36   : > { %v3917_v59 = vadd.f32 %v5215_v20, %v3799_v40  ;;  %v3802_v48 = vadd.f32 %v7488_v45, %v3801_v36 }
 0xa37   : > { %3953 = vst.msk [vmem:[%s7498_s17 + $0x60] sm:$0xff] %vm386_vm0, %v3921_v43  ;;  %v3923_v41 = vadd.f32 %v5216_v27, %v3810_v5  ;;  %v5230_v43 = vld [vmem:[%s5645_s24 + $0xe0] sm:$0xff] }
 0xa38   : > { %3949 = vst.msk [vmem:[%s7498_s17 + $0x40] sm:$0xff] %vm386_vm0, %v3917_v59  ;;  %v3919_v61 = vadd.f32 %v5217_v7, %v3802_v48  ;;  %v5231_v59 = vld [vmem:[%s5645_s24 + $0xc0] sm:$0xff] }
 0xa39   : > { %3955 = vst.msk [vmem:[%s7498_s17 + $0x70] sm:$0xff] %vm386_vm0, %v3923_v41  ;;  %v5232_v41 = vld [vmem:[%s5645_s24 + $0xf0] sm:$0xff] }
 0xa3a   : > { %3951 = vst.msk [vmem:[%s7498_s17 + $0x50] sm:$0xff] %vm386_vm0, %v3919_v61  ;;  %v4673_v21 = vpop.f32.mrb[64].mxu1  ;;  %v5233_v61 = vld [vmem:[%s5645_s24 + $0xd0] sm:$0xff] }
 0xa3b   : > { %v3823_v51 = vadd.f32 %v4673_v21, %v7488_v45  ;;  %v3814_v33 = vpop.f32.mrb[65].mxu1 }
 0xa3c   : > { %v3815_v39 = vadd.f32 %v7488_v45, %v3814_v33  ;;  %v4674_v25 = vpop.f32.mrb[66].mxu1 }
 0xa3d   : > { %v3914_v28 = vadd.f32 %v5218_v13, %v3823_v51  ;;  %v3826_v6 = vadd.f32 %v4674_v25, %v7488_v45  ;;  %v3817_v31 = vpop.f32.mrb[67].mxu1 }
 0xa3e   : > { %v3910_v46 = vadd.f32 %v5219_v0, %v3815_v39  ;;  %v3818_v38 = vadd.f32 %v7488_v45, %v3817_v31 }
 0xa3f   : > { %3946 = vst.msk [vmem:[%s7498_s17 + $0x28] sm:$0xff] %vm386_vm0, %v3914_v28  ;;  %v3916_v8 = vadd.f32 %v5220_v15, %v3826_v6  ;;  %v5234_v28 = vld [vmem:[%s5645_s24 + $0xa8] sm:$0xff] }
 0xa40   : > { %3942 = vst.msk [vmem:[%s7498_s17 + $0x8] sm:$0xff] %vm386_vm0, %v3910_v46  ;;  %v3912_v9 = vadd.f32 %v5221_v55, %v3818_v38  ;;  %v5235_v46 = vld [vmem:[%s5645_s24 + $0x88] sm:$0xff] }
 0xa41   : > { %3948 = vst.msk [vmem:[%s7498_s17 + $0x38] sm:$0xff] %vm386_vm0, %v3916_v8  ;;  %v5236_v8 = vld [vmem:[%s5645_s24 + $0xb8] sm:$0xff] }
 0xa42   : > { %3944 = vst.msk [vmem:[%s7498_s17 + $0x18] sm:$0xff] %vm386_vm0, %v3912_v9  ;;  %v4677_v24 = vpop.f32.mrb[68].mxu1  ;;  %v5237_v9 = vld [vmem:[%s5645_s24 + $0x98] sm:$0xff] }
 0xa43   : > { %v3839_v56 = vadd.f32 %v4677_v24, %v7488_v45  ;;  %v3830_v16 = vpop.f32.mrb[69].mxu1 }
 0xa44   : > { %v3831_v18 = vadd.f32 %v7488_v45, %v3830_v16  ;;  %v4678_v3 = vpop.f32.mrb[70].mxu1 }
 0xa45   : > { %v3922_v12 = vadd.f32 %v5222_v49, %v3839_v56  ;;  %v3842_v35 = vadd.f32 %v4678_v3, %v7488_v45  ;;  %v3833_v34 = vpop.f32.mrb[71].mxu1 }
 0xa46   : > { %v3918_v23 = vadd.f32 %v5223_v2, %v3831_v18  ;;  %v3834_v63 = vadd.f32 %v7488_v45, %v3833_v34 }
 0xa47   : > { %3954 = vst.msk [vmem:[%s7498_s17 + $0x68] sm:$0xff] %vm386_vm0, %v3922_v12  ;;  %v3924_v22 = vadd.f32 %v5224_v32, %v3842_v35  ;;  %v5238_v12 = vld [vmem:[%s5645_s24 + $0xe8] sm:$0xff] }
 0xa48   : > { %3950 = vst.msk [vmem:[%s7498_s17 + $0x48] sm:$0xff] %vm386_vm0, %v3918_v23  ;;  %v3920_v44 = vadd.f32 %v5225_v14, %v3834_v63  ;;  %v5239_v23 = vld [vmem:[%s5645_s24 + $0xc8] sm:$0xff] }
 0xa49   : > { %3956 = vst.msk [vmem:[%s7498_s17 + $0x78] sm:$0xff] %vm386_vm0, %v3924_v22  ;;  %v5240_v22 = vld [vmem:[%s5645_s24 + $0xf8] sm:$0xff] }
 0xa4a   : > { %3952 = vst.msk [vmem:[%s7498_s17 + $0x58] sm:$0xff] %vm386_vm0, %v3920_v44  ;;  %v4681_v47 = vpop.f32.mrb[72].mxu1  ;;  %v5241_v44 = vld [vmem:[%s5645_s24 + $0xd8] sm:$0xff] }
 0xa4b   : > { %v3855_v19 = vadd.f32 %v4681_v47, %v7488_v45  ;;  %v3846_v52 = vpop.f32.mrb[73].mxu1 }
 0xa4c   : > { %v3847_v50 = vadd.f32 %v7488_v45, %v3846_v52  ;;  %v4682_v53 = vpop.f32.mrb[74].mxu1 }
 0xa4d   : > { %v3929_v4 = vadd.f32 %v5226_v17, %v3855_v19  ;;  %v3858_v60 = vadd.f32 %v4682_v53, %v7488_v45  ;;  %v3849_v10 = vpop.f32.mrb[75].mxu1 }
 0xa4e   : > { %v3925_v57 = vadd.f32 %v5227_v62, %v3847_v50  ;;  %v3850_v37 = vadd.f32 %v7488_v45, %v3849_v10 }
 0xa4f   : > { %3961 = vst.msk [vmem:[%s7498_s17 + $0xa0] sm:$0xff] %vm386_vm0, %v3929_v4  ;;  %v3931_v1 = vadd.f32 %v5228_v29, %v3858_v60 }
 0xa50   : > { %3957 = vst.msk [vmem:[%s7498_s17 + $0x80] sm:$0xff] %vm386_vm0, %v3925_v57  ;;  %v3927_v30 = vadd.f32 %v5229_v11, %v3850_v37 }
 0xa51   : > { %3963 = vst.msk [vmem:[%s7498_s17 + $0xb0] sm:$0xff] %vm386_vm0, %v3931_v1 }
 0xa52   : > { %3959 = vst.msk [vmem:[%s7498_s17 + $0x90] sm:$0xff] %vm386_vm0, %v3927_v30  ;;  %v4685_v42 = vpop.f32.mrb[76].mxu1 }
 0xa53   : > { %v3871_v26 = vadd.f32 %v4685_v42, %v7488_v45  ;;  %v3862_v40 = vpop.f32.mrb[77].mxu1 }
 0xa54   : > { %v3863_v54 = vadd.f32 %v7488_v45, %v3862_v40  ;;  %v4686_v58 = vpop.f32.mrb[78].mxu1 }
 0xa55   : > { %v3937_v5 = vadd.f32 %v5230_v43, %v3871_v26  ;;  %v3874_v36 = vadd.f32 %v4686_v58, %v7488_v45  ;;  %v3865_v20 = vpop.f32.mrb[79].mxu1 }
 0xa56   : > { %v3933_v48 = vadd.f32 %v5231_v59, %v3863_v54  ;;  %v3866_v27 = vadd.f32 %v7488_v45, %v3865_v20 }
 0xa57   : > { %3969 = vst.msk [vmem:[%s7498_s17 + $0xe0] sm:$0xff] %vm386_vm0, %v3937_v5  ;;  %v3939_v7 = vadd.f32 %v5232_v41, %v3874_v36 }
 0xa58   : > { %3965 = vst.msk [vmem:[%s7498_s17 + $0xc0] sm:$0xff] %vm386_vm0, %v3933_v48  ;;  %v3935_v21 = vadd.f32 %v5233_v61, %v3866_v27 }
 0xa59   : > { %3971 = vst.msk [vmem:[%s7498_s17 + $0xf0] sm:$0xff] %vm386_vm0, %v3939_v7 }
 0xa5a   : > { %3967 = vst.msk [vmem:[%s7498_s17 + $0xd0] sm:$0xff] %vm386_vm0, %v3935_v21  ;;  %v4689_v51 = vpop.f32.mrb[80].mxu1 }
 0xa5b   : > { %v3887_v33 = vadd.f32 %v4689_v51, %v7488_v45  ;;  %v3878_v39 = vpop.f32.mrb[81].mxu1 }
 0xa5c   : > { %v3879_v25 = vadd.f32 %v7488_v45, %v3878_v39  ;;  %v4690_v13 = vpop.f32.mrb[82].mxu1 }
 0xa5d   : > { %v3930_v6 = vadd.f32 %v5234_v28, %v3887_v33  ;;  %v3890_v31 = vadd.f32 %v4690_v13, %v7488_v45  ;;  %v3881_v0 = vpop.f32.mrb[83].mxu1 }
 0xa5e   : > { %v3926_v38 = vadd.f32 %v5235_v46, %v3879_v25  ;;  %v3882_v15 = vadd.f32 %v7488_v45, %v3881_v0 }
 0xa5f   : > { %3962 = vst.msk [vmem:[%s7498_s17 + $0xa8] sm:$0xff] %vm386_vm0, %v3930_v6  ;;  %v3932_v55 = vadd.f32 %v5236_v8, %v3890_v31 }
 0xa60   : > { %3958 = vst.msk [vmem:[%s7498_s17 + $0x88] sm:$0xff] %vm386_vm0, %v3926_v38  ;;  %v3928_v24 = vadd.f32 %v5237_v9, %v3882_v15 }
 0xa61   : > { %3964 = vst.msk [vmem:[%s7498_s17 + $0xb8] sm:$0xff] %vm386_vm0, %v3932_v55 }
 0xa62   : > { %3960 = vst.msk [vmem:[%s7498_s17 + $0x98] sm:$0xff] %vm386_vm0, %v3928_v24  ;;  %v4693_v56 = vpop.f32.mrb[84].mxu1 }
 0xa63   : > { %v3903_v16 = vadd.f32 %v4693_v56, %v7488_v45  ;;  %v3894_v18 = vpop.f32.mrb[85].mxu1 }
 0xa64   : > { %v3895_v3 = vadd.f32 %v7488_v45, %v3894_v18  ;;  %v4694_v49 = vpop.f32.mrb[86].mxu1 }
 0xa65   : > { %v3938_v35 = vadd.f32 %v5238_v12, %v3903_v16  ;;  %v3906_v34 = vadd.f32 %v4694_v49, %v7488_v45  ;;  %v3897_v2 = vpop.f32.mrb[87].mxu1 }
 0xa66   : > { %v3934_v63 = vadd.f32 %v5239_v23, %v3895_v3  ;;  %v3898_v32 = vadd.f32 %v7488_v45, %v3897_v2 }
 0xa67   : > { %3970 = vst.msk [vmem:[%s7498_s17 + $0xe8] sm:$0xff] %vm386_vm0, %v3938_v35  ;;  %v3940_v14 = vadd.f32 %v5240_v22, %v3906_v34 }
 0xa68   : > { %3966 = vst.msk [vmem:[%s7498_s17 + $0xc8] sm:$0xff] %vm386_vm0, %v3934_v63  ;;  %v3936_v47 = vadd.f32 %v5241_v44, %v3898_v32 }
 0xa69   : > { %3972 = vst.msk [vmem:[%s7498_s17 + $0xf8] sm:$0xff] %vm386_vm0, %v3940_v14 }
 0xa6a   : > { %3968 = vst.msk [vmem:[%s7498_s17 + $0xd8] sm:$0xff] %vm386_vm0, %v3936_v47 }
 0xa6b   : > { %5341 = shalt.err (!%p5338_p1)
}
 0xa6c   : > { %s5342_s24 = scalar_lea.hbm %s7620_s13, 4096  ;;  %s5346_s16 = scalar_lea.hbm %s7681_s8, 8192 }
 0xa6d   : > { %p5343_p13 = scmp.ne.s32.totalorder %s7620_s13, %s5342_s24  ;;  %p5347_p4 = scmp.lt.u32.totalorder %s7620_s13, %s7681_s8 }
 0xa6e   : > { %p5348_p7 = scmp.lt.u32.totalorder %s5346_s16, %s5342_s24  ;;  %p5350_p11 = scmp.lt.u32.totalorder %s5342_s24, %s7620_s13 }
 0xa6f   : > { %p5344_p6 = pnand %p5343_p13, %p7797_p0 }
 0xa70   : > { %p5349_p8 = por %p5348_p7, %p5347_p4 }
 0xa71   : > { %p5345_p10 = pneg %p5344_p6 }
 0xa72   : > { %p5351_p2 = por %p5350_p11, %p5349_p8 }
 0xa74   : > { %p5352_p3 = pnand %p5351_p2, %p5345_p10 }
 0xa76   : > { %5355 = shalt.err (!%p5352_p3)
}
 0xa77   : > { %s5414_s20 = smov 128   ;;  %s5415_s23 = smov 8  }
 0xa78   : > { %4737 = dma.vmem_to_hbm [thread:$0]  (%p7797_p0), %s7622_s15, 4096, %s7620_s13, %s3974_s10, %s5414_s20, %s5414_s20, %s5415_s23  }
 0xa79 PF: > { %s4002_s18 = sand.u32 1, %s5386_s27   ;;  %p7798_p5 = scmp.ne.s32.totalorder %s7706_s12, 0 }
 0xa7a   : > { %p7799_p9 = scmp.ge.s32.totalorder %s5398_s30, 2  ;;  %s4003_s19 = scalar_lea.sflag [#allocation4], %s4002_s18 }
 0xa7c   : > { %p4751_p12 = pnand %p7799_p9, %p7798_p5 }
 0xa7e   : > { %5381 = dma.done.wait (!%p4751_p12), %s4003_s19, 4096  }
 0xa7f   : > { %5383 = vsyncadd (!%p4751_p12), %s4003_s19, 4294963200  ;;  %p22_p1 = scmp.ge.s32.totalorder %s5574_s22, 4   ;;  %s7800_s27 = smov %s5390_s28 }
 0xa80   : > { %s7801_s28 = smov %s5394_s29  ;;  %s7802_s29 = smov %s5583_s25 }
 0xa81   : > { %s7803_s30 = smov %s5574_s22  ;;  %24 = sbr.rel (!%p22_p1) target bundleno = 6 (0x6), region = 106 }
 0xa88   :  { %4008 = vsyncpa [#allocation3], 1 }
 0xa89   :  { %4010 = vsyncpa [#allocation3 + $0x1], 1 }
 0xa8a   :  { %4011 = vsyncpa [#allocation6], 1 }
 0xa8b   :  { %4012 = vsyncpa [#allocation4], 1 }
 0xa8c   :  { %4014 = vsyncpa [#allocation4 + $0x1], 1 }

</bundles_post_ra>
